<compile_context>
chip_gen: v7x
topology: tpu7x:2x2x1
jax: 0.10.0
libtpu: 0.0.40
codegen_flags: <defaults>
</compile_context>

<pallas_src>
import jax
import jax.numpy as jnp
from jax import lax
from jax.experimental import pallas as pl
from jax.experimental.pallas import tpu as pltpu


CH = 64                      # channel width of every conv in this network
MXU_DTYPE = jnp.float32      # set to jnp.bfloat16 on v6e/v7x (re-check tolerance)


# ------------------------------ fused kernel --------------------------------

def _make_fused_kernel(hs, ws, num_layers):
    """Per-image kernel (grid is over batch).  hs/ws = stem-output spatial."""
    hq, wq = hs // 2, ws // 2
    K = 3 * CH

    def kernel(x_ref, w_ref, b_ref, o_ref):

        def conv_bn_relu(src, layer, hh, ww):
            """3x3/s1/p1 conv + folded-BN bias + ReLU on (1, hh, ww, CH) `src`
            (Ref or value).  Returns an f32 value of shape (1, hh, ww, CH).

            K-packed: per kh one (mc, 3*CH) @ (3*CH, CH) MXU matmul with
            register accumulation; kh handled by free H-row shifts."""
            bh = max(1, min(hh, 128 // ww))          # band height (mc ~ 128 rows)
            band_outs = []
            for h0 in range(0, hh, bh):
                nr = min(bh, hh - h0)                # output rows in this band
                rlo, rhi = max(h0 - 1, 0), min(h0 + nr + 1, hh)
                xb = src[:, rlo:rhi].astype(MXU_DTYPE)      # (1, rows, ww, CH)
                zrow = jnp.zeros((1, 1, ww, CH), MXU_DTYPE)
                if rlo > h0 - 1:                     # top halo is zero padding
                    xb = jnp.concatenate([zrow, xb], axis=1)
                if rhi < h0 + nr + 1:                # bottom halo is zero padding
                    xb = jnp.concatenate([xb, zrow], axis=1)
                # pack the three kw taps along channels: (center, left, right)
                zcol = jnp.zeros((1, nr + 2, 1, CH), MXU_DTYPE)
                xl = jnp.concatenate([zcol, xb[:, :, :ww - 1, :]], axis=2)
                xr = jnp.concatenate([xb[:, :, 1:, :], zcol], axis=2)
                pk = jnp.concatenate([xb, xl, xr], axis=3)   # (1, nr+2, ww, 3*CH)

                mc = nr * ww
                acc = jnp.zeros((mc, CH), jnp.float32)
                for kh in range(3):                  # H shift = pick rows, free
                    lhs = pk[:, kh:kh + nr].reshape(mc, K)
                    acc = acc + jnp.dot(lhs, w_ref[layer, kh],
                                        preferred_element_type=jnp.float32)
                y = jnp.maximum(acc + b_ref[layer], 0.0)     # bias + ReLU (f32)
                band_outs.append(y.reshape(1, nr, ww, CH))
            return (band_outs[0] if len(band_outs) == 1
                    else jnp.concatenate(band_outs, axis=1))

        # ---- stem: 5x5/s2 conv expressed as 3x3/s1 on space-to-depth input --
        s = conv_bn_relu(x_ref, 0, hs, ws)                   # (1, hs, ws, CH)

        # ---- MaxPool2d(3, 2, 1): vectorized separable row / col max ---------
        # (post-ReLU values are >= 0, so clamping the -1 pad index to 0 is an
        #  exact replacement for the -inf padding)
        s2 = s.reshape(1, hq, 2, ws, CH)                     # layout-preserving
        a, b = s2[:, :, 0], s2[:, :, 1]                      # rows 2i / 2i+1
        c = jnp.concatenate([a[:, :1], b[:, :hq - 1]], axis=1)   # rows 2i-1
        rm = jnp.maximum(jnp.maximum(a, b), c)               # (1, hq, ws, CH)
        cols = []
        for j in range(wq):
            c0 = max(2 * j - 1, 0)
            cols.append(jnp.maximum(jnp.maximum(rm[:, :, c0, :],
                                                rm[:, :, 2 * j, :]),
                                    rm[:, :, 2 * j + 1, :]))
        act = jnp.stack(cols, axis=2)                        # (1, hq, wq, CH)

        # ---- BasicBlocks (conv-bn-relu x2 each), activations stay in regs ---
        for layer in range(1, num_layers):
            act = conv_bn_relu(act, layer, hq, wq)

        o_ref[...] = act.astype(o_ref.dtype)

    return kernel


# --------------------------- wrapper / preprocessing ------------------------

def _space_to_depth_nhwc(x):
    n, h, w, c = x.shape
    x = x.reshape(n, h // 2, 2, w // 2, 2, c)
    x = x.transpose(0, 1, 3, 2, 4, 5)
    return x.reshape(n, h // 2, w // 2, 4 * c)


def _remap_stem_weight(w5):
    """Exactly rewrite a (5,5,Cin,Cout) stride-2 conv (pad=2) as a (3,3,4*Cin,
    Cout) stride-1 conv (pad=1) acting on the space-to-depth input."""
    _, _, cin, cout = w5.shape
    w3 = jnp.zeros((3, 3, 2, 2, cin, cout), w5.dtype)
    for kh in range(5):
        for kw in range(5):
            dh, ph = (kh - 2) // 2 + 1, kh % 2
            dw, pw = (kw - 2) // 2 + 1, kw % 2
            w3 = w3.at[dh, dw, ph, pw].set(w5[kh, kw])
    return w3.reshape(3, 3, 4 * cin, cout)


def _pack_layer(w_hwio, scale):
    """Fold BN scale and K-pack the kw taps: (3,3,CH,CH) -> (3, 3*CH, CH).
    Tap order along K matches the kernel's packed slab: (kw=1, kw=0, kw=2)."""
    w = w_hwio * scale[None, None, None, :]
    taps = [jnp.concatenate([w[kh, 1], w[kh, 0], w[kh, 2]], axis=0)
            for kh in range(3)]
    return jnp.stack(taps, axis=0)


def student_model_forward(params, x_nchw):
    n, _, h, w = x_nchw.shape
    assert h % 4 == 0 and w % 4 == 0

    # ---- input: NCHW -> NHWC -> space-to-depth -> pad channels to 64 --------
    x = jnp.transpose(x_nchw, (0, 2, 3, 1)).astype(jnp.float32)
    xs = _space_to_depth_nhwc(x)                        # (n, h/2, w/2, 12)
    hs, ws, cs = xs.shape[1], xs.shape[2], xs.shape[3]
    xs = jnp.pad(xs, ((0, 0), (0, 0), (0, 0), (0, CH - cs))).astype(MXU_DTYPE)

    # ---- fold BN scale into conv weights; K-pack; gather per-layer biases ---
    s0, b0 = params["stem_bn"]
    w_stem = _remap_stem_weight(params["stem_w"])       # (3,3,12,64)
    w_stem = jnp.pad(w_stem, ((0, 0), (0, 0), (0, CH - cs), (0, 0)))
    w_layers = [_pack_layer(w_stem, s0)]
    b_layers = [b0]
    for blk in params["blocks"]:
        s1, b1 = blk["bn1"]
        s2, b2 = blk["bn2"]
        w_layers.append(_pack_layer(blk["w1"], s1))
        b_layers.append(b1)
        w_layers.append(_pack_layer(blk["w2"], s2))
        b_layers.append(b2)
    w_all = jnp.stack(w_layers).astype(MXU_DTYPE)       # (L, 3, 3*CH, CH)
    b_all = jnp.stack(b_layers).reshape(-1, 1, CH).astype(jnp.float32)
    num_layers = w_all.shape[0]

    hq, wq = hs // 2, ws // 2
    kernel = _make_fused_kernel(hs, ws, num_layers)

    out = pl.pallas_call(
        kernel,
        out_shape=jax.ShapeDtypeStruct((n, hq, wq, CH), jnp.float32),
        grid=(n,),
        in_specs=[
            pl.BlockSpec((1, hs, ws, CH), lambda i: (i, 0, 0, 0)),
            pl.BlockSpec((num_layers, 3, 3 * CH, CH), lambda i: (0, 0, 0, 0)),
            pl.BlockSpec((num_layers, 1, CH), lambda i: (0, 0, 0)),
        ],
        out_specs=pl.BlockSpec((1, hq, wq, CH), lambda i: (i, 0, 0, 0)),
        compiler_params=pltpu.CompilerParams(
            dimension_semantics=("parallel",),
            vmem_limit_bytes=32 * 1024 * 1024,
        ),
    )(xs, w_all, b_all)

    return jnp.transpose(out, (0, 3, 1, 2))             # NHWC -> NCHW


# ------------------------------- parameters ---------------------------------

def _bn_affine(c, eps=1e-5):
    # PyTorch BatchNorm2d defaults: gamma=1, beta=0, running_mean=0, running_var=1
    gamma = jnp.ones((c,), jnp.float32)
    beta = jnp.zeros((c,), jnp.float32)
    mean = jnp.zeros((c,), jnp.float32)
    var = jnp.ones((c,), jnp.float32)
    scale = gamma / jnp.sqrt(var + eps)
    bias = beta - mean * scale
    return scale, bias


def init_params(key, num_blocks):
    def conv_w(k, kh, kw, cin, cout):
        std = (2.0 / (kh * kw * cin)) ** 0.5
        return jax.random.normal(k, (kh, kw, cin, cout), jnp.float32) * std

    keys = jax.random.split(key, 1 + 2 * num_blocks)
    params = {
        "stem_w": conv_w(keys[0], 5, 5, 3, 64),
        "stem_bn": _bn_affine(64),
        "blocks": [],
    }
    for b in range(num_blocks):
        params["blocks"].append({
            "w1": conv_w(keys[1 + 2 * b], 3, 3, 64, 64),
            "bn1": _bn_affine(64),
            "w2": conv_w(keys[2 + 2 * b], 3, 3, 64, 64),
            "bn2": _bn_affine(64),
        })
    return params


# ------------------------------ reference path -------------------------------

def _ref_forward(params, x_nchw):
    """Pure-JAX reference (lax conv / reduce_window) for correctness check."""
    x = jnp.transpose(x_nchw, (0, 2, 3, 1))

    def cbr(x, w, s, b, stride, pad):
        y = lax.conv_general_dilated(
            x, w, (stride, stride), [(pad, pad), (pad, pad)],
            dimension_numbers=("NHWC", "HWIO", "NHWC"))
        return jnp.maximum(y * s + b, 0.0)

    s, b = params["stem_bn"]
    x = cbr(x, params["stem_w"], s, b, 2, 2)
    x = lax.reduce_window(x, -jnp.inf, lax.max, (1, 3, 3, 1), (1, 2, 2, 1),
                          [(0, 0), (1, 1), (1, 1), (0, 0)])
    for blk in params["blocks"]:
        s1, b1 = blk["bn1"]
        x = cbr(x, blk["w1"], s1, b1, 1, 1)
        s2, b2 = blk["bn2"]
        x = cbr(x, blk["w2"], s2, b2, 1, 1)
    return jnp.transpose(x, (0, 3, 1, 2))


if __name__ == "__main__":
    key = jax.random.PRNGKey(0)
    kx, kp = jax.random.split(key)
    # StudentModel(num_blocks=2); input NCHW like PyTorch.
    x = jax.random.normal(kx, (2, 3, 32, 32), jnp.float32)
    params = init_params(kp, num_blocks=2)

    out = jax.jit(student_model_forward)(params, x)
    out = jax.block_until_ready(out)
    assert out.shape == (2, 64, 8, 8), out.shape

    ref = _ref_forward(params, x)
    max_err = float(jnp.max(jnp.abs(out - ref)))
    assert max_err < 1e-3, f"max abs error vs reference: {max_err}"

    print("KERNEL_OK")
</pallas_src>

<mosaic_0001>
module attributes {stable_mosaic.version = 11 : i64} {
  func.func @kernel(%arg0: i32, %arg1: memref<1x16x16x64xf32, #tpu.memory_space<vmem>>, %arg2: memref<5x3x192x64xf32, #tpu.memory_space<vmem>>, %arg3: memref<5x1x64xf32, #tpu.memory_space<vmem>>, %arg4: memref<1x8x8x64xf32, #tpu.memory_space<vmem>>) attributes {dimension_semantics = [#tpu.dimension_semantics<parallel>], iteration_bounds = array<i64: 2>, scalar_prefetch = 0 : i64, scratch_operands = 0 : i64, tpu.core_type = #tpu.core_type<tc>, window_params = [{transform_indices = @transform_0, window_bounds = array<i64: 1, 16, 16, 64>}, {pipeline_mode = #tpu.pipeline_mode<synchronous>, transform_indices = @transform_1, window_bounds = array<i64: 5, 3, 192, 64>}, {pipeline_mode = #tpu.pipeline_mode<synchronous>, transform_indices = @transform_2, window_bounds = array<i64: 5, 1, 64>}, {transform_indices = @transform_3, window_bounds = array<i64: 1, 8, 8, 64>}]} {
    %c0 = arith.constant 0 : index
    %c0_0 = arith.constant 0 : index
    %c0_1 = arith.constant 0 : index
    %c0_2 = arith.constant 0 : index
    %0 = vector.load %arg1[%c0, %c0_0, %c0_1, %c0_2] : memref<1x16x16x64xf32, #tpu.memory_space<vmem>>, vector<1x9x16x64xf32>
    %cst = arith.constant 0.000000e+00 : f32
    %1 = vector.broadcast %cst : f32 to vector<1x1x16x64xf32>
    %2 = tpu.concatenate %1, %0 in 1 : vector<1x1x16x64xf32>, vector<1x9x16x64xf32> -> vector<1x10x16x64xf32>
    %cst_3 = arith.constant 0.000000e+00 : f32
    %3 = vector.broadcast %cst_3 : f32 to vector<1x10x1x64xf32>
    %4 = vector.extract_strided_slice %2 {offsets = [0, 0, 0, 0], sizes = [1, 10, 15, 64], strides = [1, 1, 1, 1]} : vector<1x10x16x64xf32> to vector<1x10x15x64xf32>
    %5 = tpu.concatenate %3, %4 in 2 : vector<1x10x1x64xf32>, vector<1x10x15x64xf32> -> vector<1x10x16x64xf32>
    %6 = vector.extract_strided_slice %2 {offsets = [0, 0, 1, 0], sizes = [1, 10, 15, 64], strides = [1, 1, 1, 1]} : vector<1x10x16x64xf32> to vector<1x10x15x64xf32>
    %7 = tpu.concatenate %6, %3 in 2 : vector<1x10x15x64xf32>, vector<1x10x1x64xf32> -> vector<1x10x16x64xf32>
    %8 = tpu.concatenate %2, %5, %7 in 3 : vector<1x10x16x64xf32>, vector<1x10x16x64xf32>, vector<1x10x16x64xf32> -> vector<1x10x16x192xf32>
    %cst_4 = arith.constant 0.000000e+00 : f32
    %9 = vector.broadcast %cst_4 : f32 to vector<128x64xf32>
    %10 = vector.extract_strided_slice %8 {offsets = [0, 0, 0, 0], sizes = [1, 8, 16, 192], strides = [1, 1, 1, 1]} : vector<1x10x16x192xf32> to vector<1x8x16x192xf32>
    %11 = vector.shape_cast %10 : vector<1x8x16x192xf32> to vector<128x192xf32>
    %c0_5 = arith.constant 0 : index
    %c0_6 = arith.constant 0 : index
    %c0_7 = arith.constant 0 : index
    %c0_8 = arith.constant 0 : index
    %12 = vector.load %arg2[%c0_5, %c0_6, %c0_7, %c0_8] : memref<5x3x192x64xf32, #tpu.memory_space<vmem>>, vector<1x1x192x64xf32>
    %13 = vector.shape_cast %12 : vector<1x1x192x64xf32> to vector<192x64xf32>
    %cst_9 = arith.constant dense<0.000000e+00> : vector<128x64xf32>
    %14 = tpu.matmul %11, %13, %cst_9 {dimension_numbers = #tpu.dot_dimension_numbers<[1], [0], [0], [1], [0, 0, 1, 1], [], []>} : vector<128x192xf32>, vector<192x64xf32>, vector<128x64xf32> -> vector<128x64xf32>
    %15 = arith.addf %9, %14 : vector<128x64xf32>
    %16 = vector.extract_strided_slice %8 {offsets = [0, 1, 0, 0], sizes = [1, 8, 16, 192], strides = [1, 1, 1, 1]} : vector<1x10x16x192xf32> to vector<1x8x16x192xf32>
    %17 = vector.shape_cast %16 : vector<1x8x16x192xf32> to vector<128x192xf32>
    %c0_10 = arith.constant 0 : index
    %c1 = arith.constant 1 : index
    %c0_11 = arith.constant 0 : index
    %c0_12 = arith.constant 0 : index
    %18 = vector.load %arg2[%c0_10, %c1, %c0_11, %c0_12] : memref<5x3x192x64xf32, #tpu.memory_space<vmem>>, vector<1x1x192x64xf32>
    %19 = vector.shape_cast %18 : vector<1x1x192x64xf32> to vector<192x64xf32>
    %cst_13 = arith.constant dense<0.000000e+00> : vector<128x64xf32>
    %20 = tpu.matmul %17, %19, %cst_13 {dimension_numbers = #tpu.dot_dimension_numbers<[1], [0], [0], [1], [0, 0, 1, 1], [], []>} : vector<128x192xf32>, vector<192x64xf32>, vector<128x64xf32> -> vector<128x64xf32>
    %21 = arith.addf %15, %20 : vector<128x64xf32>
    %22 = vector.extract_strided_slice %8 {offsets = [0, 2, 0, 0], sizes = [1, 8, 16, 192], strides = [1, 1, 1, 1]} : vector<1x10x16x192xf32> to vector<1x8x16x192xf32>
    %23 = vector.shape_cast %22 : vector<1x8x16x192xf32> to vector<128x192xf32>
    %c0_14 = arith.constant 0 : index
    %c2 = arith.constant 2 : index
    %c0_15 = arith.constant 0 : index
    %c0_16 = arith.constant 0 : index
    %24 = vector.load %arg2[%c0_14, %c2, %c0_15, %c0_16] : memref<5x3x192x64xf32, #tpu.memory_space<vmem>>, vector<1x1x192x64xf32>
    %25 = vector.shape_cast %24 : vector<1x1x192x64xf32> to vector<192x64xf32>
    %cst_17 = arith.constant dense<0.000000e+00> : vector<128x64xf32>
    %26 = tpu.matmul %23, %25, %cst_17 {dimension_numbers = #tpu.dot_dimension_numbers<[1], [0], [0], [1], [0, 0, 1, 1], [], []>} : vector<128x192xf32>, vector<192x64xf32>, vector<128x64xf32> -> vector<128x64xf32>
    %27 = arith.addf %21, %26 : vector<128x64xf32>
    %c0_18 = arith.constant 0 : index
    %c0_19 = arith.constant 0 : index
    %c0_20 = arith.constant 0 : index
    %28 = vector.load %arg3[%c0_18, %c0_19, %c0_20] : memref<5x1x64xf32, #tpu.memory_space<vmem>>, vector<1x1x64xf32>
    %29 = vector.shape_cast %28 : vector<1x1x64xf32> to vector<1x64xf32>
    %30 = vector.broadcast %29 : vector<1x64xf32> to vector<128x64xf32>
    %31 = arith.addf %27, %30 : vector<128x64xf32>
    %cst_21 = arith.constant 0.000000e+00 : f32
    %32 = vector.broadcast %cst_21 : f32 to vector<128x64xf32>
    %33 = arith.maximumf %31, %32 : vector<128x64xf32>
    %34 = vector.shape_cast %33 : vector<128x64xf32> to vector<1x8x16x64xf32>
    %c0_22 = arith.constant 0 : index
    %c7 = arith.constant 7 : index
    %c0_23 = arith.constant 0 : index
    %c0_24 = arith.constant 0 : index
    %35 = vector.load %arg1[%c0_22, %c7, %c0_23, %c0_24] : memref<1x16x16x64xf32, #tpu.memory_space<vmem>>, vector<1x9x16x64xf32>
    %cst_25 = arith.constant 0.000000e+00 : f32
    %36 = vector.broadcast %cst_25 : f32 to vector<1x1x16x64xf32>
    %37 = tpu.concatenate %35, %36 in 1 : vector<1x9x16x64xf32>, vector<1x1x16x64xf32> -> vector<1x10x16x64xf32>
    %cst_26 = arith.constant 0.000000e+00 : f32
    %38 = vector.broadcast %cst_26 : f32 to vector<1x10x1x64xf32>
    %39 = vector.extract_strided_slice %37 {offsets = [0, 0, 0, 0], sizes = [1, 10, 15, 64], strides = [1, 1, 1, 1]} : vector<1x10x16x64xf32> to vector<1x10x15x64xf32>
    %40 = tpu.concatenate %38, %39 in 2 : vector<1x10x1x64xf32>, vector<1x10x15x64xf32> -> vector<1x10x16x64xf32>
    %41 = vector.extract_strided_slice %37 {offsets = [0, 0, 1, 0], sizes = [1, 10, 15, 64], strides = [1, 1, 1, 1]} : vector<1x10x16x64xf32> to vector<1x10x15x64xf32>
    %42 = tpu.concatenate %41, %38 in 2 : vector<1x10x15x64xf32>, vector<1x10x1x64xf32> -> vector<1x10x16x64xf32>
    %43 = tpu.concatenate %37, %40, %42 in 3 : vector<1x10x16x64xf32>, vector<1x10x16x64xf32>, vector<1x10x16x64xf32> -> vector<1x10x16x192xf32>
    %cst_27 = arith.constant 0.000000e+00 : f32
    %44 = vector.broadcast %cst_27 : f32 to vector<128x64xf32>
    %45 = vector.extract_strided_slice %43 {offsets = [0, 0, 0, 0], sizes = [1, 8, 16, 192], strides = [1, 1, 1, 1]} : vector<1x10x16x192xf32> to vector<1x8x16x192xf32>
    %46 = vector.shape_cast %45 : vector<1x8x16x192xf32> to vector<128x192xf32>
    %c0_28 = arith.constant 0 : index
    %c0_29 = arith.constant 0 : index
    %c0_30 = arith.constant 0 : index
    %c0_31 = arith.constant 0 : index
    %47 = vector.load %arg2[%c0_28, %c0_29, %c0_30, %c0_31] : memref<5x3x192x64xf32, #tpu.memory_space<vmem>>, vector<1x1x192x64xf32>
    %48 = vector.shape_cast %47 : vector<1x1x192x64xf32> to vector<192x64xf32>
    %cst_32 = arith.constant dense<0.000000e+00> : vector<128x64xf32>
    %49 = tpu.matmul %46, %48, %cst_32 {dimension_numbers = #tpu.dot_dimension_numbers<[1], [0], [0], [1], [0, 0, 1, 1], [], []>} : vector<128x192xf32>, vector<192x64xf32>, vector<128x64xf32> -> vector<128x64xf32>
    %50 = arith.addf %44, %49 : vector<128x64xf32>
    %51 = vector.extract_strided_slice %43 {offsets = [0, 1, 0, 0], sizes = [1, 8, 16, 192], strides = [1, 1, 1, 1]} : vector<1x10x16x192xf32> to vector<1x8x16x192xf32>
    %52 = vector.shape_cast %51 : vector<1x8x16x192xf32> to vector<128x192xf32>
    %c0_33 = arith.constant 0 : index
    %c1_34 = arith.constant 1 : index
    %c0_35 = arith.constant 0 : index
    %c0_36 = arith.constant 0 : index
    %53 = vector.load %arg2[%c0_33, %c1_34, %c0_35, %c0_36] : memref<5x3x192x64xf32, #tpu.memory_space<vmem>>, vector<1x1x192x64xf32>
    %54 = vector.shape_cast %53 : vector<1x1x192x64xf32> to vector<192x64xf32>
    %cst_37 = arith.constant dense<0.000000e+00> : vector<128x64xf32>
    %55 = tpu.matmul %52, %54, %cst_37 {dimension_numbers = #tpu.dot_dimension_numbers<[1], [0], [0], [1], [0, 0, 1, 1], [], []>} : vector<128x192xf32>, vector<192x64xf32>, vector<128x64xf32> -> vector<128x64xf32>
    %56 = arith.addf %50, %55 : vector<128x64xf32>
    %57 = vector.extract_strided_slice %43 {offsets = [0, 2, 0, 0], sizes = [1, 8, 16, 192], strides = [1, 1, 1, 1]} : vector<1x10x16x192xf32> to vector<1x8x16x192xf32>
    %58 = vector.shape_cast %57 : vector<1x8x16x192xf32> to vector<128x192xf32>
    %c0_38 = arith.constant 0 : index
    %c2_39 = arith.constant 2 : index
    %c0_40 = arith.constant 0 : index
    %c0_41 = arith.constant 0 : index
    %59 = vector.load %arg2[%c0_38, %c2_39, %c0_40, %c0_41] : memref<5x3x192x64xf32, #tpu.memory_space<vmem>>, vector<1x1x192x64xf32>
    %60 = vector.shape_cast %59 : vector<1x1x192x64xf32> to vector<192x64xf32>
    %cst_42 = arith.constant dense<0.000000e+00> : vector<128x64xf32>
    %61 = tpu.matmul %58, %60, %cst_42 {dimension_numbers = #tpu.dot_dimension_numbers<[1], [0], [0], [1], [0, 0, 1, 1], [], []>} : vector<128x192xf32>, vector<192x64xf32>, vector<128x64xf32> -> vector<128x64xf32>
    %62 = arith.addf %56, %61 : vector<128x64xf32>
    %c0_43 = arith.constant 0 : index
    %c0_44 = arith.constant 0 : index
    %c0_45 = arith.constant 0 : index
    %63 = vector.load %arg3[%c0_43, %c0_44, %c0_45] : memref<5x1x64xf32, #tpu.memory_space<vmem>>, vector<1x1x64xf32>
    %64 = vector.shape_cast %63 : vector<1x1x64xf32> to vector<1x64xf32>
    %65 = vector.broadcast %64 : vector<1x64xf32> to vector<128x64xf32>
    %66 = arith.addf %62, %65 : vector<128x64xf32>
    %cst_46 = arith.constant 0.000000e+00 : f32
    %67 = vector.broadcast %cst_46 : f32 to vector<128x64xf32>
    %68 = arith.maximumf %66, %67 : vector<128x64xf32>
    %69 = vector.shape_cast %68 : vector<128x64xf32> to vector<1x8x16x64xf32>
    %70 = tpu.concatenate %34, %69 in 1 : vector<1x8x16x64xf32>, vector<1x8x16x64xf32> -> vector<1x16x16x64xf32>
    %71 = vector.shape_cast %70 : vector<1x16x16x64xf32> to vector<1x8x2x16x64xf32>
    %72 = vector.extract_strided_slice %71 {offsets = [0, 0, 0, 0, 0], sizes = [1, 8, 1, 16, 64], strides = [1, 1, 1, 1, 1]} : vector<1x8x2x16x64xf32> to vector<1x8x1x16x64xf32>
    %73 = vector.shape_cast %72 : vector<1x8x1x16x64xf32> to vector<1x8x16x64xf32>
    %74 = vector.extract_strided_slice %71 {offsets = [0, 0, 1, 0, 0], sizes = [1, 8, 1, 16, 64], strides = [1, 1, 1, 1, 1]} : vector<1x8x2x16x64xf32> to vector<1x8x1x16x64xf32>
    %75 = vector.shape_cast %74 : vector<1x8x1x16x64xf32> to vector<1x8x16x64xf32>
    %76 = vector.extract_strided_slice %73 {offsets = [0, 0, 0, 0], sizes = [1, 1, 16, 64], strides = [1, 1, 1, 1]} : vector<1x8x16x64xf32> to vector<1x1x16x64xf32>
    %77 = vector.extract_strided_slice %75 {offsets = [0, 0, 0, 0], sizes = [1, 7, 16, 64], strides = [1, 1, 1, 1]} : vector<1x8x16x64xf32> to vector<1x7x16x64xf32>
    %78 = tpu.concatenate %76, %77 in 1 : vector<1x1x16x64xf32>, vector<1x7x16x64xf32> -> vector<1x8x16x64xf32>
    %79 = arith.maximumf %73, %75 : vector<1x8x16x64xf32>
    %80 = arith.maximumf %79, %78 : vector<1x8x16x64xf32>
    %81 = vector.extract_strided_slice %80 {offsets = [0, 0, 0, 0], sizes = [1, 8, 1, 64], strides = [1, 1, 1, 1]} : vector<1x8x16x64xf32> to vector<1x8x1x64xf32>
    %82 = vector.shape_cast %81 : vector<1x8x1x64xf32> to vector<1x8x64xf32>
    %83 = vector.extract_strided_slice %80 {offsets = [0, 0, 0, 0], sizes = [1, 8, 1, 64], strides = [1, 1, 1, 1]} : vector<1x8x16x64xf32> to vector<1x8x1x64xf32>
    %84 = vector.shape_cast %83 : vector<1x8x1x64xf32> to vector<1x8x64xf32>
    %85 = arith.maximumf %82, %84 : vector<1x8x64xf32>
    %86 = vector.extract_strided_slice %80 {offsets = [0, 0, 1, 0], sizes = [1, 8, 1, 64], strides = [1, 1, 1, 1]} : vector<1x8x16x64xf32> to vector<1x8x1x64xf32>
    %87 = vector.shape_cast %86 : vector<1x8x1x64xf32> to vector<1x8x64xf32>
    %88 = arith.maximumf %85, %87 : vector<1x8x64xf32>
    %89 = vector.extract_strided_slice %80 {offsets = [0, 0, 1, 0], sizes = [1, 8, 1, 64], strides = [1, 1, 1, 1]} : vector<1x8x16x64xf32> to vector<1x8x1x64xf32>
    %90 = vector.shape_cast %89 : vector<1x8x1x64xf32> to vector<1x8x64xf32>
    %91 = vector.extract_strided_slice %80 {offsets = [0, 0, 2, 0], sizes = [1, 8, 1, 64], strides = [1, 1, 1, 1]} : vector<1x8x16x64xf32> to vector<1x8x1x64xf32>
    %92 = vector.shape_cast %91 : vector<1x8x1x64xf32> to vector<1x8x64xf32>
    %93 = arith.maximumf %90, %92 : vector<1x8x64xf32>
    %94 = vector.extract_strided_slice %80 {offsets = [0, 0, 3, 0], sizes = [1, 8, 1, 64], strides = [1, 1, 1, 1]} : vector<1x8x16x64xf32> to vector<1x8x1x64xf32>
    %95 = vector.shape_cast %94 : vector<1x8x1x64xf32> to vector<1x8x64xf32>
    %96 = arith.maximumf %93, %95 : vector<1x8x64xf32>
    %97 = vector.extract_strided_slice %80 {offsets = [0, 0, 3, 0], sizes = [1, 8, 1, 64], strides = [1, 1, 1, 1]} : vector<1x8x16x64xf32> to vector<1x8x1x64xf32>
    %98 = vector.shape_cast %97 : vector<1x8x1x64xf32> to vector<1x8x64xf32>
    %99 = vector.extract_strided_slice %80 {offsets = [0, 0, 4, 0], sizes = [1, 8, 1, 64], strides = [1, 1, 1, 1]} : vector<1x8x16x64xf32> to vector<1x8x1x64xf32>
    %100 = vector.shape_cast %99 : vector<1x8x1x64xf32> to vector<1x8x64xf32>
    %101 = arith.maximumf %98, %100 : vector<1x8x64xf32>
    %102 = vector.extract_strided_slice %80 {offsets = [0, 0, 5, 0], sizes = [1, 8, 1, 64], strides = [1, 1, 1, 1]} : vector<1x8x16x64xf32> to vector<1x8x1x64xf32>
    %103 = vector.shape_cast %102 : vector<1x8x1x64xf32> to vector<1x8x64xf32>
    %104 = arith.maximumf %101, %103 : vector<1x8x64xf32>
    %105 = vector.extract_strided_slice %80 {offsets = [0, 0, 5, 0], sizes = [1, 8, 1, 64], strides = [1, 1, 1, 1]} : vector<1x8x16x64xf32> to vector<1x8x1x64xf32>
    %106 = vector.shape_cast %105 : vector<1x8x1x64xf32> to vector<1x8x64xf32>
    %107 = vector.extract_strided_slice %80 {offsets = [0, 0, 6, 0], sizes = [1, 8, 1, 64], strides = [1, 1, 1, 1]} : vector<1x8x16x64xf32> to vector<1x8x1x64xf32>
    %108 = vector.shape_cast %107 : vector<1x8x1x64xf32> to vector<1x8x64xf32>
    %109 = arith.maximumf %106, %108 : vector<1x8x64xf32>
    %110 = vector.extract_strided_slice %80 {offsets = [0, 0, 7, 0], sizes = [1, 8, 1, 64], strides = [1, 1, 1, 1]} : vector<1x8x16x64xf32> to vector<1x8x1x64xf32>
    %111 = vector.shape_cast %110 : vector<1x8x1x64xf32> to vector<1x8x64xf32>
    %112 = arith.maximumf %109, %111 : vector<1x8x64xf32>
    %113 = vector.extract_strided_slice %80 {offsets = [0, 0, 7, 0], sizes = [1, 8, 1, 64], strides = [1, 1, 1, 1]} : vector<1x8x16x64xf32> to vector<1x8x1x64xf32>
    %114 = vector.shape_cast %113 : vector<1x8x1x64xf32> to vector<1x8x64xf32>
    %115 = vector.extract_strided_slice %80 {offsets = [0, 0, 8, 0], sizes = [1, 8, 1, 64], strides = [1, 1, 1, 1]} : vector<1x8x16x64xf32> to vector<1x8x1x64xf32>
    %116 = vector.shape_cast %115 : vector<1x8x1x64xf32> to vector<1x8x64xf32>
    %117 = arith.maximumf %114, %116 : vector<1x8x64xf32>
    %118 = vector.extract_strided_slice %80 {offsets = [0, 0, 9, 0], sizes = [1, 8, 1, 64], strides = [1, 1, 1, 1]} : vector<1x8x16x64xf32> to vector<1x8x1x64xf32>
    %119 = vector.shape_cast %118 : vector<1x8x1x64xf32> to vector<1x8x64xf32>
    %120 = arith.maximumf %117, %119 : vector<1x8x64xf32>
    %121 = vector.extract_strided_slice %80 {offsets = [0, 0, 9, 0], sizes = [1, 8, 1, 64], strides = [1, 1, 1, 1]} : vector<1x8x16x64xf32> to vector<1x8x1x64xf32>
    %122 = vector.shape_cast %121 : vector<1x8x1x64xf32> to vector<1x8x64xf32>
    %123 = vector.extract_strided_slice %80 {offsets = [0, 0, 10, 0], sizes = [1, 8, 1, 64], strides = [1, 1, 1, 1]} : vector<1x8x16x64xf32> to vector<1x8x1x64xf32>
    %124 = vector.shape_cast %123 : vector<1x8x1x64xf32> to vector<1x8x64xf32>
    %125 = arith.maximumf %122, %124 : vector<1x8x64xf32>
    %126 = vector.extract_strided_slice %80 {offsets = [0, 0, 11, 0], sizes = [1, 8, 1, 64], strides = [1, 1, 1, 1]} : vector<1x8x16x64xf32> to vector<1x8x1x64xf32>
    %127 = vector.shape_cast %126 : vector<1x8x1x64xf32> to vector<1x8x64xf32>
    %128 = arith.maximumf %125, %127 : vector<1x8x64xf32>
    %129 = vector.extract_strided_slice %80 {offsets = [0, 0, 11, 0], sizes = [1, 8, 1, 64], strides = [1, 1, 1, 1]} : vector<1x8x16x64xf32> to vector<1x8x1x64xf32>
    %130 = vector.shape_cast %129 : vector<1x8x1x64xf32> to vector<1x8x64xf32>
    %131 = vector.extract_strided_slice %80 {offsets = [0, 0, 12, 0], sizes = [1, 8, 1, 64], strides = [1, 1, 1, 1]} : vector<1x8x16x64xf32> to vector<1x8x1x64xf32>
    %132 = vector.shape_cast %131 : vector<1x8x1x64xf32> to vector<1x8x64xf32>
    %133 = arith.maximumf %130, %132 : vector<1x8x64xf32>
    %134 = vector.extract_strided_slice %80 {offsets = [0, 0, 13, 0], sizes = [1, 8, 1, 64], strides = [1, 1, 1, 1]} : vector<1x8x16x64xf32> to vector<1x8x1x64xf32>
    %135 = vector.shape_cast %134 : vector<1x8x1x64xf32> to vector<1x8x64xf32>
    %136 = arith.maximumf %133, %135 : vector<1x8x64xf32>
    %137 = vector.extract_strided_slice %80 {offsets = [0, 0, 13, 0], sizes = [1, 8, 1, 64], strides = [1, 1, 1, 1]} : vector<1x8x16x64xf32> to vector<1x8x1x64xf32>
    %138 = vector.shape_cast %137 : vector<1x8x1x64xf32> to vector<1x8x64xf32>
    %139 = vector.extract_strided_slice %80 {offsets = [0, 0, 14, 0], sizes = [1, 8, 1, 64], strides = [1, 1, 1, 1]} : vector<1x8x16x64xf32> to vector<1x8x1x64xf32>
    %140 = vector.shape_cast %139 : vector<1x8x1x64xf32> to vector<1x8x64xf32>
    %141 = arith.maximumf %138, %140 : vector<1x8x64xf32>
    %142 = vector.extract_strided_slice %80 {offsets = [0, 0, 15, 0], sizes = [1, 8, 1, 64], strides = [1, 1, 1, 1]} : vector<1x8x16x64xf32> to vector<1x8x1x64xf32>
    %143 = vector.shape_cast %142 : vector<1x8x1x64xf32> to vector<1x8x64xf32>
    %144 = arith.maximumf %141, %143 : vector<1x8x64xf32>
    %145 = vector.shape_cast %88 : vector<1x8x64xf32> to vector<1x8x1x64xf32>
    %146 = vector.shape_cast %96 : vector<1x8x64xf32> to vector<1x8x1x64xf32>
    %147 = vector.shape_cast %104 : vector<1x8x64xf32> to vector<1x8x1x64xf32>
    %148 = vector.shape_cast %112 : vector<1x8x64xf32> to vector<1x8x1x64xf32>
    %149 = vector.shape_cast %120 : vector<1x8x64xf32> to vector<1x8x1x64xf32>
    %150 = vector.shape_cast %128 : vector<1x8x64xf32> to vector<1x8x1x64xf32>
    %151 = vector.shape_cast %136 : vector<1x8x64xf32> to vector<1x8x1x64xf32>
    %152 = vector.shape_cast %144 : vector<1x8x64xf32> to vector<1x8x1x64xf32>
    %153 = tpu.concatenate %145, %146, %147, %148, %149, %150, %151, %152 in 2 : vector<1x8x1x64xf32>, vector<1x8x1x64xf32>, vector<1x8x1x64xf32>, vector<1x8x1x64xf32>, vector<1x8x1x64xf32>, vector<1x8x1x64xf32>, vector<1x8x1x64xf32>, vector<1x8x1x64xf32> -> vector<1x8x8x64xf32>
    %cst_47 = arith.constant 0.000000e+00 : f32
    %154 = vector.broadcast %cst_47 : f32 to vector<1x1x8x64xf32>
    %155 = tpu.concatenate %154, %153 in 1 : vector<1x1x8x64xf32>, vector<1x8x8x64xf32> -> vector<1x9x8x64xf32>
    %156 = tpu.concatenate %155, %154 in 1 : vector<1x9x8x64xf32>, vector<1x1x8x64xf32> -> vector<1x10x8x64xf32>
    %cst_48 = arith.constant 0.000000e+00 : f32
    %157 = vector.broadcast %cst_48 : f32 to vector<1x10x1x64xf32>
    %158 = vector.extract_strided_slice %156 {offsets = [0, 0, 0, 0], sizes = [1, 10, 7, 64], strides = [1, 1, 1, 1]} : vector<1x10x8x64xf32> to vector<1x10x7x64xf32>
    %159 = tpu.concatenate %157, %158 in 2 : vector<1x10x1x64xf32>, vector<1x10x7x64xf32> -> vector<1x10x8x64xf32>
    %160 = vector.extract_strided_slice %156 {offsets = [0, 0, 1, 0], sizes = [1, 10, 7, 64], strides = [1, 1, 1, 1]} : vector<1x10x8x64xf32> to vector<1x10x7x64xf32>
    %161 = tpu.concatenate %160, %157 in 2 : vector<1x10x7x64xf32>, vector<1x10x1x64xf32> -> vector<1x10x8x64xf32>
    %162 = tpu.concatenate %156, %159, %161 in 3 : vector<1x10x8x64xf32>, vector<1x10x8x64xf32>, vector<1x10x8x64xf32> -> vector<1x10x8x192xf32>
    %cst_49 = arith.constant 0.000000e+00 : f32
    %163 = vector.broadcast %cst_49 : f32 to vector<64x64xf32>
    %164 = vector.extract_strided_slice %162 {offsets = [0, 0, 0, 0], sizes = [1, 8, 8, 192], strides = [1, 1, 1, 1]} : vector<1x10x8x192xf32> to vector<1x8x8x192xf32>
    %165 = vector.shape_cast %164 : vector<1x8x8x192xf32> to vector<64x192xf32>
    %c1_50 = arith.constant 1 : index
    %c0_51 = arith.constant 0 : index
    %c0_52 = arith.constant 0 : index
    %c0_53 = arith.constant 0 : index
    %166 = vector.load %arg2[%c1_50, %c0_51, %c0_52, %c0_53] : memref<5x3x192x64xf32, #tpu.memory_space<vmem>>, vector<1x1x192x64xf32>
    %167 = vector.shape_cast %166 : vector<1x1x192x64xf32> to vector<192x64xf32>
    %cst_54 = arith.constant dense<0.000000e+00> : vector<64x64xf32>
    %168 = tpu.matmul %165, %167, %cst_54 {dimension_numbers = #tpu.dot_dimension_numbers<[1], [0], [0], [1], [0, 0, 1, 1], [], []>} : vector<64x192xf32>, vector<192x64xf32>, vector<64x64xf32> -> vector<64x64xf32>
    %169 = arith.addf %163, %168 : vector<64x64xf32>
    %170 = vector.extract_strided_slice %162 {offsets = [0, 1, 0, 0], sizes = [1, 8, 8, 192], strides = [1, 1, 1, 1]} : vector<1x10x8x192xf32> to vector<1x8x8x192xf32>
    %171 = vector.shape_cast %170 : vector<1x8x8x192xf32> to vector<64x192xf32>
    %c1_55 = arith.constant 1 : index
    %c1_56 = arith.constant 1 : index
    %c0_57 = arith.constant 0 : index
    %c0_58 = arith.constant 0 : index
    %172 = vector.load %arg2[%c1_55, %c1_56, %c0_57, %c0_58] : memref<5x3x192x64xf32, #tpu.memory_space<vmem>>, vector<1x1x192x64xf32>
    %173 = vector.shape_cast %172 : vector<1x1x192x64xf32> to vector<192x64xf32>
    %cst_59 = arith.constant dense<0.000000e+00> : vector<64x64xf32>
    %174 = tpu.matmul %171, %173, %cst_59 {dimension_numbers = #tpu.dot_dimension_numbers<[1], [0], [0], [1], [0, 0, 1, 1], [], []>} : vector<64x192xf32>, vector<192x64xf32>, vector<64x64xf32> -> vector<64x64xf32>
    %175 = arith.addf %169, %174 : vector<64x64xf32>
    %176 = vector.extract_strided_slice %162 {offsets = [0, 2, 0, 0], sizes = [1, 8, 8, 192], strides = [1, 1, 1, 1]} : vector<1x10x8x192xf32> to vector<1x8x8x192xf32>
    %177 = vector.shape_cast %176 : vector<1x8x8x192xf32> to vector<64x192xf32>
    %c1_60 = arith.constant 1 : index
    %c2_61 = arith.constant 2 : index
    %c0_62 = arith.constant 0 : index
    %c0_63 = arith.constant 0 : index
    %178 = vector.load %arg2[%c1_60, %c2_61, %c0_62, %c0_63] : memref<5x3x192x64xf32, #tpu.memory_space<vmem>>, vector<1x1x192x64xf32>
    %179 = vector.shape_cast %178 : vector<1x1x192x64xf32> to vector<192x64xf32>
    %cst_64 = arith.constant dense<0.000000e+00> : vector<64x64xf32>
    %180 = tpu.matmul %177, %179, %cst_64 {dimension_numbers = #tpu.dot_dimension_numbers<[1], [0], [0], [1], [0, 0, 1, 1], [], []>} : vector<64x192xf32>, vector<192x64xf32>, vector<64x64xf32> -> vector<64x64xf32>
    %181 = arith.addf %175, %180 : vector<64x64xf32>
    %c1_65 = arith.constant 1 : index
    %c0_66 = arith.constant 0 : index
    %c0_67 = arith.constant 0 : index
    %182 = vector.load %arg3[%c1_65, %c0_66, %c0_67] : memref<5x1x64xf32, #tpu.memory_space<vmem>>, vector<1x1x64xf32>
    %183 = vector.shape_cast %182 : vector<1x1x64xf32> to vector<1x64xf32>
    %184 = vector.broadcast %183 : vector<1x64xf32> to vector<64x64xf32>
    %185 = arith.addf %181, %184 : vector<64x64xf32>
    %cst_68 = arith.constant 0.000000e+00 : f32
    %186 = vector.broadcast %cst_68 : f32 to vector<64x64xf32>
    %187 = arith.maximumf %185, %186 : vector<64x64xf32>
    %188 = vector.shape_cast %187 : vector<64x64xf32> to vector<1x8x8x64xf32>
    %cst_69 = arith.constant 0.000000e+00 : f32
    %189 = vector.broadcast %cst_69 : f32 to vector<1x1x8x64xf32>
    %190 = tpu.concatenate %189, %188 in 1 : vector<1x1x8x64xf32>, vector<1x8x8x64xf32> -> vector<1x9x8x64xf32>
    %191 = tpu.concatenate %190, %189 in 1 : vector<1x9x8x64xf32>, vector<1x1x8x64xf32> -> vector<1x10x8x64xf32>
    %cst_70 = arith.constant 0.000000e+00 : f32
    %192 = vector.broadcast %cst_70 : f32 to vector<1x10x1x64xf32>
    %193 = vector.extract_strided_slice %191 {offsets = [0, 0, 0, 0], sizes = [1, 10, 7, 64], strides = [1, 1, 1, 1]} : vector<1x10x8x64xf32> to vector<1x10x7x64xf32>
    %194 = tpu.concatenate %192, %193 in 2 : vector<1x10x1x64xf32>, vector<1x10x7x64xf32> -> vector<1x10x8x64xf32>
    %195 = vector.extract_strided_slice %191 {offsets = [0, 0, 1, 0], sizes = [1, 10, 7, 64], strides = [1, 1, 1, 1]} : vector<1x10x8x64xf32> to vector<1x10x7x64xf32>
    %196 = tpu.concatenate %195, %192 in 2 : vector<1x10x7x64xf32>, vector<1x10x1x64xf32> -> vector<1x10x8x64xf32>
    %197 = tpu.concatenate %191, %194, %196 in 3 : vector<1x10x8x64xf32>, vector<1x10x8x64xf32>, vector<1x10x8x64xf32> -> vector<1x10x8x192xf32>
    %cst_71 = arith.constant 0.000000e+00 : f32
    %198 = vector.broadcast %cst_71 : f32 to vector<64x64xf32>
    %199 = vector.extract_strided_slice %197 {offsets = [0, 0, 0, 0], sizes = [1, 8, 8, 192], strides = [1, 1, 1, 1]} : vector<1x10x8x192xf32> to vector<1x8x8x192xf32>
    %200 = vector.shape_cast %199 : vector<1x8x8x192xf32> to vector<64x192xf32>
    %c2_72 = arith.constant 2 : index
    %c0_73 = arith.constant 0 : index
    %c0_74 = arith.constant 0 : index
    %c0_75 = arith.constant 0 : index
    %201 = vector.load %arg2[%c2_72, %c0_73, %c0_74, %c0_75] : memref<5x3x192x64xf32, #tpu.memory_space<vmem>>, vector<1x1x192x64xf32>
    %202 = vector.shape_cast %201 : vector<1x1x192x64xf32> to vector<192x64xf32>
    %cst_76 = arith.constant dense<0.000000e+00> : vector<64x64xf32>
    %203 = tpu.matmul %200, %202, %cst_76 {dimension_numbers = #tpu.dot_dimension_numbers<[1], [0], [0], [1], [0, 0, 1, 1], [], []>} : vector<64x192xf32>, vector<192x64xf32>, vector<64x64xf32> -> vector<64x64xf32>
    %204 = arith.addf %198, %203 : vector<64x64xf32>
    %205 = vector.extract_strided_slice %197 {offsets = [0, 1, 0, 0], sizes = [1, 8, 8, 192], strides = [1, 1, 1, 1]} : vector<1x10x8x192xf32> to vector<1x8x8x192xf32>
    %206 = vector.shape_cast %205 : vector<1x8x8x192xf32> to vector<64x192xf32>
    %c2_77 = arith.constant 2 : index
    %c1_78 = arith.constant 1 : index
    %c0_79 = arith.constant 0 : index
    %c0_80 = arith.constant 0 : index
    %207 = vector.load %arg2[%c2_77, %c1_78, %c0_79, %c0_80] : memref<5x3x192x64xf32, #tpu.memory_space<vmem>>, vector<1x1x192x64xf32>
    %208 = vector.shape_cast %207 : vector<1x1x192x64xf32> to vector<192x64xf32>
    %cst_81 = arith.constant dense<0.000000e+00> : vector<64x64xf32>
    %209 = tpu.matmul %206, %208, %cst_81 {dimension_numbers = #tpu.dot_dimension_numbers<[1], [0], [0], [1], [0, 0, 1, 1], [], []>} : vector<64x192xf32>, vector<192x64xf32>, vector<64x64xf32> -> vector<64x64xf32>
    %210 = arith.addf %204, %209 : vector<64x64xf32>
    %211 = vector.extract_strided_slice %197 {offsets = [0, 2, 0, 0], sizes = [1, 8, 8, 192], strides = [1, 1, 1, 1]} : vector<1x10x8x192xf32> to vector<1x8x8x192xf32>
    %212 = vector.shape_cast %211 : vector<1x8x8x192xf32> to vector<64x192xf32>
    %c2_82 = arith.constant 2 : index
    %c2_83 = arith.constant 2 : index
    %c0_84 = arith.constant 0 : index
    %c0_85 = arith.constant 0 : index
    %213 = vector.load %arg2[%c2_82, %c2_83, %c0_84, %c0_85] : memref<5x3x192x64xf32, #tpu.memory_space<vmem>>, vector<1x1x192x64xf32>
    %214 = vector.shape_cast %213 : vector<1x1x192x64xf32> to vector<192x64xf32>
    %cst_86 = arith.constant dense<0.000000e+00> : vector<64x64xf32>
    %215 = tpu.matmul %212, %214, %cst_86 {dimension_numbers = #tpu.dot_dimension_numbers<[1], [0], [0], [1], [0, 0, 1, 1], [], []>} : vector<64x192xf32>, vector<192x64xf32>, vector<64x64xf32> -> vector<64x64xf32>
    %216 = arith.addf %210, %215 : vector<64x64xf32>
    %c2_87 = arith.constant 2 : index
    %c0_88 = arith.constant 0 : index
    %c0_89 = arith.constant 0 : index
    %217 = vector.load %arg3[%c2_87, %c0_88, %c0_89] : memref<5x1x64xf32, #tpu.memory_space<vmem>>, vector<1x1x64xf32>
    %218 = vector.shape_cast %217 : vector<1x1x64xf32> to vector<1x64xf32>
    %219 = vector.broadcast %218 : vector<1x64xf32> to vector<64x64xf32>
    %220 = arith.addf %216, %219 : vector<64x64xf32>
    %cst_90 = arith.constant 0.000000e+00 : f32
    %221 = vector.broadcast %cst_90 : f32 to vector<64x64xf32>
    %222 = arith.maximumf %220, %221 : vector<64x64xf32>
    %223 = vector.shape_cast %222 : vector<64x64xf32> to vector<1x8x8x64xf32>
    %cst_91 = arith.constant 0.000000e+00 : f32
    %224 = vector.broadcast %cst_91 : f32 to vector<1x1x8x64xf32>
    %225 = tpu.concatenate %224, %223 in 1 : vector<1x1x8x64xf32>, vector<1x8x8x64xf32> -> vector<1x9x8x64xf32>
    %226 = tpu.concatenate %225, %224 in 1 : vector<1x9x8x64xf32>, vector<1x1x8x64xf32> -> vector<1x10x8x64xf32>
    %cst_92 = arith.constant 0.000000e+00 : f32
    %227 = vector.broadcast %cst_92 : f32 to vector<1x10x1x64xf32>
    %228 = vector.extract_strided_slice %226 {offsets = [0, 0, 0, 0], sizes = [1, 10, 7, 64], strides = [1, 1, 1, 1]} : vector<1x10x8x64xf32> to vector<1x10x7x64xf32>
    %229 = tpu.concatenate %227, %228 in 2 : vector<1x10x1x64xf32>, vector<1x10x7x64xf32> -> vector<1x10x8x64xf32>
    %230 = vector.extract_strided_slice %226 {offsets = [0, 0, 1, 0], sizes = [1, 10, 7, 64], strides = [1, 1, 1, 1]} : vector<1x10x8x64xf32> to vector<1x10x7x64xf32>
    %231 = tpu.concatenate %230, %227 in 2 : vector<1x10x7x64xf32>, vector<1x10x1x64xf32> -> vector<1x10x8x64xf32>
    %232 = tpu.concatenate %226, %229, %231 in 3 : vector<1x10x8x64xf32>, vector<1x10x8x64xf32>, vector<1x10x8x64xf32> -> vector<1x10x8x192xf32>
    %cst_93 = arith.constant 0.000000e+00 : f32
    %233 = vector.broadcast %cst_93 : f32 to vector<64x64xf32>
    %234 = vector.extract_strided_slice %232 {offsets = [0, 0, 0, 0], sizes = [1, 8, 8, 192], strides = [1, 1, 1, 1]} : vector<1x10x8x192xf32> to vector<1x8x8x192xf32>
    %235 = vector.shape_cast %234 : vector<1x8x8x192xf32> to vector<64x192xf32>
    %c3 = arith.constant 3 : index
    %c0_94 = arith.constant 0 : index
    %c0_95 = arith.constant 0 : index
    %c0_96 = arith.constant 0 : index
    %236 = vector.load %arg2[%c3, %c0_94, %c0_95, %c0_96] : memref<5x3x192x64xf32, #tpu.memory_space<vmem>>, vector<1x1x192x64xf32>
    %237 = vector.shape_cast %236 : vector<1x1x192x64xf32> to vector<192x64xf32>
    %cst_97 = arith.constant dense<0.000000e+00> : vector<64x64xf32>
    %238 = tpu.matmul %235, %237, %cst_97 {dimension_numbers = #tpu.dot_dimension_numbers<[1], [0], [0], [1], [0, 0, 1, 1], [], []>} : vector<64x192xf32>, vector<192x64xf32>, vector<64x64xf32> -> vector<64x64xf32>
    %239 = arith.addf %233, %238 : vector<64x64xf32>
    %240 = vector.extract_strided_slice %232 {offsets = [0, 1, 0, 0], sizes = [1, 8, 8, 192], strides = [1, 1, 1, 1]} : vector<1x10x8x192xf32> to vector<1x8x8x192xf32>
    %241 = vector.shape_cast %240 : vector<1x8x8x192xf32> to vector<64x192xf32>
    %c3_98 = arith.constant 3 : index
    %c1_99 = arith.constant 1 : index
    %c0_100 = arith.constant 0 : index
    %c0_101 = arith.constant 0 : index
    %242 = vector.load %arg2[%c3_98, %c1_99, %c0_100, %c0_101] : memref<5x3x192x64xf32, #tpu.memory_space<vmem>>, vector<1x1x192x64xf32>
    %243 = vector.shape_cast %242 : vector<1x1x192x64xf32> to vector<192x64xf32>
    %cst_102 = arith.constant dense<0.000000e+00> : vector<64x64xf32>
    %244 = tpu.matmul %241, %243, %cst_102 {dimension_numbers = #tpu.dot_dimension_numbers<[1], [0], [0], [1], [0, 0, 1, 1], [], []>} : vector<64x192xf32>, vector<192x64xf32>, vector<64x64xf32> -> vector<64x64xf32>
    %245 = arith.addf %239, %244 : vector<64x64xf32>
    %246 = vector.extract_strided_slice %232 {offsets = [0, 2, 0, 0], sizes = [1, 8, 8, 192], strides = [1, 1, 1, 1]} : vector<1x10x8x192xf32> to vector<1x8x8x192xf32>
    %247 = vector.shape_cast %246 : vector<1x8x8x192xf32> to vector<64x192xf32>
    %c3_103 = arith.constant 3 : index
    %c2_104 = arith.constant 2 : index
    %c0_105 = arith.constant 0 : index
    %c0_106 = arith.constant 0 : index
    %248 = vector.load %arg2[%c3_103, %c2_104, %c0_105, %c0_106] : memref<5x3x192x64xf32, #tpu.memory_space<vmem>>, vector<1x1x192x64xf32>
    %249 = vector.shape_cast %248 : vector<1x1x192x64xf32> to vector<192x64xf32>
    %cst_107 = arith.constant dense<0.000000e+00> : vector<64x64xf32>
    %250 = tpu.matmul %247, %249, %cst_107 {dimension_numbers = #tpu.dot_dimension_numbers<[1], [0], [0], [1], [0, 0, 1, 1], [], []>} : vector<64x192xf32>, vector<192x64xf32>, vector<64x64xf32> -> vector<64x64xf32>
    %251 = arith.addf %245, %250 : vector<64x64xf32>
    %c3_108 = arith.constant 3 : index
    %c0_109 = arith.constant 0 : index
    %c0_110 = arith.constant 0 : index
    %252 = vector.load %arg3[%c3_108, %c0_109, %c0_110] : memref<5x1x64xf32, #tpu.memory_space<vmem>>, vector<1x1x64xf32>
    %253 = vector.shape_cast %252 : vector<1x1x64xf32> to vector<1x64xf32>
    %254 = vector.broadcast %253 : vector<1x64xf32> to vector<64x64xf32>
    %255 = arith.addf %251, %254 : vector<64x64xf32>
    %cst_111 = arith.constant 0.000000e+00 : f32
    %256 = vector.broadcast %cst_111 : f32 to vector<64x64xf32>
    %257 = arith.maximumf %255, %256 : vector<64x64xf32>
    %258 = vector.shape_cast %257 : vector<64x64xf32> to vector<1x8x8x64xf32>
    %cst_112 = arith.constant 0.000000e+00 : f32
    %259 = vector.broadcast %cst_112 : f32 to vector<1x1x8x64xf32>
    %260 = tpu.concatenate %259, %258 in 1 : vector<1x1x8x64xf32>, vector<1x8x8x64xf32> -> vector<1x9x8x64xf32>
    %261 = tpu.concatenate %260, %259 in 1 : vector<1x9x8x64xf32>, vector<1x1x8x64xf32> -> vector<1x10x8x64xf32>
    %cst_113 = arith.constant 0.000000e+00 : f32
    %262 = vector.broadcast %cst_113 : f32 to vector<1x10x1x64xf32>
    %263 = vector.extract_strided_slice %261 {offsets = [0, 0, 0, 0], sizes = [1, 10, 7, 64], strides = [1, 1, 1, 1]} : vector<1x10x8x64xf32> to vector<1x10x7x64xf32>
    %264 = tpu.concatenate %262, %263 in 2 : vector<1x10x1x64xf32>, vector<1x10x7x64xf32> -> vector<1x10x8x64xf32>
    %265 = vector.extract_strided_slice %261 {offsets = [0, 0, 1, 0], sizes = [1, 10, 7, 64], strides = [1, 1, 1, 1]} : vector<1x10x8x64xf32> to vector<1x10x7x64xf32>
    %266 = tpu.concatenate %265, %262 in 2 : vector<1x10x7x64xf32>, vector<1x10x1x64xf32> -> vector<1x10x8x64xf32>
    %267 = tpu.concatenate %261, %264, %266 in 3 : vector<1x10x8x64xf32>, vector<1x10x8x64xf32>, vector<1x10x8x64xf32> -> vector<1x10x8x192xf32>
    %cst_114 = arith.constant 0.000000e+00 : f32
    %268 = vector.broadcast %cst_114 : f32 to vector<64x64xf32>
    %269 = vector.extract_strided_slice %267 {offsets = [0, 0, 0, 0], sizes = [1, 8, 8, 192], strides = [1, 1, 1, 1]} : vector<1x10x8x192xf32> to vector<1x8x8x192xf32>
    %270 = vector.shape_cast %269 : vector<1x8x8x192xf32> to vector<64x192xf32>
    %c4 = arith.constant 4 : index
    %c0_115 = arith.constant 0 : index
    %c0_116 = arith.constant 0 : index
    %c0_117 = arith.constant 0 : index
    %271 = vector.load %arg2[%c4, %c0_115, %c0_116, %c0_117] : memref<5x3x192x64xf32, #tpu.memory_space<vmem>>, vector<1x1x192x64xf32>
    %272 = vector.shape_cast %271 : vector<1x1x192x64xf32> to vector<192x64xf32>
    %cst_118 = arith.constant dense<0.000000e+00> : vector<64x64xf32>
    %273 = tpu.matmul %270, %272, %cst_118 {dimension_numbers = #tpu.dot_dimension_numbers<[1], [0], [0], [1], [0, 0, 1, 1], [], []>} : vector<64x192xf32>, vector<192x64xf32>, vector<64x64xf32> -> vector<64x64xf32>
    %274 = arith.addf %268, %273 : vector<64x64xf32>
    %275 = vector.extract_strided_slice %267 {offsets = [0, 1, 0, 0], sizes = [1, 8, 8, 192], strides = [1, 1, 1, 1]} : vector<1x10x8x192xf32> to vector<1x8x8x192xf32>
    %276 = vector.shape_cast %275 : vector<1x8x8x192xf32> to vector<64x192xf32>
    %c4_119 = arith.constant 4 : index
    %c1_120 = arith.constant 1 : index
    %c0_121 = arith.constant 0 : index
    %c0_122 = arith.constant 0 : index
    %277 = vector.load %arg2[%c4_119, %c1_120, %c0_121, %c0_122] : memref<5x3x192x64xf32, #tpu.memory_space<vmem>>, vector<1x1x192x64xf32>
    %278 = vector.shape_cast %277 : vector<1x1x192x64xf32> to vector<192x64xf32>
    %cst_123 = arith.constant dense<0.000000e+00> : vector<64x64xf32>
    %279 = tpu.matmul %276, %278, %cst_123 {dimension_numbers = #tpu.dot_dimension_numbers<[1], [0], [0], [1], [0, 0, 1, 1], [], []>} : vector<64x192xf32>, vector<192x64xf32>, vector<64x64xf32> -> vector<64x64xf32>
    %280 = arith.addf %274, %279 : vector<64x64xf32>
    %281 = vector.extract_strided_slice %267 {offsets = [0, 2, 0, 0], sizes = [1, 8, 8, 192], strides = [1, 1, 1, 1]} : vector<1x10x8x192xf32> to vector<1x8x8x192xf32>
    %282 = vector.shape_cast %281 : vector<1x8x8x192xf32> to vector<64x192xf32>
    %c4_124 = arith.constant 4 : index
    %c2_125 = arith.constant 2 : index
    %c0_126 = arith.constant 0 : index
    %c0_127 = arith.constant 0 : index
    %283 = vector.load %arg2[%c4_124, %c2_125, %c0_126, %c0_127] : memref<5x3x192x64xf32, #tpu.memory_space<vmem>>, vector<1x1x192x64xf32>
    %284 = vector.shape_cast %283 : vector<1x1x192x64xf32> to vector<192x64xf32>
    %cst_128 = arith.constant dense<0.000000e+00> : vector<64x64xf32>
    %285 = tpu.matmul %282, %284, %cst_128 {dimension_numbers = #tpu.dot_dimension_numbers<[1], [0], [0], [1], [0, 0, 1, 1], [], []>} : vector<64x192xf32>, vector<192x64xf32>, vector<64x64xf32> -> vector<64x64xf32>
    %286 = arith.addf %280, %285 : vector<64x64xf32>
    %c4_129 = arith.constant 4 : index
    %c0_130 = arith.constant 0 : index
    %c0_131 = arith.constant 0 : index
    %287 = vector.load %arg3[%c4_129, %c0_130, %c0_131] : memref<5x1x64xf32, #tpu.memory_space<vmem>>, vector<1x1x64xf32>
    %288 = vector.shape_cast %287 : vector<1x1x64xf32> to vector<1x64xf32>
    %289 = vector.broadcast %288 : vector<1x64xf32> to vector<64x64xf32>
    %290 = arith.addf %286, %289 : vector<64x64xf32>
    %cst_132 = arith.constant 0.000000e+00 : f32
    %291 = vector.broadcast %cst_132 : f32 to vector<64x64xf32>
    %292 = arith.maximumf %290, %291 : vector<64x64xf32>
    %293 = vector.shape_cast %292 : vector<64x64xf32> to vector<1x8x8x64xf32>
    %c0_133 = arith.constant 0 : index
    %c0_134 = arith.constant 0 : index
    %c0_135 = arith.constant 0 : index
    %c0_136 = arith.constant 0 : index
    %294 = vector.load %arg4[%c0_133, %c0_134, %c0_135, %c0_136] : memref<1x8x8x64xf32, #tpu.memory_space<vmem>>, vector<1x8x8x64xf32>
    tpu.vector_store %arg4[%c0_133, %c0_134, %c0_135, %c0_136], %293 {strides = array<i32>} : memref<1x8x8x64xf32, #tpu.memory_space<vmem>>, vector<1x8x8x64xf32>,
    return
  }
  func.func @transform_0(%arg0: i32) -> (i32, i32, i32, i32) {
    %c0_i32 = arith.constant 0 : i32
    %c0_i32_0 = arith.constant 0 : i32
    %c0_i32_1 = arith.constant 0 : i32
    %c0_i32_2 = arith.constant 0 : i32
    return %arg0, %c0_i32, %c0_i32_0, %c0_i32_1 : i32, i32, i32, i32
  }
  func.func @transform_1(%arg0: i32) -> (i32, i32, i32, i32) {
    %c0_i32 = arith.constant 0 : i32
    %c0_i32_0 = arith.constant 0 : i32
    %c0_i32_1 = arith.constant 0 : i32
    %c0_i32_2 = arith.constant 0 : i32
    %c0_i32_3 = arith.constant 0 : i32
    return %c0_i32, %c0_i32_0, %c0_i32_1, %c0_i32_2 : i32, i32, i32, i32
  }
  func.func @transform_2(%arg0: i32) -> (i32, i32, i32) {
    %c0_i32 = arith.constant 0 : i32
    %c0_i32_0 = arith.constant 0 : i32
    %c0_i32_1 = arith.constant 0 : i32
    %c0_i32_2 = arith.constant 0 : i32
    return %c0_i32, %c0_i32_0, %c0_i32_1 : i32, i32, i32
  }
  func.func @transform_3(%arg0: i32) -> (i32, i32, i32, i32) {
    %c0_i32 = arith.constant 0 : i32
    %c0_i32_0 = arith.constant 0 : i32
    %c0_i32_1 = arith.constant 0 : i32
    %c0_i32_2 = arith.constant 0 : i32
    return %arg0, %c0_i32, %c0_i32_0, %c0_i32_1 : i32, i32, i32, i32
  }
}

</mosaic_0001>

<bundles_post_ra>
// kernel: student_model_forward.1
= control target key start
LH: loop header
LB: loop body
LE: loop exit
PB: predicated region body
PF: predicated region fallthrough
CT: control target
= control target key end

     0   :  { %8 = vsyncpa [#allocation3], 0  ;;  %s9023_s0 = inlined_call_operand.vmem [shape: f32[2,16,16,64], index: 0, kind: input, shape index: {}]   ;;  %s9024_s1 = inlined_call_operand.vmem [shape: f32[5,3,192,64], index: 1, kind: input, shape index: {}]   ;;  %s9025_s2 = inlined_call_operand.vmem [shape: f32[5,1,64], index: 2, kind: input, shape index: {}]   ;;  %s9026_s3 = inlined_call_operand.hbm [shape: f32[2,8,8,64], index: 3, kind: output, shape index: {}]  }
   0x1   :  { %10 = vsyncpa [#allocation3 + $0x1], 0  ;;  %s5727_s12 = smov 0   ;;  %s5729_s13 = smov 0  }
   0x2   :  { %s5731_s14 = smov 0   ;;  %s5733_s15 = smov 0  }
   0x3 LB: > { %s5748_s16 = sadd.s32 4294967295, %s5699_s15   ;;  %s4340_s17 = sadd.s32 4294967294, %s5699_s15   ;;  %s5699_s15 = sphi %s5733_s15, %s9101_s15   ;;  %s5695_s14 = sphi %s5731_s14, %s9100_s14   ;;  %s5691_s13 = sphi %s5729_s13, %s9099_s13   ;;  %s5687_s12 = sphi %s5727_s12, %s9098_s12  }
   0x4   : > { %s5752_s18 = sadd.s32 1, %s5699_s15   ;;  %s91_s19 = sadd.s32 1, %s5695_s14 }
   0x5   : > { %s88_s20 = ssub.s32 %s5699_s15, %s5752_s18  ;;  %p101_p0 = scmp.ne.s32.totalorder %s5695_s14, %s5691_s13 }
   0x6   : > { %p89_p1 = scmp.eq.s32.totalorder %s88_s20, 0  ;;  %p102_p2 = scmp.eq.s32.totalorder %s5748_s16, 1 }
   0x7   : > { %p107_p3 = scmp.ne.s32.totalorder %s5691_s13, %s5687_s12  ;;  %p108_p4 = scmp.eq.s32.totalorder %s4340_s17, 1 }
   0x8   : > { %s5763_s21 = scalar_select %p89_p1, %s5695_s14, %s91_s19  }
   0x9   : > { %p5765_p5 = por %p102_p2, %p101_p0  ;;  %p5769_p6 = por %p108_p4, %p107_p3 }
   0xa   : > { %p4343_p7 = scmp.ge.s32.totalorder %s5699_s15, 1  ;;  %p140_p8 = scmp.lt.s32.totalorder %s5699_s15, 3 }
   0xc   : > { %p141_p9 = pnand %p4343_p7, %p140_p8 }
   0xe   : > { %144 = sbr.rel (%p141_p9) target bundleno = 2116 (0x844), region = 32 }
  0x15   : > { %p164_p10 = scmp.lt.s32.totalorder %s5748_s16, 1  ;;  %v4347_v0 = vld [vmem:[%s9024_s1 + $0xc0] sm:$0xff]  ;;  %v9032_v1 = vmov 0.0|0.0   ;;  %v4348_v2 = vld [vmem:[%s9024_s1 + $0xc8] sm:$0xff]  ;;  %v4349_v3 = vld [vmem:[%s9024_s1 + $0xd0] sm:$0xff]  ;;  %v5702_v8 = vmov 0.0  }
  0x16   : > { %4933 = vmatprep.subr.bf16.mxu0 %v9032_v1  ;;  %4969 = vmatprep.subr.bf16.mxu1 %v9032_v1  ;;  %v4350_v4 = vld [vmem:[%s9024_s1 + $0xd8] sm:$0xff]  ;;  %v5791_v5 = vpack.c.bf16 %v4348_v2, %v4347_v0  ;;  %v397_v6 = vld [vmem:[%s9024_s1] sm:$0xff]  ;;  %v398_v7 = vld [vmem:[%s9024_s1 + $0x8] sm:$0xff]  ;;  %v5799_v9 = vrot.slane %v5702_v8, 1  ;;  %v207_v10 = vrot.slane %v5702_v8, 7  ;;  %vm376_vm0 = vcmask 523264  }
  0x17   : > { %s165_s5 = scalar_select %p164_p10, %s5748_s16, 1  ;;  %v5801_v11 = vpack.c.bf16 %v398_v7, %v397_v6  ;;  %v399_v12 = vld [vmem:[%s9024_s1 + $0x10] sm:$0xff]  ;;  %v400_v13 = vld [vmem:[%s9024_s1 + $0x18] sm:$0xff]  ;;  %v5810_v14 = vpack.c.bf16 %v4350_v4, %v4349_v3  ;;  %v4351_v15 = vld [vmem:[%s9024_s1 + $0xe0] sm:$0xff]  ;;  %vm206_vm1 = vcmask 1040384   ;;  %vm256_vm2 = vcmask 1046528  }
  0x18   : > { %9059 = vst [vmem:[#allocation5_spill] sm:$0xff] %v5799_v9  ;;  %4935 = vmatpush1.bf16.msra.mxu0 %v5791_v5  ;;  %4387 = vmatprep.mubr.msk.f32.mxu1 %vm376_vm0, %v5799_v9  ;;  %v4352_v16 = vld [vmem:[%s9024_s1 + $0xe8] sm:$0xff]  ;;  %v5827_v17 = vpack.c.bf16 %v400_v13, %v399_v12  ;;  %v401_v18 = vld [vmem:[%s9024_s1 + $0x20] sm:$0xff]  ;;  %v246_v25 = vsel %vm206_vm1, 0.0, %v207_v10  ;;  %v4353_v35 = vld [vmem:[%s9024_s1 + $0xf0] sm:$0xff]  ;;  %s5703_s17 = smov 64  }
  0x19   : > { %s4931_s20 = sshll.u32 %s165_s5, 8  ;;  %4936 = vmatprep.subr.bf16.mxu0 %v9032_v1  ;;  %4971 = vmatpush1.bf16.msra.mxu1 %v5801_v11  ;;  %v402_v19 = vld [vmem:[%s9024_s1 + $0x28] sm:$0xff]  ;;  %v5856_v29 = vpack.c.bf16 %v4352_v16, %v4351_v15  ;;  %v4354_v36 = vld [vmem:[%s9024_s1 + $0xf8] sm:$0xff]  ;;  %v4355_v43 = vld [vmem:[%s9024_s1 + $0x100] sm:$0xff]  ;;  %vm2035_vm4 = vcmask 1041408   ;;  %vm2044_vm5 = vcmask 1042432  }
  0x1a   : > { %s5820_s28 = scalar_lea.vmem %s9023_s0, %s4931_s20  ;;  %4972 = vmatprep.subr.bf16.mxu1 %v9032_v1  ;;  %v5858_v30 = vpack.c.bf16 %v402_v19, %v401_v18  ;;  %v5883_v42 = vpack.c.bf16 %v4354_v36, %v4353_v35  ;;  %v4356_v46 = vld [vmem:[%s9024_s1 + $0x108] sm:$0xff]  ;;  %v403_v47 = vld [vmem:[%s9024_s1 + $0x30] sm:$0xff]  ;;  %v404_v48 = vld [vmem:[%s9024_s1 + $0x38] sm:$0xff]  ;;  %vm2053_vm6 = vcmask 1043456   ;;  %vm2062_vm7 = vcmask 1044480   ;;  %s161_s30 = sand.u32 1, %s5691_s13  }
  0x1b   : > { %v5836_v20 = vld [vmem:[%s5820_s28] sm:$0xff]  ;;  %v5839_v21 = vld [vmem:[%s5820_s28 + $0x8] sm:$0xff]  ;;  %v5842_v22 = vld [vmem:[%s5820_s28 + $0x10] sm:$0xff]  ;;  %v5919_v55 = vpack.c.bf16 %v4356_v46, %v4355_v43  ;;  %v5921_v56 = vpack.c.bf16 %v404_v48, %v403_v47  ;;  %vm2071_vm8 = vcmask 1045504   ;;  %s4344_s6 = sshll.u32 %s161_s30, 6  ;;  %s8982_s19 = scalar_lea.sflag [#allocation3], %s161_s30 }
  0x1c   : > { %v209_v23 = vrot.slane %v5836_v20, 7  ;;  %v210_v24 = vrot.slane %v5839_v21, 7  ;;  %v212_v26 = vrot.slane %v5842_v22, 7  ;;  %v5850_v27 = vld [vmem:[%s5820_s28 + $0x18] sm:$0xff]  ;;  %v5853_v28 = vld [vmem:[%s5820_s28 + $0x20] sm:$0xff]  ;;  %4938 = vmatpush1.bf16.msra.mxu0 %v5810_v14  ;;  %v5874_v39 = vld [vmem:[%s5820_s28 + $0x28] sm:$0xff] }
  0x1d   : > { %v213_v34 = vrot.slane %v5850_v27, 7  ;;  %4939 = vmatprep.subr.bf16.mxu0 %v9032_v1  ;;  %4974 = vmatpush1.bf16.msra.mxu1 %v5827_v17  ;;  %v215_v40 = vrot.slane %v5853_v28, 7  ;;  %v5880_v41 = vld [vmem:[%s5820_s28 + $0x30] sm:$0xff]  ;;  %v216_v45 = vrot.slane %v5874_v39, 7  ;;  %v5903_v49 = vld [vmem:[%s5820_s28 + $0x38] sm:$0xff]  ;;  %v405_v52 = vld [vmem:[%s9024_s1 + $0x40] sm:$0xff] }
  0x1e   : > { %v247_v31 = vsel %vm206_vm1, 0.0, %v209_v23  ;;  %v211_v32 = vsel %vm206_vm1, %v209_v23, %v210_v24  ;;  %v248_v33 = vsel %vm206_vm1, 0.0, %v212_v26  ;;  %4975 = vmatprep.subr.bf16.mxu1 %v9032_v1  ;;  %v218_v51 = vrot.slane %v5880_v41, 7  ;;  %v406_v53 = vld [vmem:[%s9024_s1 + $0x48] sm:$0xff]  ;;  %v5916_v54 = vld [vmem:[%s5820_s28 + $0x40] sm:$0xff]  ;;  %v4357_v59 = vld [vmem:[%s9024_s1 + $0x110] sm:$0xff] }
  0x1f   : > { %320 = vrot.lane.b32.xlu0 %v247_v31, %s5703_s17  ;;  %v5625_v37 = vpack.i.bf16 %v211_v32, %v246_v25  ;;  %v5630_v38 = vpack.i.bf16 %v248_v33, %v207_v10  ;;  %v214_v44 = vsel %vm206_vm1, %v212_v26, %v213_v34  ;;  %v249_v50 = vsel %vm206_vm1, 0.0, %v215_v40  ;;  %v4358_v60 = vld [vmem:[%s9024_s1 + $0x118] sm:$0xff]  ;;  %v5934_v61 = vld [vmem:[%s5820_s28 + $0x48] sm:$0xff]  ;;  %v407_v2 = vld [vmem:[%s9024_s1 + $0x50] sm:$0xff]  ;;  %s8953_s7 = scalar_lea.vmem [#allocation2], %s4344_s6  ;;  %s5704_s20 = smov [#allocation2]  }
  0x20   : > { %4941 = vmatpush1.bf16.msra.mxu0 %v5856_v29  ;;  %v217_v57 = vsel %vm206_vm1, %v215_v40, %v216_v45  ;;  %v219_v58 = vrot.slane %v5903_v49, 7  ;;  %v5937_v62 = vpack.c.bf16 %v406_v53, %v405_v52  ;;  %v250_v63 = vsel %vm206_vm1, 0.0, %v218_v51  ;;  %v408_v3 = vld [vmem:[%s9024_s1 + $0x58] sm:$0xff]  ;;  %v5950_v4 = vld [vmem:[%s5820_s28 + $0x50] sm:$0xff]  ;;  %v4359_v10 = vld [vmem:[%s9024_s1 + $0x120] sm:$0xff]  ;;  %s4278_s8 = sshll.u32 %s8953_s7, 4  ;;  %s8976_s8 = int_to_ptr.vmem [resolvable:$true] %s4278_s8 }
  0x21   : > { %5631 = vrot.lane.b32.xlu1 %v5630_v38, %s5703_s17  ;;  %4942 = vmatprep.subr.bf16.mxu0 %v9032_v1  ;;  %v221_v0 = vrot.slane %v5916_v54, 7  ;;  %v5953_v6 = vpack.c.bf16 %v4358_v60, %v4357_v59  ;;  %v222_v8 = vrot.slane %v5934_v61, 7  ;;  %v4360_v12 = vld [vmem:[%s9024_s1 + $0x128] sm:$0xff]  ;;  %v5966_v13 = vld [vmem:[%s5820_s28 + $0x58] sm:$0xff]  ;;  %v5969_v15 = vpack.c.bf16 %v408_v3, %v407_v2  ;;  %v409_v19 = vld [vmem:[%s9024_s1 + $0x60] sm:$0xff] }
  0x22   : > { %4977 = vmatpush1.bf16.msra.mxu1 %v5858_v30  ;;  %v220_v7 = vsel %vm206_vm1, %v218_v51, %v219_v58  ;;  %v224_v18 = vrot.slane %v5950_v4, 7  ;;  %v410_v23 = vld [vmem:[%s9024_s1 + $0x68] sm:$0xff]  ;;  %v259_v24 = vrot.slane %v5836_v20, 1  ;;  %v5983_v25 = vld [vmem:[%s5820_s28 + $0x60] sm:$0xff]  ;;  %v5986_v26 = vpack.c.bf16 %v4360_v12, %v4359_v10  ;;  %v4361_v34 = vld [vmem:[%s9024_s1 + $0x130] sm:$0xff] }
  0x23   : > { %5626 = vrot.lane.b32.xlu0 %v5625_v37, %s5703_s17  ;;  %4978 = vmatprep.subr.bf16.mxu1 %v9032_v1  ;;  %v251_v16 = vsel %vm206_vm1, 0.0, %v221_v0  ;;  %v9027_v31 = vrot.slane %v5839_v21, 1  ;;  %v223_v32 = vsel %vm206_vm1, %v221_v0, %v222_v8  ;;  %v225_v33 = vrot.slane %v5966_v13, 7  ;;  %v4362_v35 = vld [vmem:[%s9024_s1 + $0x138] sm:$0xff]  ;;  %v6000_v36 = vld [vmem:[%s5820_s28 + $0x68] sm:$0xff]  ;;  %v6023_v46 = vld [vmem:[%s5820_s28 + $0x70] sm:$0xff] }
  0x24   : > { %4944 = vmatpush1.bf16.msra.mxu0 %v5883_v42  ;;  %v6003_v37 = vpack.c.bf16 %v410_v23, %v409_v19  ;;  %v252_v40 = vsel %vm206_vm1, 0.0, %v224_v18  ;;  %v227_v43 = vrot.slane %v5983_v25, 7  ;;  %v412_v45 = vld [vmem:[%s9024_s1 + $0x78] sm:$0xff]  ;;  %v6026_v47 = vpack.c.bf16 %v4362_v35, %v4361_v34  ;;  %v4363_v51 = vld [vmem:[%s9024_s1 + $0x140] sm:$0xff]  ;;  %v4364_v52 = vld [vmem:[%s9024_s1 + $0x148] sm:$0xff] }
  0x25   : > { %326 = vrot.lane.b32.xlu1 %v214_v44, %s5703_s17  ;;  %4945 = vmatprep.subr.bf16.mxu0 %v9032_v1  ;;  %v6008_v38 = vsel %vm256_vm2, %v259_v24, %v9027_v31  ;;  %v411_v44 = vld [vmem:[%s9024_s1 + $0x70] sm:$0xff]  ;;  %v226_v48 = vsel %vm206_vm1, %v224_v18, %v225_v33  ;;  %v6039_v53 = vld [vmem:[%s5820_s28 + $0x78] sm:$0xff]  ;;  %v230_v59 = vrot.slane %v6023_v46, 7  ;;  %v413_v60 = vld [vmem:[%s9024_s1 + $0x80] sm:$0xff]  ;;  %v6058_v2 = vpack.c.bf16 %v4364_v52, %v4363_v51 }
  0x26   : > { %4980 = vmatpush1.bf16.msra.mxu1 %v5921_v56  ;;  %9060 = vst [vmem:[#allocation6_spill] sm:$0xff] %v6003_v37  ;;  %4371 = vmatprep.mubr.msk.f32.mxu0 %vm376_vm0, %v6008_v38  ;;  %v253_v58 = vsel %vm206_vm1, 0.0, %v227_v43  ;;  %v6055_v0 = vld [vmem:[%s5820_s28 + $0x80] sm:$0xff]  ;;  %v4365_v8 = vld [vmem:[%s9024_s1 + $0x150] sm:$0xff]  ;;  %v4366_v10 = vld [vmem:[%s9024_s1 + $0x158] sm:$0xff] }
  0x27   : > { %328 = vrot.lane.b32.xlu0 %v249_v50, %s5703_s17  ;;  %4981 = vmatprep.subr.bf16.mxu1 %v9032_v1  ;;  %v228_v50 = vrot.slane %v6000_v36, 7  ;;  %v6071_v12 = vld [vmem:[%s5820_s28 + $0x88] sm:$0xff]  ;;  %v6077_v18 = vsel %vm206_vm1, 0.0, %v230_v59  ;;  %v1051_v19 = vrot.slane %v6055_v0, 7  ;;  %v415_v23 = vld [vmem:[%s9024_s1 + $0x90] sm:$0xff]  ;;  %v416_v24 = vld [vmem:[%s9024_s1 + $0x98] sm:$0xff]  ;;  %v6092_v33 = vpack.c.bf16 %v4366_v10, %v4365_v8 }
  0x28   : > { %4947 = vmatpush1.bf16.msra.mxu0 %v5919_v55  ;;  %v1052_v35 = vrot.slane %v6071_v12, 7  ;;  %v417_v51 = vld [vmem:[%s9024_s1 + $0xa0] sm:$0xff]  ;;  %v418_v52 = vld [vmem:[%s9024_s1 + $0xa8] sm:$0xff]  ;;  %v6173_v31 = vld [vmem:[%s5820_s28 + $0xb8] sm:$0xff] }
  0x29   : > { %330 = vrot.lane.b32.xlu1 %v217_v57, %s5703_s17  ;;  %4948 = vmatprep.subr.bf16.mxu0 %v9032_v1  ;;  %v6042_v57 = vpack.c.bf16 %v412_v45, %v411_v44  ;;  %v229_v3 = vsel %vm206_vm1, %v227_v43, %v228_v50  ;;  %v4368_v43 = vld [vmem:[%s9024_s1 + $0x168] sm:$0xff]  ;;  %v6108_v44 = vld [vmem:[%s5820_s28 + $0x98] sm:$0xff]  ;;  %v6111_v45 = vpack.c.bf16 %v416_v24, %v415_v23  ;;  %v419_v24 = vld [vmem:[%s9024_s1 + $0xb0] sm:$0xff] }
  0x2a   : > { %4983 = vmatpush1.bf16.msra.mxu1 %v5937_v62  ;;  %v6146_v8 = vld [vmem:[%s5820_s28 + $0xa8] sm:$0xff]  ;;  %v6149_v10 = vpack.c.bf16 %v418_v52, %v417_v51  ;;  %vm6278_vm3 = vmneg %vm376_vm0 }
  0x2b   : > { %332 = vrot.lane.b32.xlu0 %v250_v63, %s5703_s17  ;;  %4984 = vmatprep.subr.bf16.mxu1 %v9032_v1  ;;  %9061 = vst [vmem:[#allocation7_spill] sm:$0xff] %v6042_v57  ;;  %v414_v63 = vld [vmem:[%s9024_s1 + $0x88] sm:$0xff]  ;;  %9063 = vst [vmem:[#allocation9_spill] sm:$0xff] %v6111_v45  ;;  %v1058_v52 = vrot.slane %v6146_v8, 7 }
  0x2c   : > { %4950 = vmatpush1.bf16.msra.mxu0 %v5953_v6  ;;  %9064 = vst [vmem:[#allocation10_spill] sm:$0xff] %v6149_v10 }
  0x2d   : > { %334 = vrot.lane.b32.xlu1 %v220_v7, %s5703_s17  ;;  %4951 = vmatprep.subr.bf16.mxu0 %v9032_v1  ;;  %v231_v7 = vrot.slane %v6039_v53, 7 }
  0x2e   : > { %4986 = vmatpush1.bf16.msra.mxu1 %v5969_v15 }
  0x2f   : > { %336 = vrot.lane.b32.xlu0 %v251_v16, %s5703_s17  ;;  %4987 = vmatprep.subr.bf16.mxu1 %v9032_v1  ;;  %v6074_v16 = vpack.c.bf16 %v414_v63, %v413_v60  ;;  %v6095_v34 = vsel %vm206_vm1, %v230_v59, %v231_v7  ;;  %v6133_v60 = vsel %vm206_vm1, %v1051_v19, %v1052_v35  ;;  %v1055_v63 = vrot.slane %v6108_v44, 7  ;;  %v4370_v7 = vld [vmem:[%s9024_s1 + $0x178] sm:$0xff] }
  0x30   : > { %4953 = vmatpush1.bf16.msra.mxu0 %v5986_v26  ;;  %v420_v35 = vld [vmem:[%s9024_s1 + $0xb8] sm:$0xff] }
  0x31   : > { %338 = vrot.lane.b32.xlu1 %v223_v32, %s5703_s17  ;;  %4954 = vmatprep.subr.bf16.mxu0 %v9032_v1  ;;  %9062 = vst [vmem:[#allocation8_spill] sm:$0xff] %v6074_v16  ;;  %v6089_v32 = vld [vmem:[%s5820_s28 + $0x90] sm:$0xff] }
  0x32   : > { %4989 = vmatpush1.bf16.msra.mxu1 %v6003_v37  ;;  %v1054_v50 = vrot.slane %v6089_v32, 7 }
  0x33   : > { %340 = vrot.lane.b32.xlu0 %v252_v40, %s5703_s17  ;;  %4990 = vmatprep.subr.bf16.mxu1 %v9032_v1  ;;  %v4367_v40 = vld [vmem:[%s9024_s1 + $0x160] sm:$0xff] }
  0x34   : > { %4956 = vmatpush1.bf16.msra.mxu0 %v6026_v47  ;;  %v6130_v59 = vpack.c.bf16 %v4368_v43, %v4367_v40  ;;  %v6163_v40 = vld [vmem:[%s5820_s28 + $0xb0] sm:$0xff]  ;;  %v1056_v51 = vsel %vm206_vm1, %v1054_v50, %v1055_v63 }
  0x35   : > { %342 = vrot.lane.b32.xlu1 %v226_v48, %s5703_s17  ;;  %4957 = vmatprep.subr.bf16.mxu0 %v9032_v1  ;;  %v6114_v48 = vsel %vm206_vm1, 0.0, %v1051_v19  ;;  %v1086_v19 = vsel %vm206_vm1, 0.0, %v1054_v50  ;;  %v6183_v50 = vld [vmem:[%s5820_s28 + $0xc0] sm:$0xff] }
  0x36   : > { %4992 = vmatpush1.bf16.msra.mxu1 %v6042_v57 }
  0x37   : > { %344 = vrot.lane.b32.xlu0 %v253_v58, %s5703_s17  ;;  %4993 = vmatprep.subr.bf16.mxu1 %v9032_v1  ;;  %v6127_v58 = vld [vmem:[%s5820_s28 + $0xa0] sm:$0xff] }
  0x38   : > { %4959 = vmatpush1.bf16.msra.mxu0 %v6058_v2  ;;  %v1057_v23 = vrot.slane %v6127_v58, 7 }
  0x39   : > { %346 = vrot.lane.b32.xlu1 %v229_v3, %s5703_s17  ;;  %4960 = vmatprep.subr.bf16.mxu0 %v9032_v1  ;;  %v4369_v3 = vld [vmem:[%s9024_s1 + $0x170] sm:$0xff] }
  0x3a   : > { %4995 = vmatpush1.bf16.msra.mxu1 %v6074_v16  ;;  %v6166_v43 = vpack.c.bf16 %v4370_v7, %v4369_v3  ;;  %v1087_v16 = vsel %vm206_vm1, 0.0, %v1057_v23  ;;  %v1060_v3 = vrot.slane %v6163_v40, 7  ;;  %v1059_v63 = vsel %vm206_vm1, %v1057_v23, %v1058_v52  ;;  %v6199_v23 = vld [vmem:[%s5820_s28 + $0xd0] sm:$0xff] }
  0x3b   : > { %348 = vrot.lane.b32.xlu0 %v6077_v18, %s5703_s17  ;;  %4996 = vmatprep.subr.bf16.mxu1 %v9032_v1  ;;  %v1061_v7 = vrot.slane %v6173_v31, 7  ;;  %9066 = vst [vmem:[#allocation12_spill] sm:$0xff] %v6199_v23 }
  0x3c   : > { %4962 = vmatpush1.bf16.msra.mxu0 %v6092_v33 }
  0x3d   : > { %350 = vrot.lane.b32.xlu1 %v6095_v34, %s5703_s17  ;;  %4963 = vmatprep.subr.bf16.mxu0 %v9032_v1 }
  0x3e   : > { %4998 = vmatpush1.bf16.msra.mxu1 %v6111_v45  ;;  %v6176_v45 = vpack.c.bf16 %v420_v35, %v419_v24  ;;  %v1088_v24 = vsel %vm206_vm1, 0.0, %v1060_v3  ;;  %v1063_v35 = vrot.slane %v6183_v50, 7 }
  0x3f   : > { %1151 = vrot.lane.b32.xlu0 %v6114_v48, %s5703_s17  ;;  %4999 = vmatprep.subr.bf16.mxu1 %v9032_v1 }
  0x40   : > { %4965 = vmatpush1.bf16.msra.mxu0 %v6130_v59  ;;  %9065 = vst [vmem:[#allocation11_spill] sm:$0xff] %v6176_v45 }
  0x41   : > { %1153 = vrot.lane.b32.xlu1 %v6133_v60, %s5703_s17  ;;  %4966 = vmatprep.subr.bf16.mxu0 %v9032_v1 }
  0x42   : > { %5001 = vmatpush1.bf16.msra.mxu1 %v6149_v10  ;;  %v1066_v10 = vrot.slane %v6199_v23, 7 }
  0x43   : > { %1155 = vrot.lane.b32.xlu0 %v1086_v19, %s5703_s17  ;;  %5002 = vmatprep.subr.bf16.mxu1 %v9032_v1  ;;  %v6191_v19 = vld [vmem:[%s5820_s28 + $0xc8] sm:$0xff] }
  0x44   : > { %4968 = vmatpush1.bf16.msra.mxu0 %v6166_v43  ;;  %v1064_v52 = vrot.slane %v6191_v19, 7 }
  0x45   : > { %1157 = vrot.lane.b32.xlu1 %v1056_v51, %s5703_s17  ;;  %5005 = vmatprep.subr.bf16.mxu0 %v9032_v1  ;;  %v1062_v51 = vsel %vm206_vm1, %v1060_v3, %v1061_v7  ;;  %v6217_v7 = vld [vmem:[%s5820_s28 + $0xe8] sm:$0xff] }
  0x46   : > { %5004 = vmatpush1.bf16.msra.mxu1 %v6176_v45  ;;  %v1089_v45 = vsel %vm206_vm1, 0.0, %v1063_v35  ;;  %9069 = vst [vmem:[#allocation15_spill] sm:$0xff] %v6217_v7 }
  0x47   : > { %1159 = vrot.lane.b32.xlu0 %v1087_v16, %s5703_s17  ;;  %5041 = vmatprep.subr.bf16.mxu1 %v9032_v1  ;;  %v6205_v16 = vld [vmem:[%s5820_s28 + $0xd8] sm:$0xff]  ;;  %v6211_v1 = vld [vmem:[%s5820_s28 + $0xe0] sm:$0xff] }
  0x48   : > { %9067 = vst [vmem:[#allocation13_spill] sm:$0xff] %v6205_v16  ;;  %9068 = vst [vmem:[#allocation14_spill] sm:$0xff] %v6211_v1  ;;  %v1067_v3 = vrot.slane %v6205_v16, 7  ;;  %v1069_v57 = vrot.slane %v6211_v1, 7  ;;  %v6234_v1 = vld [vmem:[%s5820_s28 + $0xf8] sm:$0xff] }
  0x49   : > { %1161 = vrot.lane.b32.xlu1 %v1059_v63, %s5703_s17  ;;  %v1065_v63 = vsel %vm206_vm1, %v1063_v35, %v1064_v52  ;;  %v6226_v35 = vld [vmem:[%s5820_s28 + $0xf0] sm:$0xff]  ;;  %9071 = vst [vmem:[#allocation17_spill] sm:$0xff] %v6234_v1 }
  0x4a   : > { %v1068_v23 = vsel %vm206_vm1, %v1066_v10, %v1067_v3  ;;  %9070 = vst [vmem:[#allocation16_spill] sm:$0xff] %v6226_v35  ;;  %v1091_v52 = vsel %vm206_vm1, 0.0, %v1069_v57  ;;  %v1072_v16 = vrot.slane %v6226_v35, 7 }
  0x4b   : > { %1163 = vrot.lane.b32.xlu0 %v1088_v24, %s5703_s17  ;;  %v1090_v24 = vsel %vm206_vm1, 0.0, %v1066_v10 }
  0x4c   : > { %v1092_v10 = vsel %vm206_vm1, 0.0, %v1072_v16 }
  0x4d   : > { %1165 = vrot.lane.b32.xlu1 %v1062_v51, %s5703_s17  ;;  %v1070_v51 = vrot.slane %v6217_v7, 7 }
  0x4f   : > { %1167 = vrot.lane.b32.xlu0 %v1089_v45, %s5703_s17  ;;  %v1071_v45 = vsel %vm206_vm1, %v1069_v57, %v1070_v51  ;;  %v4407_v57 = vld [vmem:[%s9024_s1 + $0x180] sm:$0xff] }
  0x51   : > { %1169 = vrot.lane.b32.xlu1 %v1065_v63, %s5703_s17  ;;  %v1073_v63 = vrot.slane %v6234_v1, 7 }
  0x53   : > { %1171 = vrot.lane.b32.xlu0 %v1090_v24, %s5703_s17 }
  0x55   : > { %1173 = vrot.lane.b32.xlu1 %v1068_v23, %s5703_s17  ;;  %v1074_v23 = vsel %vm206_vm1, %v1072_v16, %v1073_v63 }
  0x57   : > { %1175 = vrot.lane.b32.xlu0 %v1091_v52, %s5703_s17 }
  0x59   : > { %1177 = vrot.lane.b32.xlu1 %v1071_v45, %s5703_s17  ;;  %v262_v45 = vrot.slane %v5842_v22, 1 }
  0x5b   : > { %352 = vrot.lane.b32.xlu0 %v6114_v48, %s5703_s17  ;;  %v4408_v48 = vld [vmem:[%s9024_s1 + $0x188] sm:$0xff] }
  0x5c   : > { %v6256_v16 = vpack.c.bf16 %v4408_v48, %v4407_v57  ;;  %v9074_v57 = vmov 0  ;;  %v4411_v48 = vld [vmem:[%s9024_s1 + $0x1a0] sm:$0xff] }
  0x5d   : > { %1179 = vrot.lane.b32.xlu1 %v1092_v10, %s5703_s17  ;;  %v263_v10 = vrot.slane %v5850_v27, 1  ;;  %v9075_v57 = vsel %vm6278_vm3, 4294967295, %v9074_v57 }
  0x5e   : > { %9076 = vst [vmem:[#allocation19_spill] sm:$0xff] %v9075_v57 }
  0x5f   : > { %354 = vrot.lane.b32.xlu0 %v6133_v60, %s5703_s17  ;;  %v9072_v60 = vrot.slane %v5839_v21, 1  ;;  %v6297_v35 = vsel %vm256_vm2, %v262_v45, %v263_v10  ;;  %v4413_v45 = vld [vmem:[%s9024_s1 + $0x1b0] sm:$0xff] }
  0x61   : > { %1181 = vrot.lane.b32.xlu1 %v1074_v23, %s5703_s17  ;;  %v297_v24 = vsel %vm256_vm2, %v9072_v60, 0.0 }
  0x63   : > { %1147 = vrot.lane.b32.xlu0 %v6077_v18, %s5703_s17  ;;  %v4409_v18 = vld [vmem:[%s9024_s1 + $0x190] sm:$0xff] }
  0x65   : > { %1149 = vrot.lane.b32.xlu1 %v6095_v34, %s5703_s17  ;;  %v4410_v34 = vld [vmem:[%s9024_s1 + $0x198] sm:$0xff] }
  0x66   : > { %v6275_v63 = vpack.c.bf16 %v4410_v34, %v4409_v18  ;;  %v6294_v34 = vsel %vm256_vm2, %v5799_v9, 0.0  ;;  %v278_v9 = vrot.slane %v6000_v36, 1 }
  0x67   : > { %9079 = vst [vmem:[#allocation21_spill] sm:$0xff] %v6294_v34 }
  0x91   : > { %v321_v3 = vpop.permute.xlu0 %320 }
  0x92   : > { %v379_v51 = vsel %vm376_vm0, %v5836_v20, %v321_v3  ;;  %v9077_v20 = vmov 0.0|0.0   ;;  %v4412_v3 = vld [vmem:[%s9024_s1 + $0x1a8] sm:$0xff] }
  0x93   : > { %551 = vmatmul.mubr.f32.vlgmr.msra.gmra.mrb[0].mxu0 %v379_v51  ;;  %v6269_v52 = vpop.permute.xlu1 %5631 }
  0x94   : > { %9073 = vst [vmem:[#allocation18_spill] sm:$0xff] %v6269_v52  ;;  %5007 = vmatpush1.bf16.msra.mxu0 %v6256_v16  ;;  %4372 = vmatprep.mubr.msk.f32.mxu0 %vm376_vm0, %v297_v24  ;;  %v5634_v18 = vunpack.i.h.bf16 %v6269_v52  ;;  %v9050_v7 = vunpack.i.l.bf16 %v6269_v52 }
  0x95   : > { %v5627_v23 = vpop.permute.xlu0 %5626  ;;  %5008 = vmatprep.subr.bf16.mxu0 %v9077_v20 }
  0x96   : > { %v5629_v60 = vunpack.i.h.bf16 %v5627_v23  ;;  %v6289_v1 = vunpack.i.l.bf16 %v5627_v23  ;;  %v6306_v23 = vpack.c.bf16 %v4412_v3, %v4411_v48  ;;  %v6325_v48 = vsel %vm256_vm2, %v263_v10, 0.0  ;;  %v4415_v10 = vld [vmem:[%s9024_s1 + $0x1c0] sm:$0xff] }
  0x97   : > { %v265_v3 = vrot.slane %v5853_v28, 1 }
  0x98   : > { %9078 = vst [vmem:[#allocation20_spill] sm:$0xff] %v6289_v1  ;;  %4389 = vmatmul.mubr.msk.f32.vlgmr.msra.gmra.mrb[0].mxu1 %vm6278_vm3, %v6289_v1  ;;  %v380_v37 = vsel %vm376_vm0, %v5839_v21, %v5629_v60  ;;  %5010 = vmatpush1.bf16.msra.mxu0 %v6275_v63  ;;  %v4414_v1 = vld [vmem:[%s9024_s1 + $0x1b8] sm:$0xff]  ;;  %v6321_v21 = vsel %vm376_vm0, %v5842_v22, %v5634_v18  ;;  %v266_v60 = vrot.slane %v5874_v39, 1  ;;  %v4416_v18 = vld [vmem:[%s9024_s1 + $0x1c8] sm:$0xff] }
  0x99   : > { %5043 = vmatpush1.bf16.msra.mxu1 %v5791_v5  ;;  %556 = vmatmul.mubr.f32.gmra.mrb[2].mxu0 %v380_v37  ;;  %v327_v5 = vpop.permute.xlu1 %326  ;;  %v6335_v22 = vpack.c.bf16 %v4414_v1, %v4413_v45 }
  0x9a   : > { %4390 = vmatprep.mubr.msk.f32.mxu1 %vm376_vm0, %v6294_v34  ;;  %4373 = vmatprep.mubr.msk.f32.mxu0 %vm376_vm0, %v6297_v35  ;;  %v6351_v1 = vsel %vm376_vm0, %v5850_v27, %v327_v5  ;;  %v6355_v45 = vsel %vm256_vm2, %v265_v3, %v266_v60  ;;  %v4417_v27 = vld [vmem:[%s9024_s1 + $0x1d0] sm:$0xff]  ;;  %v268_v3 = vrot.slane %v5880_v41, 1  ;;  %v275_v34 = vrot.slane %v5966_v13, 1 }
  0x9b   : > { %5044 = vmatprep.subr.bf16.mxu1 %v9077_v20  ;;  %5011 = vmatprep.subr.bf16.mxu0 %v9077_v20 }
  0x9c   : > { %4392 = vmatmul.mubr.msk.f32.gmra.mrb[2].mxu1 %vm6278_vm3, %v9050_v7  ;;  %5013 = vmatpush1.bf16.msra.mxu0 %v6306_v23  ;;  %v6359_v7 = vpack.c.bf16 %v4416_v18, %v4415_v10  ;;  %v269_v10 = vrot.slane %v5903_v49, 1 }
  0x9d   : > { %561 = vmatmul.mubr.f32.gmra.mrb[4].mxu0 %v6321_v21  ;;  %5046 = vmatpush1.bf16.msra.mxu1 %v5810_v14  ;;  %v329_v14 = vpop.permute.xlu0 %328  ;;  %v331_v5 = vpop.permute.xlu1 %330 }
  0x9e   : > { %4393 = vmatprep.mubr.msk.f32.mxu1 %vm376_vm0, %v6008_v38  ;;  %4374 = vmatprep.mubr.msk.f32.mxu0 %vm376_vm0, %v6325_v48  ;;  %v4418_v38 = vld [vmem:[%s9024_s1 + $0x1d8] sm:$0xff] }
  0x9f   : > { %5047 = vmatprep.subr.bf16.mxu1 %v9077_v20  ;;  %5014 = vmatprep.subr.bf16.mxu0 %v9077_v20 }
  0xa0   : > { %711 = vmatmul.mubr.f32.gmra.mrb[4].mxu1 %v379_v51  ;;  %5016 = vmatpush1.bf16.msra.mxu0 %v6335_v22  ;;  %v6374_v51 = vsel %vm376_vm0, %v5853_v28, %v329_v14  ;;  %v4419_v28 = vld [vmem:[%s9024_s1 + $0x1e0] sm:$0xff]  ;;  %v6403_v14 = vsel %vm256_vm2, %v268_v3, %v269_v10  ;;  %v6428_v3 = vsel %vm256_vm2, %v269_v10, 0.0  ;;  %v4424_v10 = vld [vmem:[%s9024_s1 + $0x208] sm:$0xff] }
  0xa1   : > { %566 = vmatmul.mubr.f32.gmra.mrb[6].mxu0 %v6351_v1  ;;  %4394 = vmatprep.mubr.msk.f32.mxu1 %vm376_vm0, %v297_v24  ;;  %v6378_v24 = vsel %vm256_vm2, %v266_v60, 0.0  ;;  %v4420_v60 = vld [vmem:[%s9024_s1 + $0x1e8] sm:$0xff]  ;;  %v333_v18 = vpop.permute.xlu0 %332 }
  0xa2   : > { %5049 = vmatpush1.bf16.msra.mxu1 %v5856_v29  ;;  %4375 = vmatprep.mubr.msk.f32.mxu0 %vm376_vm0, %v6355_v45  ;;  %v6384_v29 = vpack.c.bf16 %v4418_v38, %v4417_v27  ;;  %v6409_v27 = vpack.c.bf16 %v4420_v60, %v4419_v28  ;;  %v6424_v38 = vsel %vm376_vm0, %v5880_v41, %v333_v18  ;;  %v271_v28 = vrot.slane %v5916_v54, 1 }
  0xa3   : > { %5050 = vmatprep.subr.bf16.mxu1 %v9077_v20  ;;  %5017 = vmatprep.subr.bf16.mxu0 %v9077_v20  ;;  %v272_v60 = vrot.slane %v5934_v61, 1 }
  0xa4   : > { %716 = vmatmul.mubr.f32.gmra.mrb[6].mxu1 %v380_v37  ;;  %5019 = vmatpush1.bf16.msra.mxu0 %v6359_v7  ;;  %v6400_v37 = vsel %vm376_vm0, %v5874_v39, %v331_v5  ;;  %v4421_v39 = vld [vmem:[%s9024_s1 + $0x1f0] sm:$0xff]  ;;  %v335_v5 = vpop.permute.xlu1 %334 }
  0xa5   : > { %571 = vmatmul.mubr.f32.gmra.mrb[8].mxu0 %v6374_v51  ;;  %4395 = vmatprep.mubr.msk.f32.mxu1 %vm376_vm0, %v6297_v35  ;;  %v6451_v18 = vsel %vm376_vm0, %v5903_v49, %v335_v5  ;;  %v4425_v49 = vld [vmem:[%s9024_s1 + $0x210] sm:$0xff] }
  0xa6   : > { %4376 = vmatprep.mubr.msk.f32.mxu0 %vm376_vm0, %v6378_v24  ;;  %5052 = vmatpush1.bf16.msra.mxu1 %v5883_v42  ;;  %v4422_v42 = vld [vmem:[%s9024_s1 + $0x1f8] sm:$0xff] }
  0xa7   : > { %5053 = vmatprep.subr.bf16.mxu1 %v9077_v20  ;;  %5020 = vmatprep.subr.bf16.mxu0 %v9077_v20  ;;  %v6436_v41 = vpack.c.bf16 %v4422_v42, %v4421_v39  ;;  %v337_v39 = vpop.permute.xlu0 %336  ;;  %v6455_v42 = vsel %vm256_vm2, %v271_v28, %v272_v60 }
  0xa8   : > { %721 = vmatmul.mubr.f32.gmra.mrb[8].mxu1 %v6321_v21  ;;  %5022 = vmatpush1.bf16.msra.mxu0 %v6384_v29  ;;  %v6476_v5 = vsel %vm376_vm0, %v5916_v54, %v337_v39  ;;  %v339_v28 = vpop.permute.xlu1 %338 }
  0xa9   : > { %576 = vmatmul.mubr.f32.gmra.mrb[10].mxu0 %v6400_v37  ;;  %4396 = vmatprep.mubr.msk.f32.mxu1 %vm376_vm0, %v6325_v48  ;;  %v6503_v39 = vsel %vm376_vm0, %v5934_v61, %v339_v28  ;;  %v4429_v61 = vld [vmem:[%s9024_s1 + $0x230] sm:$0xff] }
  0xaa   : > { %4377 = vmatprep.mubr.msk.f32.mxu0 %vm376_vm0, %v6403_v14  ;;  %5055 = vmatpush1.bf16.msra.mxu1 %v5919_v55  ;;  %v4423_v55 = vld [vmem:[%s9024_s1 + $0x200] sm:$0xff] }
  0xab   : > { %5056 = vmatprep.subr.bf16.mxu1 %v9077_v20  ;;  %5023 = vmatprep.subr.bf16.mxu0 %v9077_v20  ;;  %v6461_v52 = vpack.c.bf16 %v4424_v10, %v4423_v55  ;;  %v6480_v55 = vsel %vm256_vm2, %v272_v60, 0.0  ;;  %v274_v10 = vrot.slane %v5950_v4, 1  ;;  %v4428_v60 = vld [vmem:[%s9024_s1 + $0x228] sm:$0xff] }
  0xac   : > { %726 = vmatmul.mubr.f32.gmra.mrb[10].mxu1 %v6351_v1  ;;  %5025 = vmatpush1.bf16.msra.mxu0 %v6409_v27 }
  0xad   : > { %581 = vmatmul.mubr.f32.gmra.mrb[12].mxu0 %v6424_v38  ;;  %4397 = vmatprep.mubr.msk.f32.mxu1 %vm376_vm0, %v6355_v45 }
  0xae   : > { %4378 = vmatprep.mubr.msk.f32.mxu0 %vm376_vm0, %v6428_v3  ;;  %5058 = vmatpush1.bf16.msra.mxu1 %v5953_v6  ;;  %v4426_v6 = vld [vmem:[%s9024_s1 + $0x218] sm:$0xff] }
  0xaf   : > { %5059 = vmatprep.subr.bf16.mxu1 %v9077_v20  ;;  %5026 = vmatprep.subr.bf16.mxu0 %v9077_v20  ;;  %v6488_v54 = vpack.c.bf16 %v4426_v6, %v4425_v49  ;;  %v341_v49 = vpop.permute.xlu0 %340  ;;  %v6507_v6 = vsel %vm256_vm2, %v274_v10, %v275_v34  ;;  %v343_v10 = vpop.permute.xlu1 %342 }
  0xb0   : > { %731 = vmatmul.mubr.f32.gmra.mrb[12].mxu1 %v6374_v51  ;;  %5028 = vmatpush1.bf16.msra.mxu0 %v6436_v41  ;;  %v6528_v28 = vsel %vm376_vm0, %v5950_v4, %v341_v49 }
  0xb1   : > { %586 = vmatmul.mubr.f32.gmra.mrb[14].mxu0 %v6451_v18  ;;  %4398 = vmatprep.mubr.msk.f32.mxu1 %vm376_vm0, %v6378_v24 }
  0xb2   : > { %4379 = vmatprep.mubr.msk.f32.mxu0 %vm376_vm0, %v6455_v42  ;;  %5061 = vmatpush1.bf16.msra.mxu1 %v5986_v26  ;;  %v4427_v26 = vld [vmem:[%s9024_s1 + $0x220] sm:$0xff] }
  0xb3   : > { %5062 = vmatprep.subr.bf16.mxu1 %v9077_v20  ;;  %5029 = vmatprep.subr.bf16.mxu0 %v9077_v20  ;;  %v6513_v57 = vpack.c.bf16 %v4428_v60, %v4427_v26  ;;  %v6532_v26 = vsel %vm256_vm2, %v275_v34, 0.0  ;;  %v277_v60 = vrot.slane %v5983_v25, 1  ;;  %v345_v34 = vpop.permute.xlu0 %344 }
  0xb4   : > { %736 = vmatmul.mubr.f32.gmra.mrb[14].mxu1 %v6400_v37  ;;  %5031 = vmatpush1.bf16.msra.mxu0 %v6461_v52 }
  0xb5   : > { %591 = vmatmul.mubr.f32.gmra.mrb[16].mxu0 %v6476_v5  ;;  %4399 = vmatprep.mubr.msk.f32.mxu1 %vm376_vm0, %v6403_v14  ;;  %v6553_v49 = vsel %vm256_vm2, %v277_v60, %v278_v9 }
  0xb6   : > { %4380 = vmatprep.mubr.msk.f32.mxu0 %vm376_vm0, %v6480_v55  ;;  %5064 = vmatpush1.bf16.msra.mxu1 %v6026_v47  ;;  %v4430_v47 = vld [vmem:[%s9024_s1 + $0x238] sm:$0xff] }
  0xb7   : > { %5065 = vmatprep.subr.bf16.mxu1 %v9077_v20  ;;  %5032 = vmatprep.subr.bf16.mxu0 %v9077_v20  ;;  %v6540_v4 = vpack.c.bf16 %v4430_v47, %v4429_v61  ;;  %v6570_v61 = vsel %vm256_vm2, %v278_v9, 0.0  ;;  %v280_v47 = vrot.slane %v6023_v46, 1 }
  0xb8   : > { %741 = vmatmul.mubr.f32.gmra.mrb[16].mxu1 %v6424_v38  ;;  %5034 = vmatpush1.bf16.msra.mxu0 %v6488_v54 }
  0xb9   : > { %596 = vmatmul.mubr.f32.gmra.mrb[18].mxu0 %v6503_v39  ;;  %4400 = vmatprep.mubr.msk.f32.mxu1 %vm376_vm0, %v6428_v3 }
  0xba   : > { %4381 = vmatprep.mubr.msk.f32.mxu0 %vm376_vm0, %v6507_v6  ;;  %5067 = vmatpush1.bf16.msra.mxu1 %v6058_v2  ;;  %v6549_v2 = vsel %vm376_vm0, %v5966_v13, %v343_v10  ;;  %v6566_v13 = vsel %vm376_vm0, %v5983_v25, %v345_v34  ;;  %v281_v10 = vrot.slane %v6039_v53, 1  ;;  %v349_v25 = vpop.permute.xlu0 %348 }
  0xbb   : > { %5068 = vmatprep.subr.bf16.mxu1 %v9077_v20  ;;  %5035 = vmatprep.subr.bf16.mxu0 %v9077_v20 }
  0xbc   : > { %746 = vmatmul.mubr.f32.gmra.mrb[18].mxu1 %v6451_v18  ;;  %5037 = vmatpush1.bf16.msra.mxu0 %v6513_v57  ;;  %v6602_v60 = vsel %vm256_vm2, %v281_v10, 0.0 }
  0xbd   : > { %601 = vmatmul.mubr.f32.gmra.mrb[20].mxu0 %v6528_v28  ;;  %4401 = vmatprep.mubr.msk.f32.mxu1 %vm376_vm0, %v6455_v42 }
  0xbe   : > { %4382 = vmatprep.mubr.msk.f32.mxu0 %vm376_vm0, %v6532_v26  ;;  %5070 = vmatpush1.bf16.msra.mxu1 %v6092_v33  ;;  %v347_v33 = vpop.permute.xlu1 %346 }
  0xbf   : > { %5071 = vmatprep.subr.bf16.mxu1 %v9077_v20  ;;  %5038 = vmatprep.subr.bf16.mxu0 %v9077_v20  ;;  %v6584_v9 = vsel %vm376_vm0, %v6000_v36, %v347_v33  ;;  %v6599_v36 = vsel %vm376_vm0, %v6023_v46, %v349_v25  ;;  %v1096_v46 = vrot.slane %v6055_v0, 1  ;;  %v1097_v33 = vrot.slane %v6071_v12, 1 }
  0xc0   : > { %751 = vmatmul.mubr.f32.gmra.mrb[20].mxu1 %v6476_v5  ;;  %5040 = vmatpush1.bf16.msra.mxu0 %v6540_v4 }
  0xc1   : > { %606 = vmatmul.mubr.f32.gmra.mrb[22].mxu0 %v6549_v2  ;;  %4402 = vmatprep.mubr.msk.f32.mxu1 %vm376_vm0, %v6480_v55  ;;  %v6637_v25 = vsel %vm256_vm2, %v1097_v33, 0.0 }
  0xc2   : > { %4383 = vmatprep.mubr.msk.f32.mxu0 %vm376_vm0, %v6553_v49  ;;  %5073 = vmatpush1.bf16.msra.mxu1 %v6130_v59  ;;  %v6588_v59 = vsel %vm256_vm2, %v280_v47, %v281_v10  ;;  %v1152_v47 = vpop.permute.xlu0 %1151  ;;  %v6623_v10 = vsel %vm256_vm2, %v1096_v46, %v1097_v33  ;;  %v9084_v33 = vld [vmem:[#allocation8_spill] sm:$0xff] }
  0xc3   : > { %5074 = vmatprep.subr.bf16.mxu1 %v9077_v20  ;;  %5077 = vmatprep.subr.bf16.mxu0 %v9077_v20 }
  0xc4   : > { %756 = vmatmul.mubr.f32.gmra.mrb[22].mxu1 %v6503_v39 }
  0xc5   : > { %611 = vmatmul.mubr.f32.gmra.mrb[24].mxu0 %v6566_v13  ;;  %4403 = vmatprep.mubr.msk.f32.mxu1 %vm376_vm0, %v6507_v6 }
  0xc6   : > { %4384 = vmatprep.mubr.msk.f32.mxu0 %vm376_vm0, %v6570_v61  ;;  %5076 = vmatpush1.bf16.msra.mxu1 %v6166_v43  ;;  %v351_v43 = vpop.permute.xlu1 %350 }
  0xc7   : > { %5113 = vmatprep.subr.bf16.mxu1 %v9077_v20  ;;  %v6612_v34 = vsel %vm376_vm0, %v6039_v53, %v351_v43  ;;  %v6629_v53 = vsel %vm376_vm0, %v6055_v0, %v1152_v47  ;;  %v1100_v43 = vrot.slane %v6108_v44, 1  ;;  %v9085_v47 = vld [vmem:[#allocation9_spill] sm:$0xff] }
  0xc8   : > { %761 = vmatmul.mubr.f32.gmra.mrb[24].mxu1 %v6528_v28 }
  0xc9   : > { %616 = vmatmul.mubr.f32.gmra.mrb[26].mxu0 %v6584_v9  ;;  %4404 = vmatprep.mubr.msk.f32.mxu1 %vm376_vm0, %v6532_v26 }
  0xca   : > { %4385 = vmatprep.mubr.msk.f32.mxu0 %vm376_vm0, %v6588_v59 }
  0xcc   : > { %766 = vmatmul.mubr.f32.gmra.mrb[26].mxu1 %v6549_v2 }
  0xcd   : > { %621 = vmatmul.mubr.f32.gmra.mrb[28].mxu0 %v6599_v36  ;;  %4405 = vmatprep.mubr.msk.f32.mxu1 %vm376_vm0, %v6553_v49 }
  0xce   : > { %4386 = vmatprep.mubr.msk.f32.mxu0 %vm376_vm0, %v6602_v60 }
  0xd0   : > { %771 = vmatmul.mubr.f32.gmra.mrb[28].mxu1 %v6566_v13 }
  0xd1   : > { %626 = vmatmul.mubr.f32.gmra.mrb[30].mxu0 %v6612_v34  ;;  %4406 = vmatprep.mubr.msk.f32.mxu1 %vm376_vm0, %v6570_v61 }
  0xd2   : > { %4431 = vmatprep.mubr.msk.f32.mxu0 %vm376_vm0, %v6297_v35  ;;  %v1154_v35 = vpop.permute.xlu1 %1153 }
  0xd4   : > { %776 = vmatmul.mubr.f32.gmra.mrb[30].mxu1 %v6584_v9 }
  0xd5   : > { %876 = vmatmul.mubr.f32.vlgmr.msra.gmra.mrb[32].mxu0 %v6321_v21  ;;  %4466 = vmatprep.mubr.msk.f32.mxu1 %vm376_vm0, %v6623_v10  ;;  %v1099_v21 = vrot.slane %v6089_v32, 1 }
  0xd6   : > { %5079 = vmatpush1.bf16.msra.mxu0 %v5801_v11  ;;  %4432 = vmatprep.mubr.msk.f32.mxu0 %vm376_vm0, %v6325_v48  ;;  %v6647_v11 = vsel %vm376_vm0, %v6071_v12, %v1154_v35  ;;  %v1156_v48 = vpop.permute.xlu0 %1155  ;;  %v9086_v35 = vld [vmem:[#allocation14_spill] sm:$0xff] }
  0xd7   : > { %5080 = vmatprep.subr.bf16.mxu0 %v9077_v20  ;;  %v6656_v46 = vsel %vm256_vm2, %v1099_v21, %v1100_v43  ;;  %v1114_v21 = vrot.slane %v9086_v35, 1 }
  0xd8   : > { %1324 = vmatmul.mubr.f32.vlgmr.msra.gmra.mrb[32].mxu1 %v6629_v53 }
  0xd9   : > { %5115 = vmatpush1.bf16.msra.mxu1 %v6256_v16  ;;  %881 = vmatmul.mubr.f32.gmra.mrb[34].mxu0 %v6351_v1  ;;  %v6664_v16 = vsel %vm376_vm0, %v6089_v32, %v1156_v48  ;;  %v6671_v1 = vsel %vm256_vm2, %v1100_v43, 0.0  ;;  %v9087_v43 = vld [vmem:[#allocation15_spill] sm:$0xff] }
  0xda   : > { %4467 = vmatprep.mubr.msk.f32.mxu1 %vm376_vm0, %v6637_v25  ;;  %4433 = vmatprep.mubr.msk.f32.mxu0 %vm376_vm0, %v6355_v45  ;;  %v1102_v45 = vrot.slane %v6127_v58, 1  ;;  %v1115_v48 = vrot.slane %v9087_v43, 1 }
  0xdb   : > { %5082 = vmatpush1.bf16.msra.mxu0 %v5827_v17  ;;  %5116 = vmatprep.subr.bf16.mxu1 %v9077_v20  ;;  %v1158_v17 = vpop.permute.xlu1 %1157 }
  0xdc   : > { %1329 = vmatmul.mubr.f32.gmra.mrb[34].mxu1 %v6647_v11  ;;  %5083 = vmatprep.subr.bf16.mxu0 %v9077_v20  ;;  %v6684_v32 = vsel %vm376_vm0, %v6108_v44, %v1158_v17 }
  0xdd   : > { %886 = vmatmul.mubr.f32.gmra.mrb[36].mxu0 %v6374_v51  ;;  %5118 = vmatpush1.bf16.msra.mxu1 %v6275_v63  ;;  %v1103_v51 = vrot.slane %v6146_v8, 1 }
  0xde   : > { %4468 = vmatprep.mubr.msk.f32.mxu1 %vm376_vm0, %v6656_v46  ;;  %4434 = vmatprep.mubr.msk.f32.mxu0 %vm376_vm0, %v6378_v24  ;;  %v1105_v24 = vrot.slane %v6163_v40, 1 }
  0xdf   : > { %5085 = vmatpush1.bf16.msra.mxu0 %v5858_v30  ;;  %5119 = vmatprep.subr.bf16.mxu1 %v9077_v20  ;;  %v1160_v30 = vpop.permute.xlu0 %1159  ;;  %v6690_v63 = vsel %vm256_vm2, %v1102_v45, %v1103_v51 }
  0xe0   : > { %1334 = vmatmul.mubr.f32.gmra.mrb[36].mxu1 %v6664_v16  ;;  %5086 = vmatprep.subr.bf16.mxu0 %v9077_v20  ;;  %v6701_v44 = vsel %vm376_vm0, %v6127_v58, %v1160_v30  ;;  %v9090_v30 = vld [vmem:[#allocation16_spill] sm:$0xff] }
  0xe1   : > { %891 = vmatmul.mubr.f32.gmra.mrb[38].mxu0 %v6400_v37  ;;  %4469 = vmatprep.mubr.msk.f32.mxu1 %vm376_vm0, %v6671_v1  ;;  %v1106_v37 = vrot.slane %v6173_v31, 1 }
  0xe2   : > { %5121 = vmatpush1.bf16.msra.mxu1 %v6306_v23  ;;  %4435 = vmatprep.mubr.msk.f32.mxu0 %vm376_vm0, %v6403_v14  ;;  %v6707_v23 = vsel %vm256_vm2, %v1103_v51, 0.0  ;;  %v1108_v14 = vrot.slane %v6183_v50, 1  ;;  %v9089_v51 = vld [vmem:[#allocation11_spill] sm:$0xff] }
  0xe3   : > { %5088 = vmatpush1.bf16.msra.mxu0 %v5921_v56  ;;  %5122 = vmatprep.subr.bf16.mxu1 %v9077_v20  ;;  %v1162_v56 = vpop.permute.xlu1 %1161 }
  0xe4   : > { %1339 = vmatmul.mubr.f32.gmra.mrb[38].mxu1 %v6684_v32  ;;  %5089 = vmatprep.subr.bf16.mxu0 %v9077_v20  ;;  %v6720_v58 = vsel %vm376_vm0, %v6146_v8, %v1162_v56  ;;  %v1117_v56 = vrot.slane %v9090_v30, 1 }
  0xe5   : > { %896 = vmatmul.mubr.f32.gmra.mrb[40].mxu0 %v6424_v38  ;;  %4470 = vmatprep.mubr.msk.f32.mxu1 %vm376_vm0, %v6690_v63  ;;  %v1109_v38 = vrot.slane %v6191_v19, 1 }
  0xe6   : > { %4436 = vmatprep.mubr.msk.f32.mxu0 %vm376_vm0, %v6428_v3  ;;  %5124 = vmatpush1.bf16.msra.mxu1 %v6335_v22  ;;  %v1164_v22 = vpop.permute.xlu0 %1163  ;;  %v9080_v3 = vld [vmem:[#allocation6_spill] sm:$0xff] }
  0xe7   : > { %5091 = vmatpush1.bf16.msra.mxu0 %v5937_v62  ;;  %5125 = vmatprep.subr.bf16.mxu1 %v9077_v20  ;;  %v6726_v62 = vsel %vm256_vm2, %v1105_v24, %v1106_v37  ;;  %v6737_v8 = vsel %vm376_vm0, %v6163_v40, %v1164_v22  ;;  %v9091_v24 = vld [vmem:[#allocation17_spill] sm:$0xff] }
  0xe8   : > { %1344 = vmatmul.mubr.f32.gmra.mrb[40].mxu1 %v6701_v44  ;;  %5092 = vmatprep.subr.bf16.mxu0 %v9077_v20 }
  0xe9   : > { %901 = vmatmul.mubr.f32.gmra.mrb[42].mxu0 %v6451_v18  ;;  %4471 = vmatprep.mubr.msk.f32.mxu1 %vm376_vm0, %v6707_v23  ;;  %v6761_v18 = vsel %vm256_vm2, %v1108_v14, %v1109_v38 }
  0xea   : > { %4437 = vmatprep.mubr.msk.f32.mxu0 %vm376_vm0, %v6455_v42  ;;  %5127 = vmatpush1.bf16.msra.mxu1 %v6359_v7  ;;  %v1166_v7 = vpop.permute.xlu1 %1165  ;;  %v9081_v42 = vld [vmem:[#allocation7_spill] sm:$0xff] }
  0xeb   : > { %5094 = vmatpush1.bf16.msra.mxu0 %v5969_v15  ;;  %5128 = vmatprep.subr.bf16.mxu1 %v9077_v20  ;;  %v6742_v15 = vsel %vm256_vm2, %v1106_v37, 0.0  ;;  %v6756_v40 = vsel %vm376_vm0, %v6173_v31, %v1166_v7  ;;  %v1118_v37 = vrot.slane %v9091_v24, 1 }
  0xec   : > { %1349 = vmatmul.mubr.f32.gmra.mrb[42].mxu1 %v6720_v58  ;;  %5095 = vmatprep.subr.bf16.mxu0 %v9077_v20 }
  0xed   : > { %906 = vmatmul.mubr.f32.gmra.mrb[44].mxu0 %v6476_v5  ;;  %4472 = vmatprep.mubr.msk.f32.mxu1 %vm376_vm0, %v6726_v62  ;;  %v6778_v5 = vsel %vm256_vm2, %v1109_v38, 0.0  ;;  %v6869_v14 = vsel %vm256_vm2, %v1117_v56, %v1118_v37  ;;  %v4541_v56 = vld [vmem:[%s9024_s1 + $0x2f8] sm:$0xff] }
  0xee   : > { %4438 = vmatprep.mubr.msk.f32.mxu0 %vm376_vm0, %v6480_v55  ;;  %5130 = vmatpush1.bf16.msra.mxu1 %v6384_v29  ;;  %v1168_v29 = vpop.permute.xlu0 %1167  ;;  %v9082_v55 = vld [vmem:[#allocation12_spill] sm:$0xff] }
  0xef   : > { %5097 = vmatpush1.bf16.msra.mxu0 %v9080_v3  ;;  %5131 = vmatprep.subr.bf16.mxu1 %v9077_v20  ;;  %v6773_v31 = vsel %vm376_vm0, %v6183_v50, %v1168_v29  ;;  %v6883_v3 = vsel %vm256_vm2, %v1118_v37, 0.0 }
  0xf0   : > { %1354 = vmatmul.mubr.f32.gmra.mrb[44].mxu1 %v6737_v8  ;;  %5098 = vmatprep.subr.bf16.mxu0 %v9077_v20 }
  0xf1   : > { %911 = vmatmul.mubr.f32.gmra.mrb[46].mxu0 %v6503_v39  ;;  %4473 = vmatprep.mubr.msk.f32.mxu1 %vm376_vm0, %v6742_v15  ;;  %v1111_v39 = vrot.slane %v9082_v55, 1 }
  0xf2   : > { %4439 = vmatprep.mubr.msk.f32.mxu0 %vm376_vm0, %v6507_v6  ;;  %5133 = vmatpush1.bf16.msra.mxu1 %v6409_v27  ;;  %v1170_v27 = vpop.permute.xlu1 %1169  ;;  %v9083_v6 = vld [vmem:[#allocation13_spill] sm:$0xff] }
  0xf3   : > { %5100 = vmatpush1.bf16.msra.mxu0 %v9081_v42  ;;  %5134 = vmatprep.subr.bf16.mxu1 %v9077_v20  ;;  %v6792_v50 = vsel %vm376_vm0, %v6191_v19, %v1170_v27  ;;  %v5635_v27 = vld [vmem:[%s5820_s28 + $0x70] sm:$0xff] }
  0xf4   : > { %1359 = vmatmul.mubr.f32.gmra.mrb[46].mxu1 %v6756_v40  ;;  %5101 = vmatprep.subr.bf16.mxu0 %v9077_v20 }
  0xf5   : > { %916 = vmatmul.mubr.f32.gmra.mrb[48].mxu0 %v6528_v28  ;;  %4474 = vmatprep.mubr.msk.f32.mxu1 %vm376_vm0, %v6761_v18  ;;  %v1112_v28 = vrot.slane %v9083_v6, 1 }
  0xf6   : > { %4440 = vmatprep.mubr.msk.f32.mxu0 %vm376_vm0, %v6532_v26  ;;  %5136 = vmatpush1.bf16.msra.mxu1 %v6436_v41  ;;  %v1172_v41 = vpop.permute.xlu0 %1171 }
  0xf7   : > { %5103 = vmatpush1.bf16.msra.mxu0 %v9084_v33  ;;  %5137 = vmatprep.subr.bf16.mxu1 %v9077_v20  ;;  %v6797_v26 = vsel %vm256_vm2, %v1111_v39, %v1112_v28  ;;  %v6809_v19 = vsel %vm376_vm0, %v9082_v55, %v1172_v41  ;;  %v4518_v39 = vld [vmem:[%s9024_s1 + $0x240] sm:$0xff]  ;;  %v4520_v41 = vld [vmem:[%s9024_s1 + $0x250] sm:$0xff] }
  0xf8   : > { %1364 = vmatmul.mubr.f32.gmra.mrb[48].mxu1 %v6773_v31  ;;  %5104 = vmatprep.subr.bf16.mxu0 %v9077_v20 }
  0xf9   : > { %921 = vmatmul.mubr.f32.gmra.mrb[50].mxu0 %v6549_v2  ;;  %4475 = vmatprep.mubr.msk.f32.mxu1 %vm376_vm0, %v6778_v5  ;;  %v1174_v2 = vpop.permute.xlu1 %1173 }
  0xfa   : > { %4441 = vmatprep.mubr.msk.f32.mxu0 %vm376_vm0, %v6553_v49  ;;  %5139 = vmatpush1.bf16.msra.mxu1 %v6461_v52  ;;  %v1176_v49 = vpop.permute.xlu0 %1175  ;;  %v6814_v52 = vsel %vm256_vm2, %v1112_v28, 0.0  ;;  %v5636_v28 = vld [vmem:[%s5820_s28 + $0x78] sm:$0xff]  ;;  %s4932_s28 = sshll.u32 %s5748_s16, 10  ;;  %s5637_s16 = scalar_lea.vmem %s8976_s8, 1024 }
  0xfb   : > { %5106 = vmatpush1.bf16.msra.mxu0 %v9085_v47  ;;  %5140 = vmatprep.subr.bf16.mxu1 %v9077_v20  ;;  %v4521_v47 = vld [vmem:[%s9024_s1 + $0x258] sm:$0xff]  ;;  %s8974_s11 = scalar_lea.hbm %s9026_s3, %s4932_s28  ;;  %p5638_p11 = scmp.ne.s32.totalorder %s8976_s8, %s5637_s16 }
  0xfc   : > { %1369 = vmatmul.mubr.f32.gmra.mrb[50].mxu1 %v6792_v50  ;;  %5107 = vmatprep.subr.bf16.mxu0 %v9077_v20 }
  0xfd   : > { %926 = vmatmul.mubr.f32.gmra.mrb[52].mxu0 %v6566_v13  ;;  %4476 = vmatprep.mubr.msk.f32.mxu1 %vm376_vm0, %v6797_v26  ;;  %v9088_v13 = vld [vmem:[#allocation10_spill] sm:$0xff]  ;;  %v1178_v17 = vpop.permute.xlu1 %1177  ;;  %p5639_p12 = pnand %p5638_p11, %p5765_p5 }
  0xfe   : > { %4442 = vmatprep.mubr.msk.f32.mxu0 %vm376_vm0, %v6570_v61  ;;  %5142 = vmatpush1.bf16.msra.mxu1 %v6488_v54  ;;  %v6828_v61 = vsel %vm376_vm0, %v9083_v6, %v1174_v2  ;;  %v6833_v54 = vsel %vm256_vm2, %v1114_v21, %v1115_v48  ;;  %v353_v45 = vpop.permute.xlu0 %352  ;;  %v6862_v22 = vsel %vm376_vm0, %v9087_v43, %v1178_v17  ;;  %v4519_v6 = vld [vmem:[%s9024_s1 + $0x248] sm:$0xff]  ;;  %v4522_v2 = vld [vmem:[%s9024_s1 + $0x260] sm:$0xff]  ;;  %v4525_v21 = vld [vmem:[%s9024_s1 + $0x278] sm:$0xff] }
  0xff   : > { %5109 = vmatpush1.bf16.msra.mxu0 %v9088_v13  ;;  %5143 = vmatprep.subr.bf16.mxu1 %v9077_v20  ;;  %v5186_v33 = vpack.c.bf16 %v4519_v6, %v4518_v39  ;;  %v4527_v43 = vld [vmem:[%s9024_s1 + $0x288] sm:$0xff]  ;;  %v4533_v17 = vld [vmem:[%s9024_s1 + $0x2b8] sm:$0xff]  ;;  %p5640_p13 = pneg %p5639_p12 }
 0x100   : > { %1374 = vmatmul.mubr.f32.gmra.mrb[52].mxu1 %v6809_v19  ;;  %5110 = vmatprep.subr.bf16.mxu0 %v9077_v20  ;;  %v4531_v13 = vld [vmem:[%s9024_s1 + $0x2a8] sm:$0xff] }
 0x101   : > { %931 = vmatmul.mubr.f32.gmra.mrb[54].mxu0 %v6584_v9  ;;  %4477 = vmatprep.mubr.msk.f32.mxu1 %vm376_vm0, %v6814_v52  ;;  %v6845_v9 = vsel %vm376_vm0, %v9086_v35, %v1176_v49  ;;  %v4523_v49 = vld [vmem:[%s9024_s1 + $0x268] sm:$0xff]  ;;  %v4524_v35 = vld [vmem:[%s9024_s1 + $0x270] sm:$0xff] }
 0x102   : > { %4443 = vmatprep.mubr.msk.f32.mxu0 %vm376_vm0, %v6588_v59  ;;  %5145 = vmatpush1.bf16.msra.mxu1 %v6513_v57  ;;  %v6850_v57 = vsel %vm256_vm2, %v1115_v48, 0.0  ;;  %v355_v7 = vpop.permute.xlu0 %354  ;;  %v4529_v48 = vld [vmem:[%s9024_s1 + $0x298] sm:$0xff] }
 0x103   : > { %5112 = vmatpush1.bf16.msra.mxu0 %v9089_v51  ;;  %5146 = vmatprep.subr.bf16.mxu1 %v9077_v20  ;;  %v4537_v51 = vld [vmem:[%s9024_s1 + $0x2d8] sm:$0xff] }
 0x104   : > { %1379 = vmatmul.mubr.f32.gmra.mrb[54].mxu1 %v6828_v61  ;;  %5149 = vmatprep.subr.bf16.mxu0 %v9077_v20 }
 0x105   : > { %936 = vmatmul.mubr.f32.gmra.mrb[56].mxu0 %v6599_v36  ;;  %4478 = vmatprep.mubr.msk.f32.mxu1 %vm376_vm0, %v6833_v54  ;;  %v1180_v36 = vpop.permute.xlu1 %1179 }
 0x106   : > { %4444 = vmatprep.mubr.msk.f32.mxu0 %vm376_vm0, %v6602_v60  ;;  %5148 = vmatpush1.bf16.msra.mxu1 %v6540_v4  ;;  %v395_v4 = vsel %vm376_vm0, %v6055_v0, %v353_v45  ;;  %v396_v0 = vsel %vm376_vm0, %v6071_v12, %v355_v7  ;;  %v1148_v29 = vpop.permute.xlu0 %1147  ;;  %v4535_v45 = vld [vmem:[%s9024_s1 + $0x2c8] sm:$0xff] }
 0x107   : > { %5185 = vmatprep.subr.bf16.mxu1 %v9077_v20  ;;  %v1201_v55 = vsel %vm376_vm0, %v5635_v27, %v1148_v29 }
 0x108   : > { %1384 = vmatmul.mubr.f32.gmra.mrb[56].mxu1 %v6845_v9 }
 0x109   : > { %941 = vmatmul.mubr.f32.gmra.mrb[58].mxu0 %v6612_v34  ;;  %4479 = vmatprep.mubr.msk.f32.mxu1 %vm376_vm0, %v6850_v57  ;;  %v6876_v34 = vsel %vm376_vm0, %v9090_v30, %v1180_v36  ;;  %v1182_v38 = vpop.permute.xlu1 %1181  ;;  %v4539_v30 = vld [vmem:[%s9024_s1 + $0x2e8] sm:$0xff] }
 0x10a   : > { %4445 = vmatprep.mubr.msk.f32.mxu0 %vm376_vm0, %v6623_v10  ;;  %v6890_v42 = vsel %vm376_vm0, %v9091_v24, %v1182_v38 }
 0x10c   : > { %1389 = vmatmul.mubr.f32.gmra.mrb[58].mxu1 %v6862_v22 }
 0x10d   : > { %946 = vmatmul.mubr.f32.gmra.mrb[60].mxu0 %v395_v4  ;;  %4480 = vmatprep.mubr.msk.f32.mxu1 %vm376_vm0, %v6869_v14  ;;  %v1150_v12 = vpop.permute.xlu1 %1149 }
 0x10e   : > { %4446 = vmatprep.mubr.msk.f32.mxu0 %vm376_vm0, %v6637_v25 }
 0x110   : > { %1394 = vmatmul.mubr.f32.gmra.mrb[60].mxu1 %v6876_v34 }
 0x111   : > { %951 = vmatmul.mubr.f32.gmra.mrb[62].mxu0 %v396_v0  ;;  %4481 = vmatprep.mubr.msk.f32.mxu1 %vm376_vm0, %v6883_v3 }
 0x112   : > { %4482 = vmatprep.mubr.msk.f32.mxu0 %vm376_vm0, %v6588_v59  ;;  %v1202_v59 = vsel %vm376_vm0, %v5636_v28, %v1150_v12 }
 0x114   : > { %1399 = vmatmul.mubr.f32.gmra.mrb[62].mxu1 %v6890_v42 }
 0x115   : > { %1474 = vmatmul.mubr.f32.vlgmr.msra.gmra.mrb[64].mxu0 %v1201_v55  ;;  %4498 = vmatprep.mubr.msk.f32.mxu1 %vm376_vm0, %v6656_v46 }
 0x116   : > { %4483 = vmatprep.mubr.msk.f32.mxu0 %vm376_vm0, %v6602_v60  ;;  %v5189_v60 = vpack.c.bf16 %v4521_v47, %v4520_v41 }
 0x118   : > { %1619 = vmatmul.mubr.f32.vlgmr.msra.gmra.mrb[64].mxu1 %v6664_v16 }
 0x119   : > { %1479 = vmatmul.mubr.f32.gmra.mrb[66].mxu0 %v1202_v59  ;;  %4499 = vmatprep.mubr.msk.f32.mxu1 %vm376_vm0, %v6671_v1 }
 0x11a   : > { %4484 = vmatprep.mubr.msk.f32.mxu0 %vm376_vm0, %v6623_v10  ;;  %5187 = vmatpush1.bf16.msra.mxu1 %v5186_v33  ;;  %v5192_v10 = vpack.c.bf16 %v4523_v49, %v4522_v2 }
 0x11b   : > { %5188 = vmatprep.subr.bf16.mxu1 %v9077_v20 }
 0x11c   : > { %1624 = vmatmul.mubr.f32.gmra.mrb[66].mxu1 %v6684_v32 }
 0x11d   : > { %1484 = vmatmul.mubr.f32.gmra.mrb[68].mxu0 %v6629_v53  ;;  %4500 = vmatprep.mubr.msk.f32.mxu1 %vm376_vm0, %v6690_v63  ;;  %v5195_v53 = vpack.c.bf16 %v4525_v21, %v4524_v35 }
 0x11e   : > { %4485 = vmatprep.mubr.msk.f32.mxu0 %vm376_vm0, %v6637_v25  ;;  %5190 = vmatpush1.bf16.msra.mxu1 %v5189_v60  ;;  %v4526_v25 = vld [vmem:[%s9024_s1 + $0x280] sm:$0xff] }
 0x11f   : > { %5191 = vmatprep.subr.bf16.mxu1 %v9077_v20 }
 0x120   : > { %1629 = vmatmul.mubr.f32.gmra.mrb[68].mxu1 %v6701_v44 }
 0x121   : > { %1489 = vmatmul.mubr.f32.gmra.mrb[70].mxu0 %v6647_v11  ;;  %4501 = vmatprep.mubr.msk.f32.mxu1 %vm376_vm0, %v6707_v23  ;;  %v5198_v11 = vpack.c.bf16 %v4527_v43, %v4526_v25 }
 0x122   : > { %4486 = vmatprep.mubr.msk.f32.mxu0 %vm376_vm0, %v6656_v46  ;;  %5193 = vmatpush1.bf16.msra.mxu1 %v5192_v10  ;;  %v4528_v46 = vld [vmem:[%s9024_s1 + $0x290] sm:$0xff] }
 0x123   : > { %5194 = vmatprep.subr.bf16.mxu1 %v9077_v20 }
 0x124   : > { %1634 = vmatmul.mubr.f32.gmra.mrb[70].mxu1 %v6720_v58 }
 0x125   : > { %1494 = vmatmul.mubr.f32.gmra.mrb[72].mxu0 %v6664_v16  ;;  %4502 = vmatprep.mubr.msk.f32.mxu1 %vm376_vm0, %v6726_v62  ;;  %v5201_v16 = vpack.c.bf16 %v4529_v48, %v4528_v46 }
 0x126   : > { %4487 = vmatprep.mubr.msk.f32.mxu0 %vm376_vm0, %v6671_v1  ;;  %5196 = vmatpush1.bf16.msra.mxu1 %v5195_v53  ;;  %v4530_v1 = vld [vmem:[%s9024_s1 + $0x2a0] sm:$0xff] }
 0x127   : > { %5197 = vmatprep.subr.bf16.mxu1 %v9077_v20 }
 0x128   : > { %1639 = vmatmul.mubr.f32.gmra.mrb[72].mxu1 %v6737_v8 }
 0x129   : > { %1499 = vmatmul.mubr.f32.gmra.mrb[74].mxu0 %v6684_v32  ;;  %4503 = vmatprep.mubr.msk.f32.mxu1 %vm376_vm0, %v6742_v15  ;;  %v5204_v32 = vpack.c.bf16 %v4531_v13, %v4530_v1 }
 0x12a   : > { %4488 = vmatprep.mubr.msk.f32.mxu0 %vm376_vm0, %v6690_v63  ;;  %5199 = vmatpush1.bf16.msra.mxu1 %v5198_v11  ;;  %v4532_v63 = vld [vmem:[%s9024_s1 + $0x2b0] sm:$0xff] }
 0x12b   : > { %5200 = vmatprep.subr.bf16.mxu1 %v9077_v20 }
 0x12c   : > { %1644 = vmatmul.mubr.f32.gmra.mrb[74].mxu1 %v6756_v40 }
 0x12d   : > { %1504 = vmatmul.mubr.f32.gmra.mrb[76].mxu0 %v6701_v44  ;;  %4504 = vmatprep.mubr.msk.f32.mxu1 %vm376_vm0, %v6761_v18  ;;  %v5207_v44 = vpack.c.bf16 %v4533_v17, %v4532_v63 }
 0x12e   : > { %4489 = vmatprep.mubr.msk.f32.mxu0 %vm376_vm0, %v6707_v23  ;;  %5202 = vmatpush1.bf16.msra.mxu1 %v5201_v16  ;;  %v4534_v23 = vld [vmem:[%s9024_s1 + $0x2c0] sm:$0xff] }
 0x12f   : > { %5203 = vmatprep.subr.bf16.mxu1 %v9077_v20 }
 0x130   : > { %1649 = vmatmul.mubr.f32.gmra.mrb[76].mxu1 %v6773_v31 }
 0x131   : > { %1509 = vmatmul.mubr.f32.gmra.mrb[78].mxu0 %v6720_v58  ;;  %4505 = vmatprep.mubr.msk.f32.mxu1 %vm376_vm0, %v6778_v5  ;;  %v5210_v58 = vpack.c.bf16 %v4535_v45, %v4534_v23 }
 0x132   : > { %4490 = vmatprep.mubr.msk.f32.mxu0 %vm376_vm0, %v6726_v62  ;;  %5205 = vmatpush1.bf16.msra.mxu1 %v5204_v32  ;;  %v4536_v62 = vld [vmem:[%s9024_s1 + $0x2d0] sm:$0xff] }
 0x133   : > { %5206 = vmatprep.subr.bf16.mxu1 %v9077_v20 }
 0x134   : > { %1654 = vmatmul.mubr.f32.gmra.mrb[78].mxu1 %v6792_v50 }
 0x135   : > { %1514 = vmatmul.mubr.f32.gmra.mrb[80].mxu0 %v6737_v8  ;;  %4506 = vmatprep.mubr.msk.f32.mxu1 %vm376_vm0, %v6797_v26  ;;  %v5213_v8 = vpack.c.bf16 %v4537_v51, %v4536_v62 }
 0x136   : > { %4491 = vmatprep.mubr.msk.f32.mxu0 %vm376_vm0, %v6742_v15  ;;  %5208 = vmatpush1.bf16.msra.mxu1 %v5207_v44  ;;  %v4538_v15 = vld [vmem:[%s9024_s1 + $0x2e0] sm:$0xff] }
 0x137   : > { %5209 = vmatprep.subr.bf16.mxu1 %v9077_v20 }
 0x138   : > { %1659 = vmatmul.mubr.f32.gmra.mrb[80].mxu1 %v6809_v19 }
 0x139   : > { %1519 = vmatmul.mubr.f32.gmra.mrb[82].mxu0 %v6756_v40  ;;  %4507 = vmatprep.mubr.msk.f32.mxu1 %vm376_vm0, %v6814_v52  ;;  %v5216_v40 = vpack.c.bf16 %v4539_v30, %v4538_v15  ;;  %v4542_v30 = vld [vmem:[%s9024_s1 + $0x300] sm:$0xff] }
 0x13a   : > { %4492 = vmatprep.mubr.msk.f32.mxu0 %vm376_vm0, %v6761_v18  ;;  %5211 = vmatpush1.bf16.msra.mxu1 %v5210_v58  ;;  %v4540_v18 = vld [vmem:[%s9024_s1 + $0x2f0] sm:$0xff] }
 0x13b   : > { %5212 = vmatprep.subr.bf16.mxu1 %v9077_v20 }
 0x13c   : > { %1664 = vmatmul.mubr.f32.gmra.mrb[82].mxu1 %v6828_v61 }
 0x13d   : > { %1524 = vmatmul.mubr.f32.gmra.mrb[84].mxu0 %v6773_v31  ;;  %4508 = vmatprep.mubr.msk.f32.mxu1 %vm376_vm0, %v6833_v54  ;;  %v5219_v31 = vpack.c.bf16 %v4541_v56, %v4540_v18 }
 0x13e   : > { %4493 = vmatprep.mubr.msk.f32.mxu0 %vm376_vm0, %v6778_v5  ;;  %5214 = vmatpush1.bf16.msra.mxu1 %v5213_v8  ;;  %v9092_v5 = vld [vmem:[#allocation5_spill] sm:$0xff] }
 0x13f   : > { %5215 = vmatprep.subr.bf16.mxu1 %v9077_v20 }
 0x140   : > { %1669 = vmatmul.mubr.f32.gmra.mrb[84].mxu1 %v6845_v9 }
 0x141   : > { %1529 = vmatmul.mubr.f32.gmra.mrb[86].mxu0 %v6792_v50  ;;  %4509 = vmatprep.mubr.msk.f32.mxu1 %vm376_vm0, %v6850_v57  ;;  %v9093_v50 = vld [vmem:[#allocation20_spill] sm:$0xff] }
 0x142   : > { %4494 = vmatprep.mubr.msk.f32.mxu0 %vm376_vm0, %v6797_v26  ;;  %5217 = vmatpush1.bf16.msra.mxu1 %v5216_v40  ;;  %v4543_v40 = vld [vmem:[%s9024_s1 + $0x308] sm:$0xff] }
 0x143   : > { %5218 = vmatprep.subr.bf16.mxu1 %v9077_v20  ;;  %v5150_v56 = vpack.c.bf16 %v4543_v40, %v4542_v30  ;;  %v4555_v30 = vld [vmem:[%s9024_s1 + $0x368] sm:$0xff] }
 0x144   : > { %1674 = vmatmul.mubr.f32.gmra.mrb[86].mxu1 %v6862_v22 }
 0x145   : > { %1534 = vmatmul.mubr.f32.gmra.mrb[88].mxu0 %v6809_v19  ;;  %4510 = vmatprep.mubr.msk.f32.mxu1 %vm376_vm0, %v6869_v14  ;;  %v9095_v19 = vld [vmem:[#allocation21_spill] sm:$0xff] }
 0x146   : > { %4495 = vmatprep.mubr.msk.f32.mxu0 %vm376_vm0, %v6814_v52  ;;  %5220 = vmatpush1.bf16.msra.mxu1 %v5219_v31  ;;  %v9096_v52 = vld [vmem:[#allocation18_spill] sm:$0xff] }
 0x147   : > { %5257 = vmatprep.subr.bf16.mxu1 %v9077_v20  ;;  %5151 = vmatpush1.bf16.msra.mxu0 %v5150_v56 }
 0x148   : > { %1679 = vmatmul.mubr.f32.gmra.mrb[88].mxu1 %v6876_v34  ;;  %5152 = vmatprep.subr.bf16.mxu0 %v9077_v20 }
 0x149   : > { %1539 = vmatmul.mubr.f32.gmra.mrb[90].mxu0 %v6828_v61  ;;  %4511 = vmatprep.mubr.msk.f32.mxu1 %vm376_vm0, %v6883_v3  ;;  %v9097_v61 = vunpack.i.l.bf16 %v9096_v52 }
 0x14a   : > { %4496 = vmatprep.mubr.msk.f32.mxu0 %vm376_vm0, %v6833_v54 }
 0x14c   : > { %1684 = vmatmul.mubr.f32.gmra.mrb[90].mxu1 %v6890_v42 }
 0x14d   : > { %1544 = vmatmul.mubr.f32.gmra.mrb[92].mxu0 %v6845_v9  ;;  %4512 = vmatprep.mubr.msk.f32.mxu1 %vm376_vm0, %v9092_v5 }
 0x14e   : > { %4497 = vmatprep.mubr.msk.f32.mxu0 %vm376_vm0, %v6850_v57 }
 0x150   : > { %4514 = vmatmul.mubr.msk.f32.gmra.mrb[92].mxu1 %vm6278_vm3, %v9093_v50 }
 0x151   : > { %1549 = vmatmul.mubr.f32.gmra.mrb[94].mxu0 %v6862_v22  ;;  %4515 = vmatprep.mubr.msk.f32.mxu1 %vm376_vm0, %v9095_v19 }
 0x154   : > { %4517 = vmatmul.mubr.msk.f32.gmra.mrb[94].mxu1 %vm6278_vm3, %v9097_v61 }
 0x155   : > { %4574 = vmatprep.mubr.msk.f32.mxu1 %vm376_vm0, %v9095_v19 }
 0x158   : > { %4576 = vmatmul.mubr.msk.f32.vlgmr.msra.gmra.mrb[96].mxu1 %vm6278_vm3, %v9093_v50 }
 0x166   : > { %v552_v54 = vpop.f32.mrb[0].mxu0 }
 0x167   : > { %v554_v9 = vpop.f32.mrb[1].mxu0 }
 0x168   : > { %v4545_v9 = vld [vmem:[%s9024_s1 + $0x318] sm:$0xff] }
 0x16b   : > { %v702_v57 = vpop.f32.mrb[0].mxu1 }
 0x16c   : > { %v7085_v24 = vadd.f32 %v702_v57, %v552_v54  ;;  %v557_v37 = vpop.f32.mrb[2].mxu0  ;;  %v704_v36 = vpop.f32.mrb[1].mxu1  ;;  %v4544_v54 = vld [vmem:[%s9024_s1 + $0x310] sm:$0xff] }
 0x16d   : > { %v559_v22 = vpop.f32.mrb[3].mxu0 }
 0x16f   : > { %v707_v7 = vpop.f32.mrb[2].mxu1 }
 0x170   : > { %v7087_v4 = vadd.f32 %v707_v7, %v557_v37  ;;  %v562_v14 = vpop.f32.mrb[4].mxu0  ;;  %v709_v34 = vpop.f32.mrb[3].mxu1  ;;  %v5153_v37 = vpack.c.bf16 %v4545_v9, %v4544_v54  ;;  %v4556_v54 = vld [vmem:[%s9024_s1 + $0x370] sm:$0xff]  ;;  %v4557_v9 = vld [vmem:[%s9024_s1 + $0x378] sm:$0xff] }
 0x171   : > { %v564_v38 = vpop.f32.mrb[5].mxu0  ;;  %v4546_v34 = vld [vmem:[%s9024_s1 + $0x320] sm:$0xff] }
 0x172   : > { %5154 = vmatpush1.bf16.msra.mxu0 %v5153_v37  ;;  %v4547_v38 = vld [vmem:[%s9024_s1 + $0x328] sm:$0xff] }
 0x173   : > { %v712_v0 = vpop.f32.mrb[4].mxu1  ;;  %5155 = vmatprep.subr.bf16.mxu0 %v9077_v20 }
 0x174   : > { %v7089_v3 = vadd.f32 %v712_v0, %v562_v14  ;;  %v567_v29 = vpop.f32.mrb[6].mxu0  ;;  %v714_v42 = vpop.f32.mrb[5].mxu1 }
 0x175   : > { %v569_v27 = vpop.f32.mrb[7].mxu0 }
 0x177   : > { %v717_v55 = vpop.f32.mrb[6].mxu1 }
 0x178   : > { %v7091_v12 = vadd.f32 %v717_v55, %v567_v29  ;;  %v572_v39 = vpop.f32.mrb[8].mxu0  ;;  %v719_v6 = vpop.f32.mrb[7].mxu1  ;;  %v5156_v29 = vpack.c.bf16 %v4547_v38, %v4546_v34  ;;  %v4558_v38 = vld [vmem:[%s9024_s1 + $0x380] sm:$0xff] }
 0x179   : > { %v574_v28 = vpop.f32.mrb[9].mxu0  ;;  %v4548_v6 = vld [vmem:[%s9024_s1 + $0x330] sm:$0xff] }
 0x17a   : > { %5157 = vmatpush1.bf16.msra.mxu0 %v5156_v29  ;;  %v4549_v28 = vld [vmem:[%s9024_s1 + $0x338] sm:$0xff] }
 0x17b   : > { %v722_v59 = vpop.f32.mrb[8].mxu1  ;;  %5158 = vmatprep.subr.bf16.mxu0 %v9077_v20 }
 0x17c   : > { %v7093_v33 = vadd.f32 %v722_v59, %v572_v39  ;;  %v577_v41 = vpop.f32.mrb[10].mxu0  ;;  %v724_v47 = vpop.f32.mrb[9].mxu1 }
 0x17d   : > { %v579_v60 = vpop.f32.mrb[11].mxu0 }
 0x17f   : > { %v727_v2 = vpop.f32.mrb[10].mxu1 }
 0x180   : > { %v7095_v49 = vadd.f32 %v727_v2, %v577_v41  ;;  %v582_v10 = vpop.f32.mrb[12].mxu0  ;;  %v729_v35 = vpop.f32.mrb[11].mxu1  ;;  %v5159_v41 = vpack.c.bf16 %v4549_v28, %v4548_v6 }
 0x181   : > { %v584_v21 = vpop.f32.mrb[13].mxu0  ;;  %v4550_v35 = vld [vmem:[%s9024_s1 + $0x340] sm:$0xff] }
 0x182   : > { %5160 = vmatpush1.bf16.msra.mxu0 %v5159_v41  ;;  %v4551_v21 = vld [vmem:[%s9024_s1 + $0x348] sm:$0xff] }
 0x183   : > { %v732_v53 = vpop.f32.mrb[12].mxu1  ;;  %5161 = vmatprep.subr.bf16.mxu0 %v9077_v20 }
 0x184   : > { %v7097_v25 = vadd.f32 %v732_v53, %v582_v10  ;;  %v587_v43 = vpop.f32.mrb[14].mxu0  ;;  %v734_v11 = vpop.f32.mrb[13].mxu1 }
 0x185   : > { %v589_v46 = vpop.f32.mrb[15].mxu0 }
 0x187   : > { %v737_v48 = vpop.f32.mrb[14].mxu1 }
 0x188   : > { %v7099_v16 = vadd.f32 %v737_v48, %v587_v43  ;;  %v592_v1 = vpop.f32.mrb[16].mxu0  ;;  %v739_v13 = vpop.f32.mrb[15].mxu1  ;;  %v5162_v43 = vpack.c.bf16 %v4551_v21, %v4550_v35 }
 0x189   : > { %v594_v32 = vpop.f32.mrb[17].mxu0  ;;  %v4552_v13 = vld [vmem:[%s9024_s1 + $0x350] sm:$0xff] }
 0x18a   : > { %5163 = vmatpush1.bf16.msra.mxu0 %v5162_v43  ;;  %v4553_v32 = vld [vmem:[%s9024_s1 + $0x358] sm:$0xff] }
 0x18b   : > { %v742_v63 = vpop.f32.mrb[16].mxu1  ;;  %5164 = vmatprep.subr.bf16.mxu0 %v9077_v20 }
 0x18c   : > { %v7101_v17 = vadd.f32 %v742_v63, %v592_v1  ;;  %v597_v44 = vpop.f32.mrb[18].mxu0  ;;  %v744_v23 = vpop.f32.mrb[17].mxu1 }
 0x18d   : > { %v599_v45 = vpop.f32.mrb[19].mxu0 }
 0x18f   : > { %v747_v58 = vpop.f32.mrb[18].mxu1 }
 0x190   : > { %v7103_v62 = vadd.f32 %v747_v58, %v597_v44  ;;  %v602_v51 = vpop.f32.mrb[20].mxu0  ;;  %v749_v8 = vpop.f32.mrb[19].mxu1  ;;  %v5165_v44 = vpack.c.bf16 %v4553_v32, %v4552_v13  ;;  %v4563_v13 = vld [vmem:[%s9024_s1 + $0x3a8] sm:$0xff] }
 0x191   : > { %v604_v15 = vpop.f32.mrb[21].mxu0 }
 0x192   : > { %5166 = vmatpush1.bf16.msra.mxu0 %v5165_v44  ;;  %v4554_v15 = vld [vmem:[%s9024_s1 + $0x360] sm:$0xff] }
 0x193   : > { %v752_v18 = vpop.f32.mrb[20].mxu1  ;;  %5167 = vmatprep.subr.bf16.mxu0 %v9077_v20 }
 0x194   : > { %v7111_v31 = vadd.f32 %v752_v18, %v602_v51  ;;  %v607_v5 = vpop.f32.mrb[22].mxu0  ;;  %v754_v52 = vpop.f32.mrb[21].mxu1  ;;  %v5168_v18 = vpack.c.bf16 %v4555_v30, %v4554_v15 }
 0x195   : > { %v609_v61 = vpop.f32.mrb[23].mxu0 }
 0x196   : > { %5169 = vmatpush1.bf16.msra.mxu0 %v5168_v18  ;;  %v7172_v61 = vld [vmem:[%s9025_s2] ss:$0 sm:$0xff] }
 0x197   : > { %v757_v57 = vpop.f32.mrb[22].mxu1  ;;  %5170 = vmatprep.subr.bf16.mxu0 %v9077_v20 }
 0x198   : > { %v7120_v36 = vadd.f32 %v757_v57, %v607_v5  ;;  %v612_v22 = vpop.f32.mrb[24].mxu0  ;;  %v759_v7 = vpop.f32.mrb[23].mxu1 }
 0x199   : > { %v614_v14 = vpop.f32.mrb[25].mxu0 }
 0x19b   : > { %v762_v0 = vpop.f32.mrb[24].mxu1 }
 0x19c   : > { %v7129_v42 = vadd.f32 %v762_v0, %v612_v22  ;;  %v617_v27 = vpop.f32.mrb[26].mxu0  ;;  %v764_v55 = vpop.f32.mrb[25].mxu1  ;;  %v4559_v0 = vld [vmem:[%s9024_s1 + $0x388] sm:$0xff] }
 0x19d   : > { %v619_v39 = vpop.f32.mrb[27].mxu0  ;;  %v5174_v55 = vpack.c.bf16 %v4559_v0, %v4558_v38 }
 0x19f   : > { %v767_v59 = vpop.f32.mrb[26].mxu1 }
 0x1a0   : > { %v7138_v47 = vadd.f32 %v767_v59, %v617_v27  ;;  %v622_v60 = vpop.f32.mrb[28].mxu0  ;;  %v769_v2 = vpop.f32.mrb[27].mxu1 }
 0x1a1   : > { %v624_v10 = vpop.f32.mrb[29].mxu0  ;;  %v4560_v2 = vld [vmem:[%s9024_s1 + $0x390] sm:$0xff] }
 0x1a2   : > { %v4561_v10 = vld [vmem:[%s9024_s1 + $0x398] sm:$0xff] }
 0x1a3   : > { %v772_v53 = vpop.f32.mrb[28].mxu1 }
 0x1a4   : > { %v7147_v11 = vadd.f32 %v772_v53, %v622_v60  ;;  %v627_v46 = vpop.f32.mrb[30].mxu0  ;;  %v774_v48 = vpop.f32.mrb[29].mxu1 }
 0x1a5   : > { %v629_v1 = vpop.f32.mrb[31].mxu0 }
 0x1a6   : > { %v4562_v1 = vld [vmem:[%s9024_s1 + $0x3a0] sm:$0xff] }
 0x1a7   : > { %v777_v63 = vpop.f32.mrb[30].mxu1 }
 0x1a8   : > { %v7156_v23 = vadd.f32 %v777_v63, %v627_v46  ;;  %v779_v45 = vpop.f32.mrb[31].mxu1  ;;  %v877_v58 = vpop.f32.mrb[32].mxu0 }
 0x1a9   : > { %v956_v51 = vadd.f32 %v877_v58, %v7085_v24  ;;  %v879_v8 = vpop.f32.mrb[33].mxu0  ;;  %v5180_v58 = vpack.c.bf16 %v4563_v13, %v4562_v1 }
 0x1aa   : > { %v4565_v8 = vld [vmem:[%s9024_s1 + $0x3b8] sm:$0xff] }
 0x1ab   : > { %v7166_v40 = vpop.f32.mrb[32].mxu1  ;;  %v979_v7 = vadd.f32 %v7172_v61, %v956_v51  ;;  %v4564_v51 = vld [vmem:[%s9024_s1 + $0x3b0] sm:$0xff] }
 0x1ac   : > { %v882_v56 = vpop.f32.mrb[34].mxu0  ;;  %v1327_v5 = vpop.f32.mrb[33].mxu1 }
 0x1ad   : > { %v957_v52 = vadd.f32 %v882_v56, %v7087_v4  ;;  %v884_v24 = vpop.f32.mrb[35].mxu0  ;;  %v5171_v4 = vpack.c.bf16 %v4557_v9, %v4556_v54  ;;  %v995_v28 = vmax.f32 %v979_v7, 0.0  ;;  %v5183_v5 = vpack.c.bf16 %v4565_v8, %v4564_v51 }
 0x1af   : > { %v7181_v57 = vpop.f32.mrb[34].mxu1  ;;  %5172 = vmatpush1.bf16.msra.mxu0 %v5171_v4 }
 0x1b0   : > { %v887_v37 = vpop.f32.mrb[36].mxu0  ;;  %v1332_v22 = vpop.f32.mrb[35].mxu1  ;;  %5173 = vmatprep.subr.bf16.mxu0 %v9077_v20 }
 0x1b1   : > { %v958_v14 = vadd.f32 %v887_v37, %v7089_v3  ;;  %v889_v34 = vpop.f32.mrb[37].mxu0  ;;  %v980_v3 = vadd.f32 %v7172_v61, %v957_v52 }
 0x1b3   : > { %v7193_v29 = vadd.f32 %v7172_v61, %v958_v14  ;;  %v7195_v27 = vpop.f32.mrb[36].mxu1  ;;  %5175 = vmatpush1.bf16.msra.mxu0 %v5174_v55  ;;  %v996_v43 = vmax.f32 %v980_v3, 0.0 }
 0x1b4   : > { %v892_v39 = vpop.f32.mrb[38].mxu0  ;;  %v1337_v6 = vpop.f32.mrb[37].mxu1  ;;  %5176 = vmatprep.subr.bf16.mxu0 %v9077_v20 }
 0x1b5   : > { %v997_v59 = vmax.f32 %v7193_v29, 0.0  ;;  %v959_v41 = vadd.f32 %v892_v39, %v7091_v12  ;;  %v894_v60 = vpop.f32.mrb[39].mxu0  ;;  %v5177_v12 = vpack.c.bf16 %v4561_v10, %v4560_v2 }
 0x1b7   : > { %v1747_v35 = vmax.f32 %v995_v28, %v997_v59  ;;  %v7210_v21 = vadd.f32 %v7172_v61, %v959_v41  ;;  %v7212_v53 = vpop.f32.mrb[38].mxu1  ;;  %5178 = vmatpush1.bf16.msra.mxu0 %v5177_v12 }
 0x1b8   : > { %v897_v46 = vpop.f32.mrb[40].mxu0  ;;  %v1342_v48 = vpop.f32.mrb[39].mxu1  ;;  %5179 = vmatprep.subr.bf16.mxu0 %v9077_v20 }
 0x1b9   : > { %v1763_v32 = vmax.f32 %v1747_v35, %v995_v28  ;;  %v998_v63 = vmax.f32 %v7210_v21, 0.0  ;;  %v960_v44 = vadd.f32 %v897_v46, %v7093_v33  ;;  %v899_v45 = vpop.f32.mrb[41].mxu0 }
 0x1bb   : > { %v1787_v15 = vrot.slane %v1763_v32, 1  ;;  %v1748_v30 = vmax.f32 %v996_v43, %v998_v63  ;;  %v7231_v18 = vpop.f32.mrb[40].mxu1  ;;  %v1811_v24 = vrot.slane %v1763_v32, 2  ;;  %5181 = vmatpush1.bf16.msra.mxu0 %v5180_v58 }
 0x1bc   : > { %v902_v33 = vpop.f32.mrb[42].mxu0  ;;  %v1347_v56 = vpop.f32.mrb[41].mxu1  ;;  %5182 = vmatprep.subr.bf16.mxu0 %v9077_v20 }
 0x1bd   : > { %v1803_v52 = vmax.f32 %v1763_v32, %v1787_v15  ;;  %v1764_v54 = vmax.f32 %v1748_v30, %v996_v43  ;;  %v961_v9 = vadd.f32 %v902_v33, %v7095_v49  ;;  %v904_v4 = vpop.f32.mrb[43].mxu0  ;;  %v983_v49 = vadd.f32 %v7172_v61, %v960_v44 }
 0x1bf   : > { %v1827_v37 = vmax.f32 %v1803_v52, %v1811_v24  ;;  %v1843_v22 = vrot.slane %v1764_v54, 1  ;;  %v7235_v7 = vpop.f32.mrb[42].mxu1  ;;  %v1867_v14 = vrot.slane %v1764_v54, 2  ;;  %5184 = vmatpush1.bf16.msra.mxu0 %v5183_v5  ;;  %v999_v44 = vmax.f32 %v983_v49, 0.0 }
 0x1c0   : > { %v907_v34 = vpop.f32.mrb[44].mxu0  ;;  %v1352_v38 = vpop.f32.mrb[43].mxu1  ;;  %5221 = vmatprep.subr.bf16.mxu0 %v9077_v20 }
 0x1c1   : > { %v1915_v0 = vrot.slane %v1827_v37, 1  ;;  %v2027_v55 = vsel %vm206_vm1, %v1803_v52, %v1827_v37  ;;  %v1859_v3 = vmax.f32 %v1763_v32, %v1843_v22  ;;  %v1891_v39 = vmax.f32 %v1764_v54, %v1843_v22  ;;  %v909_v6 = vpop.f32.mrb[45].mxu0 }
 0x1c2   : > { %v962_v28 = vadd.f32 %v907_v34, %v7097_v25  ;;  %v1931_v41 = vrot.slane %v1827_v37, 2  ;;  %v984_v25 = vadd.f32 %v7172_v61, %v961_v9 }
 0x1c3   : > { %v1883_v60 = vmax.f32 %v1859_v3, %v1867_v14  ;;  %v1899_v2 = vmax.f32 %v1891_v39, %v1867_v14  ;;  %v7241_v10 = vpop.f32.mrb[44].mxu1  ;;  %v2036_v35 = vsel %vm2035_vm4, %v2027_v55, %v1915_v0 }
 0x1c4   : > { %v7245_v12 = vadd.f32 %v7172_v61, %v962_v28  ;;  %v912_v43 = vpop.f32.mrb[46].mxu0  ;;  %v1357_v46 = vpop.f32.mrb[45].mxu1  ;;  %v2045_v58 = vsel %vm2044_vm5, %v2036_v35, %v1931_v41  ;;  %v1000_v24 = vmax.f32 %v984_v25, 0.0 }
 0x1c5   : > { %v1955_v48 = vrot.slane %v1883_v60, 3  ;;  %v963_v1 = vadd.f32 %v912_v43, %v7099_v16  ;;  %v914_v13 = vpop.f32.mrb[47].mxu0  ;;  %v1979_v32 = vrot.slane %v1899_v2, 4  ;;  %v1995_v15 = vrot.slane %v1899_v2, 5 }
 0x1c6   : > { %v1001_v45 = vmax.f32 %v7245_v12, 0.0  ;;  %v2011_v5 = vrot.slane %v1899_v2, 6 }
 0x1c7   : > { %v7252_v51 = vadd.f32 %v7172_v61, %v963_v1  ;;  %v7254_v8 = vpop.f32.mrb[46].mxu1  ;;  %v2054_v30 = vsel %vm2053_vm6, %v2045_v58, %v1955_v48 }
 0x1c8   : > { %v1749_v33 = vmax.f32 %v999_v44, %v1001_v45  ;;  %v917_v16 = vpop.f32.mrb[48].mxu0  ;;  %v1362_v56 = vpop.f32.mrb[47].mxu1  ;;  %v2063_v52 = vsel %vm2062_vm7, %v2054_v30, %v1979_v32 }
 0x1c9   : > { %v1002_v54 = vmax.f32 %v7252_v51, 0.0  ;;  %v964_v9 = vadd.f32 %v917_v16, %v7101_v17  ;;  %v919_v4 = vpop.f32.mrb[49].mxu0  ;;  %v2072_v37 = vsel %vm2071_vm8, %v2063_v52, %v1995_v15 }
 0x1ca   : > { %v1765_v22 = vmax.f32 %v1749_v33, %v997_v59  ;;  %v7266_v14 = vsel %vm256_vm2, %v2072_v37, %v2011_v5 }
 0x1cb   : > { %v1750_v34 = vmax.f32 %v1000_v24, %v1002_v54  ;;  %v7270_v38 = vpop.f32.mrb[48].mxu1  ;;  %v2120_v0 = vrot.slane %v7266_v14, 1  ;;  %v2096_v55 = vrot.slane %v7266_v14, 7 }
 0x1cc   : > { %v1788_v3 = vrot.slane %v1765_v22, 1  ;;  %v922_v17 = vpop.f32.mrb[50].mxu0  ;;  %v1367_v39 = vpop.f32.mrb[49].mxu1  ;;  %v1812_v41 = vrot.slane %v1765_v22, 2 }
 0x1cd   : > { %v1766_v6 = vmax.f32 %v1750_v34, %v998_v63  ;;  %v965_v29 = vadd.f32 %v922_v17, %v7103_v62  ;;  %v924_v59 = vpop.f32.mrb[51].mxu0  ;;  %v2136_v49 = vsel %vm256_vm2, %v2120_v0, 0.0  ;;  %v2112_v60 = vsel %vm206_vm1, 0.0, %v2096_v55 }
 0x1ce   : > { %v1804_v28 = vmax.f32 %v1765_v22, %v1788_v3  ;;  %4566 = vmatprep.mubr.msk.f32.mxu0 %vm376_vm0, %v2136_v49  ;;  %4577 = vmatprep.mubr.msk.f32.mxu1 %vm376_vm0, %v2136_v49  ;;  %v987_v63 = vadd.f32 %v7172_v61, %v964_v9 }
 0x1cf   : > { %v1844_v2 = vrot.slane %v1766_v6, 1  ;;  %2152 = vrot.lane.b32.xlu0 %v2112_v60, %s5703_s17  ;;  %v7282_v35 = vpop.f32.mrb[50].mxu1  ;;  %v1868_v48 = vrot.slane %v1766_v6, 2  ;;  %v988_v5 = vadd.f32 %v7172_v61, %v965_v29 }
 0x1d0   : > { %v1828_v21 = vmax.f32 %v1804_v28, %v1812_v41  ;;  %v927_v62 = vpop.f32.mrb[52].mxu0  ;;  %v1372_v43 = vpop.f32.mrb[51].mxu1  ;;  %v1003_v56 = vmax.f32 %v987_v63, 0.0 }
 0x1d1   : > { %v1860_v46 = vmax.f32 %v1765_v22, %v1844_v2  ;;  %v1892_v25 = vmax.f32 %v1766_v6, %v1844_v2  ;;  %v966_v1 = vadd.f32 %v927_v62, %v7111_v31  ;;  %v929_v13 = vpop.f32.mrb[53].mxu0  ;;  %v1004_v29 = vmax.f32 %v988_v5, 0.0 }
 0x1d2   : > { %v1916_v32 = vrot.slane %v1828_v21, 1  ;;  %v1932_v44 = vrot.slane %v1828_v21, 2  ;;  %v2028_v58 = vsel %vm206_vm1, %v1804_v28, %v1828_v21 }
 0x1d3   : > { %v1884_v15 = vmax.f32 %v1860_v46, %v1868_v48  ;;  %v1900_v30 = vmax.f32 %v1892_v25, %v1868_v48  ;;  %v7288_v33 = vadd.f32 %v7172_v61, %v966_v1  ;;  %v7290_v16 = vpop.f32.mrb[52].mxu1 }
 0x1d4   : > { %v932_v52 = vpop.f32.mrb[54].mxu0  ;;  %v1377_v24 = vpop.f32.mrb[53].mxu1  ;;  %v2037_v9 = vsel %vm2035_vm4, %v2028_v58, %v1916_v32 }
 0x1d5   : > { %v1956_v31 = vrot.slane %v1884_v15, 3  ;;  %v1005_v4 = vmax.f32 %v7288_v33, 0.0  ;;  %v967_v37 = vadd.f32 %v932_v52, %v7120_v36  ;;  %v934_v22 = vpop.f32.mrb[55].mxu0  ;;  %v1980_v34 = vrot.slane %v1900_v30, 4 }
 0x1d6   : > { %v2046_v0 = vsel %vm2044_vm5, %v2037_v9, %v1932_v44  ;;  %v1996_v39 = vrot.slane %v1900_v30, 5  ;;  %v2012_v28 = vrot.slane %v1900_v30, 6 }
 0x1d7   : > { %v1751_v55 = vmax.f32 %v1003_v56, %v1005_v4  ;;  %v7300_v3 = vadd.f32 %v7172_v61, %v967_v37  ;;  %v7302_v17 = vpop.f32.mrb[54].mxu1  ;;  %v2055_v6 = vsel %vm2053_vm6, %v2046_v0, %v1956_v31 }
 0x1d8   : > { %v937_v59 = vpop.f32.mrb[56].mxu0  ;;  %v1382_v49 = vpop.f32.mrb[55].mxu1  ;;  %v2064_v36 = vsel %vm2062_vm7, %v2055_v6, %v1980_v34 }
 0x1d9   : > { %v1767_v41 = vmax.f32 %v1751_v55, %v1001_v45  ;;  %v1006_v60 = vmax.f32 %v7300_v3, 0.0  ;;  %v968_v2 = vadd.f32 %v937_v59, %v7129_v42  ;;  %v939_v21 = vpop.f32.mrb[57].mxu0  ;;  %v2073_v63 = vsel %vm2071_vm8, %v2064_v36, %v1996_v39 }
 0x1da   : > { %v7312_v62 = vsel %vm256_vm2, %v2073_v63, %v2012_v28 }
 0x1db   : > { %v1789_v43 = vrot.slane %v1767_v41, 1  ;;  %v1752_v46 = vmax.f32 %v1004_v29, %v1006_v60  ;;  %v7316_v48 = vpop.f32.mrb[56].mxu1  ;;  %v2097_v12 = vrot.slane %v7312_v62, 7  ;;  %v1813_v13 = vrot.slane %v1767_v41, 2 }
 0x1dc   : > { %v942_v25 = vpop.f32.mrb[58].mxu0  ;;  %v1387_v1 = vpop.f32.mrb[57].mxu1  ;;  %v991_v51 = vadd.f32 %v7172_v61, %v968_v2 }
 0x1dd   : > { %v1805_v45 = vmax.f32 %v1767_v41, %v1789_v43  ;;  %v1768_v42 = vmax.f32 %v1752_v46, %v1002_v54  ;;  %v969_v32 = vadd.f32 %v942_v25, %v7138_v47  ;;  %v944_v44 = vpop.f32.mrb[59].mxu0  ;;  %v2113_v58 = vsel %vm206_vm1, 0.0, %v2097_v12 }
 0x1de   : > { %2154 = vrot.lane.b32.xlu1 %v2113_v58, %s5703_s17  ;;  %v1007_v21 = vmax.f32 %v991_v51, 0.0 }
 0x1df   : > { %v1829_v15 = vmax.f32 %v1805_v45, %v1813_v13  ;;  %v1845_v30 = vrot.slane %v1768_v42, 1  ;;  %v7324_v56 = vpop.f32.mrb[58].mxu1  ;;  %v1869_v31 = vrot.slane %v1768_v42, 2  ;;  %v992_v36 = vadd.f32 %v7172_v61, %v969_v32 }
 0x1e0   : > { %v947_v5 = vpop.f32.mrb[60].mxu0  ;;  %v1392_v52 = vpop.f32.mrb[59].mxu1 }
 0x1e1   : > { %v1917_v24 = vrot.slane %v1829_v15, 1  ;;  %v1861_v9 = vmax.f32 %v1767_v41, %v1845_v30  ;;  %v1893_v37 = vmax.f32 %v1768_v42, %v1845_v30  ;;  %v949_v22 = vpop.f32.mrb[61].mxu0  ;;  %v970_v47 = vadd.f32 %v947_v5, %v7147_v11 }
 0x1e2   : > { %v1933_v54 = vrot.slane %v1829_v15, 2  ;;  %v2029_v34 = vsel %vm206_vm1, %v1805_v45, %v1829_v15  ;;  %v1008_v44 = vmax.f32 %v992_v36, 0.0 }
 0x1e3   : > { %v1885_v0 = vmax.f32 %v1861_v9, %v1869_v31  ;;  %v1901_v55 = vmax.f32 %v1893_v37, %v1869_v31  ;;  %v7329_v39 = vpop.f32.mrb[60].mxu1  ;;  %v2038_v6 = vsel %vm2035_vm4, %v2029_v34, %v1917_v24  ;;  %v7333_v29 = vadd.f32 %v7172_v61, %v970_v47 }
 0x1e4   : > { %v952_v59 = vpop.f32.mrb[62].mxu0  ;;  %v1397_v49 = vpop.f32.mrb[61].mxu1  ;;  %v2047_v43 = vsel %vm2044_vm5, %v2038_v6, %v1933_v54 }
 0x1e5   : > { %v1957_v28 = vrot.slane %v1885_v0, 3  ;;  %v971_v41 = vadd.f32 %v952_v59, %v7156_v23  ;;  %v954_v11 = vpop.f32.mrb[63].mxu0  ;;  %v1981_v2 = vrot.slane %v1901_v55, 4  ;;  %v1009_v63 = vmax.f32 %v7333_v29, 0.0 }
 0x1e6   : > { %v1997_v1 = vrot.slane %v1901_v55, 5  ;;  %v2013_v42 = vrot.slane %v1901_v55, 6 }
 0x1e7   : > { %v7340_v46 = vadd.f32 %v7172_v61, %v971_v41  ;;  %v7342_v25 = vpop.f32.mrb[62].mxu1  ;;  %v2056_v12 = vsel %vm2053_vm6, %v2047_v43, %v1957_v28  ;;  %v1753_v45 = vmax.f32 %v1007_v21, %v1009_v63 }
 0x1e8   : > { %v1402_v13 = vpop.f32.mrb[63].mxu1  ;;  %v1475_v23 = vpop.f32.mrb[64].mxu0  ;;  %v2065_v32 = vsel %vm2062_vm7, %v2056_v12, %v1981_v2 }
 0x1e9   : > { %v1010_v58 = vmax.f32 %v7340_v46, 0.0  ;;  %v1476_v15 = vadd.f32 %v1475_v23, %v7166_v40  ;;  %v1477_v30 = vpop.f32.mrb[65].mxu0  ;;  %v2074_v5 = vsel %vm2071_vm8, %v2065_v32, %v1997_v1  ;;  %v1769_v52 = vmax.f32 %v1753_v45, %v1005_v4 }
 0x1ea   : > { %v7354_v24 = vsel %vm256_vm2, %v2074_v5, %v2013_v42 }
 0x1eb   : > { %v1754_v9 = vmax.f32 %v1008_v44, %v1010_v58  ;;  %v1620_v31 = vpop.f32.mrb[64].mxu1  ;;  %v2098_v37 = vrot.slane %v7354_v24, 7  ;;  %v1790_v22 = vrot.slane %v1769_v52, 1  ;;  %v1814_v55 = vrot.slane %v1769_v52, 2 }
 0x1ec   : > { %v1699_v51 = vadd.f32 %v1620_v31, %v1476_v15  ;;  %v1480_v47 = vpop.f32.mrb[66].mxu0  ;;  %v1622_v54 = vpop.f32.mrb[65].mxu1 }
 0x1ed   : > { %v1770_v40 = vmax.f32 %v1754_v9, %v1006_v60  ;;  %v1481_v34 = vadd.f32 %v1480_v47, %v7181_v57  ;;  %v1482_v33 = vpop.f32.mrb[67].mxu0  ;;  %v2114_v4 = vsel %vm206_vm1, 0.0, %v2098_v37  ;;  %v1806_v0 = vmax.f32 %v1769_v52, %v1790_v22 }
 0x1ee   : > { %2156 = vrot.lane.b32.xlu0 %v2114_v4, %s5703_s17  ;;  %v1715_v13 = vadd.f32 %v7172_v61, %v1699_v51 }
 0x1ef   : > { %v1846_v6 = vrot.slane %v1770_v40, 1  ;;  %v1625_v59 = vpop.f32.mrb[66].mxu1  ;;  %v1830_v49 = vmax.f32 %v1806_v0, %v1814_v55  ;;  %v1870_v2 = vrot.slane %v1770_v40, 2 }
 0x1f0   : > { %v1700_v28 = vadd.f32 %v1625_v59, %v1481_v34  ;;  %v1485_v36 = vpop.f32.mrb[68].mxu0  ;;  %v1627_v41 = vpop.f32.mrb[67].mxu1  ;;  %v1731_v37 = vmax.f32 %v1715_v13, 0.0 }
 0x1f1   : > { %v1862_v11 = vmax.f32 %v1769_v52, %v1846_v6  ;;  %v1894_v21 = vmax.f32 %v1770_v40, %v1846_v6  ;;  %v1486_v3 = vadd.f32 %v1485_v36, %v7195_v27  ;;  %v1487_v60 = vpop.f32.mrb[69].mxu0  ;;  %v1918_v57 = vrot.slane %v1830_v49, 1 }
 0x1f2   : > { %v1934_v43 = vrot.slane %v1830_v49, 2  ;;  %v2030_v1 = vsel %vm206_vm1, %v1806_v0, %v1830_v49  ;;  %v1716_v22 = vadd.f32 %v7172_v61, %v1700_v28 }
 0x1f3   : > { %v1886_v12 = vmax.f32 %v1862_v11, %v1870_v2  ;;  %v1902_v45 = vmax.f32 %v1894_v21, %v1870_v2  ;;  %v1630_v23 = vpop.f32.mrb[68].mxu1  ;;  %v2039_v15 = vsel %vm2035_vm4, %v2030_v1, %v1918_v57 }
 0x1f4   : > { %v1701_v42 = vadd.f32 %v1630_v23, %v1486_v3  ;;  %v1490_v32 = vpop.f32.mrb[70].mxu0  ;;  %v1632_v44 = vpop.f32.mrb[69].mxu1  ;;  %v2048_v31 = vsel %vm2044_vm5, %v2039_v15, %v1934_v43  ;;  %v1732_v2 = vmax.f32 %v1716_v22, 0.0 }
 0x1f5   : > { %v1958_v30 = vrot.slane %v1886_v12, 3  ;;  %v1491_v5 = vadd.f32 %v1490_v32, %v7212_v53  ;;  %v1492_v52 = vpop.f32.mrb[71].mxu0  ;;  %v1982_v27 = vrot.slane %v1902_v45, 4  ;;  %v1998_v47 = vrot.slane %v1902_v45, 5 }
 0x1f6   : > { %v7370_v9 = vadd.f32 %v7172_v61, %v1701_v42  ;;  %v2014_v53 = vrot.slane %v1902_v45, 6 }
 0x1f7   : > { %v1635_v51 = vpop.f32.mrb[70].mxu1  ;;  %v2057_v54 = vsel %vm2053_vm6, %v2048_v31, %v1958_v30 }
 0x1f8   : > { %v1733_v40 = vmax.f32 %v7370_v9, 0.0  ;;  %v1702_v34 = vadd.f32 %v1635_v51, %v1491_v5  ;;  %v1495_v33 = vpop.f32.mrb[72].mxu0  ;;  %v1637_v4 = vpop.f32.mrb[71].mxu1  ;;  %v2066_v0 = vsel %vm2062_vm7, %v2057_v54, %v1982_v27 }
 0x1f9   : > { %v1496_v55 = vadd.f32 %v1495_v33, %v7231_v18  ;;  %v1497_v6 = vpop.f32.mrb[73].mxu0  ;;  %v2075_v59 = vsel %vm2071_vm8, %v2066_v0, %v1998_v47 }
 0x1fa   : > { %v1755_v49 = vmax.f32 %v1731_v37, %v1733_v40  ;;  %v7382_v28 = vadd.f32 %v7172_v61, %v1702_v34  ;;  %v7385_v36 = vsel %vm256_vm2, %v2075_v59, %v2014_v53 }
 0x1fb   : > { %v1640_v41 = vpop.f32.mrb[72].mxu1  ;;  %v2099_v11 = vrot.slane %v7385_v36, 7 }
 0x1fc   : > { %v1771_v21 = vmax.f32 %v1755_v49, %v1009_v63  ;;  %v1734_v18 = vmax.f32 %v7382_v28, 0.0  ;;  %v1703_v3 = vadd.f32 %v1640_v41, %v1496_v55  ;;  %v1500_v60 = vpop.f32.mrb[74].mxu0  ;;  %v1642_v57 = vpop.f32.mrb[73].mxu1 }
 0x1fd   : > { %v1501_v43 = vadd.f32 %v1500_v60, %v7235_v7  ;;  %v1502_v1 = vpop.f32.mrb[75].mxu0  ;;  %v2115_v12 = vsel %vm206_vm1, 0.0, %v2099_v11 }
 0x1fe   : > { %v1791_v45 = vrot.slane %v1771_v21, 1  ;;  %v1756_v13 = vmax.f32 %v1732_v2, %v1734_v18  ;;  %2158 = vrot.lane.b32.xlu1 %v2115_v12, %s5703_s17  ;;  %v1815_v29 = vrot.slane %v1771_v21, 2  ;;  %v1719_v27 = vadd.f32 %v7172_v61, %v1703_v3 }
 0x1ff   : > { %v1645_v23 = vpop.f32.mrb[74].mxu1 }
 0x200   : > { %v1807_v42 = vmax.f32 %v1771_v21, %v1791_v45  ;;  %v1772_v63 = vmax.f32 %v1756_v13, %v1010_v58  ;;  %v1704_v32 = vadd.f32 %v1645_v23, %v1501_v43  ;;  %v1505_v44 = vpop.f32.mrb[76].mxu0  ;;  %v1647_v15 = vpop.f32.mrb[75].mxu1 }
 0x201   : > { %v1506_v7 = vadd.f32 %v1505_v44, %v7241_v10  ;;  %v1507_v30 = vpop.f32.mrb[77].mxu0 }
 0x202   : > { %v1831_v5 = vmax.f32 %v1807_v42, %v1815_v29  ;;  %v1847_v52 = vrot.slane %v1772_v63, 1  ;;  %v1871_v51 = vrot.slane %v1772_v63, 2  ;;  %v1720_v41 = vadd.f32 %v7172_v61, %v1704_v32 }
 0x203   : > { %v1650_v31 = vpop.f32.mrb[76].mxu1 }
 0x204   : > { %v1919_v37 = vrot.slane %v1831_v5, 1  ;;  %v1863_v22 = vmax.f32 %v1771_v21, %v1847_v52  ;;  %v1895_v47 = vmax.f32 %v1772_v63, %v1847_v52  ;;  %v1510_v54 = vpop.f32.mrb[78].mxu0  ;;  %v1652_v34 = vpop.f32.mrb[77].mxu1  ;;  %v1705_v33 = vadd.f32 %v1650_v31, %v1506_v7 }
 0x205   : > { %v1511_v46 = vadd.f32 %v1510_v54, %v7254_v8  ;;  %v1512_v58 = vpop.f32.mrb[79].mxu0  ;;  %v1935_v4 = vrot.slane %v1831_v5, 2  ;;  %v2031_v53 = vsel %vm206_vm1, %v1807_v42, %v1831_v5  ;;  %v1735_v8 = vmax.f32 %v1719_v27, 0.0 }
 0x206   : > { %v1887_v10 = vmax.f32 %v1863_v22, %v1871_v51  ;;  %v1903_v0 = vmax.f32 %v1895_v47, %v1871_v51  ;;  %v2040_v55 = vsel %vm2035_vm4, %v2031_v53, %v1919_v37  ;;  %v7404_v6 = vadd.f32 %v7172_v61, %v1705_v33 }
 0x207   : > { %v1655_v59 = vpop.f32.mrb[78].mxu1  ;;  %v2049_v1 = vsel %vm2044_vm5, %v2040_v55, %v1935_v4  ;;  %v1736_v32 = vmax.f32 %v1720_v41, 0.0 }
 0x208   : > { %v1959_v49 = vrot.slane %v1887_v10, 3  ;;  %v1706_v11 = vadd.f32 %v1655_v59, %v1511_v46  ;;  %v1515_v2 = vpop.f32.mrb[80].mxu0  ;;  %v1657_v21 = vpop.f32.mrb[79].mxu1  ;;  %v1983_v3 = vrot.slane %v1903_v0, 4  ;;  %v1737_v60 = vmax.f32 %v7404_v6, 0.0 }
 0x209   : > { %v1516_v57 = vadd.f32 %v1515_v2, %v7270_v38  ;;  %v1517_v43 = vpop.f32.mrb[81].mxu0  ;;  %v1999_v45 = vrot.slane %v1903_v0, 5  ;;  %v2015_v29 = vrot.slane %v1903_v0, 6 }
 0x20a   : > { %v7411_v12 = vadd.f32 %v7172_v61, %v1706_v11  ;;  %v2058_v13 = vsel %vm2053_vm6, %v2049_v1, %v1959_v49  ;;  %v1757_v23 = vmax.f32 %v1735_v8, %v1737_v60 }
 0x20b   : > { %v1660_v42 = vpop.f32.mrb[80].mxu1  ;;  %v2067_v63 = vsel %vm2062_vm7, %v2058_v13, %v1983_v3 }
 0x20c   : > { %v1738_v44 = vmax.f32 %v7411_v12, 0.0  ;;  %v1707_v38 = vadd.f32 %v1660_v42, %v1516_v57  ;;  %v1520_v15 = vpop.f32.mrb[82].mxu0  ;;  %v1662_v7 = vpop.f32.mrb[81].mxu1  ;;  %v2076_v30 = vsel %vm2071_vm8, %v2067_v63, %v1999_v45  ;;  %v1773_v5 = vmax.f32 %v1757_v23, %v1733_v40 }
 0x20d   : > { %v1521_v52 = vadd.f32 %v1520_v15, %v7282_v35  ;;  %v1522_v27 = vpop.f32.mrb[83].mxu0  ;;  %v7423_v31 = vsel %vm256_vm2, %v2076_v30, %v2015_v29 }
 0x20e   : > { %v1758_v37 = vmax.f32 %v1736_v32, %v1738_v44  ;;  %v2100_v22 = vrot.slane %v7423_v31, 7  ;;  %v1792_v51 = vrot.slane %v1773_v5, 1  ;;  %v1816_v46 = vrot.slane %v1773_v5, 2 }
 0x20f   : > { %v1665_v47 = vpop.f32.mrb[82].mxu1  ;;  %v1723_v0 = vadd.f32 %v7172_v61, %v1707_v38 }
 0x210   : > { %v1774_v54 = vmax.f32 %v1758_v37, %v1734_v18  ;;  %v1708_v34 = vadd.f32 %v1665_v47, %v1521_v52  ;;  %v1525_v33 = vpop.f32.mrb[84].mxu0  ;;  %v1667_v9 = vpop.f32.mrb[83].mxu1  ;;  %v2116_v40 = vsel %vm206_vm1, 0.0, %v2100_v22  ;;  %v1808_v35 = vmax.f32 %v1773_v5, %v1792_v51 }
 0x211   : > { %v1526_v58 = vadd.f32 %v1525_v33, %v7290_v16  ;;  %v1527_v4 = vpop.f32.mrb[85].mxu0  ;;  %2160 = vrot.lane.b32.xlu0 %v2116_v40, %s5703_s17  ;;  %v1739_v45 = vmax.f32 %v1723_v0, 0.0 }
 0x212   : > { %v1848_v53 = vrot.slane %v1774_v54, 1  ;;  %v1832_v10 = vmax.f32 %v1808_v35, %v1816_v46  ;;  %v1872_v28 = vrot.slane %v1774_v54, 2  ;;  %v1724_v13 = vadd.f32 %v7172_v61, %v1708_v34 }
 0x213   : > { %v1670_v55 = vpop.f32.mrb[84].mxu1 }
 0x214   : > { %v1864_v59 = vmax.f32 %v1773_v5, %v1848_v53  ;;  %v1896_v18 = vmax.f32 %v1774_v54, %v1848_v53  ;;  %v1709_v49 = vadd.f32 %v1670_v55, %v1526_v58  ;;  %v1530_v41 = vpop.f32.mrb[86].mxu0  ;;  %v1672_v11 = vpop.f32.mrb[85].mxu1  ;;  %v1920_v2 = vrot.slane %v1832_v10, 1 }
 0x215   : > { %v1531_v21 = vadd.f32 %v1530_v41, %v7302_v17  ;;  %v1532_v3 = vpop.f32.mrb[87].mxu0  ;;  %v1936_v8 = vrot.slane %v1832_v10, 2  ;;  %v2032_v16 = vsel %vm206_vm1, %v1808_v35, %v1832_v10  ;;  %v1740_v51 = vmax.f32 %v1724_v13, 0.0 }
 0x216   : > { %v1888_v57 = vmax.f32 %v1864_v59, %v1872_v28  ;;  %v1904_v43 = vmax.f32 %v1896_v18, %v1872_v28  ;;  %v7437_v1 = vadd.f32 %v7172_v61, %v1709_v49  ;;  %v2041_v42 = vsel %vm2035_vm4, %v2032_v16, %v1920_v2 }
 0x217   : > { %v1675_v23 = vpop.f32.mrb[86].mxu1  ;;  %v2050_v5 = vsel %vm2044_vm5, %v2041_v42, %v1936_v8 }
 0x218   : > { %v1960_v29 = vrot.slane %v1888_v57, 3  ;;  %v1741_v63 = vmax.f32 %v7437_v1, 0.0  ;;  %v1710_v32 = vadd.f32 %v1675_v23, %v1531_v21  ;;  %v1535_v17 = vpop.f32.mrb[88].mxu0  ;;  %v1677_v38 = vpop.f32.mrb[87].mxu1  ;;  %v1984_v15 = vrot.slane %v1904_v43, 4 }
 0x219   : > { %v1536_v7 = vadd.f32 %v1535_v17, %v7316_v48  ;;  %v1537_v30 = vpop.f32.mrb[89].mxu0  ;;  %v2000_v37 = vrot.slane %v1904_v43, 5  ;;  %v2016_v54 = vrot.slane %v1904_v43, 6 }
 0x21a   : > { %v1759_v52 = vmax.f32 %v1739_v45, %v1741_v63  ;;  %v7447_v27 = vadd.f32 %v7172_v61, %v1710_v32  ;;  %v2059_v22 = vsel %vm2053_vm6, %v2050_v5, %v1960_v29 }
 0x21b   : > { %v1680_v47 = vpop.f32.mrb[88].mxu1  ;;  %v2068_v34 = vsel %vm2062_vm7, %v2059_v22, %v1984_v15 }
 0x21c   : > { %v1775_v48 = vmax.f32 %v1759_v52, %v1737_v60  ;;  %v1742_v33 = vmax.f32 %v7447_v27, 0.0  ;;  %v1711_v9 = vadd.f32 %v1680_v47, %v1536_v7  ;;  %v1540_v40 = vpop.f32.mrb[90].mxu0  ;;  %v1682_v35 = vpop.f32.mrb[89].mxu1  ;;  %v2077_v46 = vsel %vm2071_vm8, %v2068_v34, %v2000_v37 }
 0x21d   : > { %v1541_v58 = vadd.f32 %v1540_v40, %v7324_v56  ;;  %v1542_v4 = vpop.f32.mrb[91].mxu0  ;;  %v7457_v53 = vsel %vm256_vm2, %v2077_v46, %v2016_v54 }
 0x21e   : > { %v1793_v10 = vrot.slane %v1775_v48, 1  ;;  %v1760_v0 = vmax.f32 %v1740_v51, %v1742_v33  ;;  %v2101_v6 = vrot.slane %v7457_v53, 7  ;;  %v1817_v59 = vrot.slane %v1775_v48, 2 }
 0x21f   : > { %v1685_v55 = vpop.f32.mrb[90].mxu1  ;;  %v1727_v8 = vadd.f32 %v7172_v61, %v1711_v9 }
 0x220   : > { %v1809_v60 = vmax.f32 %v1775_v48, %v1793_v10  ;;  %v1776_v28 = vmax.f32 %v1760_v0, %v1738_v44  ;;  %v1712_v18 = vadd.f32 %v1685_v55, %v1541_v58  ;;  %v1545_v49 = vpop.f32.mrb[92].mxu0  ;;  %v1687_v41 = vpop.f32.mrb[91].mxu1  ;;  %v2117_v2 = vsel %vm206_vm1, 0.0, %v2101_v6 }
 0x221   : > { %v1546_v56 = vadd.f32 %v1545_v49, %v7329_v39  ;;  %v1547_v11 = vpop.f32.mrb[93].mxu0  ;;  %2162 = vrot.lane.b32.xlu1 %v2117_v2, %s5703_s17  ;;  %v1743_v47 = vmax.f32 %v1727_v8, 0.0 }
 0x222   : > { %v1833_v21 = vmax.f32 %v1809_v60, %v1817_v59  ;;  %v1849_v3 = vrot.slane %v1776_v28, 1  ;;  %v1873_v45 = vrot.slane %v1776_v28, 2  ;;  %v1728_v52 = vadd.f32 %v7172_v61, %v1712_v18 }
 0x223   : > { %v1690_v16 = vpop.f32.mrb[92].mxu1 }
 0x224   : > { %v1921_v57 = vrot.slane %v1833_v21, 1  ;;  %v1865_v43 = vmax.f32 %v1775_v48, %v1849_v3  ;;  %v1897_v12 = vmax.f32 %v1776_v28, %v1849_v3  ;;  %v1550_v44 = vpop.f32.mrb[94].mxu0  ;;  %v1692_v13 = vpop.f32.mrb[93].mxu1  ;;  %v1713_v23 = vadd.f32 %v1690_v16, %v1546_v56 }
 0x225   : > { %v1551_v42 = vadd.f32 %v1550_v44, %v7342_v25  ;;  %v1552_v39 = vpop.f32.mrb[95].mxu0  ;;  %v1937_v29 = vrot.slane %v1833_v21, 2  ;;  %v2033_v32 = vsel %vm206_vm1, %v1809_v60, %v1833_v21  ;;  %v1744_v4 = vmax.f32 %v1728_v52, 0.0 }
 0x226   : > { %v1889_v17 = vmax.f32 %v1865_v43, %v1873_v45  ;;  %v1905_v38 = vmax.f32 %v1897_v12, %v1873_v45  ;;  %v2042_v15 = vsel %vm2035_vm4, %v2033_v32, %v1921_v57  ;;  %v1729_v7 = vadd.f32 %v7172_v61, %v1713_v23 }
 0x227   : > { %v1695_v30 = vpop.f32.mrb[94].mxu1  ;;  %v2051_v25 = vsel %vm2044_vm5, %v2042_v15, %v1937_v29  ;;  %v2121_v15 = vrot.slane %v7312_v62, 1 }
 0x228   : > { %v1961_v5 = vrot.slane %v1889_v17, 3  ;;  %v1714_v37 = vadd.f32 %v1695_v30, %v1551_v42  ;;  %v1697_v22 = vpop.f32.mrb[95].mxu1  ;;  %v1985_v51 = vrot.slane %v1905_v38, 4  ;;  %v1745_v54 = vmax.f32 %v1729_v7, 0.0  ;;  %v4584_v17 = vld [vmem:[%s9024_s1 + $0x3c0] sm:$0xff] }
 0x229   : > { %v2001_v48 = vrot.slane %v1905_v38, 5  ;;  %v2017_v46 = vrot.slane %v1905_v38, 6  ;;  %v4585_v38 = vld [vmem:[%s9024_s1 + $0x3c8] sm:$0xff]  ;;  %v4587_v22 = vld [vmem:[%s9024_s1 + $0x3d8] sm:$0xff] }
 0x22a   : > { %v1730_v34 = vadd.f32 %v7172_v61, %v1714_v37  ;;  %v2060_v9 = vsel %vm2053_vm6, %v2051_v25, %v1961_v5  ;;  %v1761_v40 = vmax.f32 %v1743_v47, %v1745_v54  ;;  %v5222_v5 = vpack.c.bf16 %v4585_v38, %v4584_v17  ;;  %v4586_v37 = vld [vmem:[%s9024_s1 + $0x3d0] sm:$0xff]  ;;  %v4588_v47 = vld [vmem:[%s9024_s1 + $0x3e0] sm:$0xff]  ;;  %v4589_v54 = vld [vmem:[%s9024_s1 + $0x3e8] sm:$0xff] }
 0x22b   : > { %v7476_v35 = vpop.f32.mrb[96].mxu1  ;;  %v2069_v58 = vsel %vm2062_vm7, %v2060_v9, %v1985_v51  ;;  %v7518_v51 = vsel %vm256_vm2, %v2121_v15, 0.0  ;;  %v5228_v25 = vpack.c.bf16 %v4589_v54, %v4588_v47  ;;  %v4621_v47 = vld [vmem:[%s9024_s1 + $0x488] sm:$0xff] }
 0x22c   : > { %v1746_v10 = vmax.f32 %v1730_v34, 0.0  ;;  %v2431_v0 = vpop.f32.mrb[97].mxu1  ;;  %v2078_v55 = vsel %vm2071_vm8, %v2069_v58, %v2001_v48  ;;  %v1777_v6 = vmax.f32 %v1761_v40, %v1741_v63  ;;  %v4590_v34 = vld [vmem:[%s9024_s1 + $0x3f0] sm:$0xff]  ;;  %v4591_v48 = vld [vmem:[%s9024_s1 + $0x3f8] sm:$0xff]  ;;  %v4592_v40 = vld [vmem:[%s9024_s1 + $0x400] sm:$0xff]  ;;  %v2122_v58 = vrot.slane %v7354_v24, 1 }
 0x22d   : > { %v7483_v60 = vsel %vm256_vm2, %v2078_v55, %v2017_v46  ;;  %v5231_v9 = vpack.c.bf16 %v4591_v48, %v4590_v34  ;;  %v4593_v46 = vld [vmem:[%s9024_s1 + $0x408] sm:$0xff]  ;;  %v4594_v55 = vld [vmem:[%s9024_s1 + $0x410] sm:$0xff]  ;;  %v4623_v34 = vld [vmem:[%s9024_s1 + $0x498] sm:$0xff] }
 0x22e   : > { %v1762_v61 = vmax.f32 %v1744_v4, %v1746_v10  ;;  %v2102_v59 = vrot.slane %v7483_v60, 7  ;;  %v1794_v28 = vrot.slane %v1777_v6, 1  ;;  %v1818_v56 = vrot.slane %v1777_v6, 2  ;;  %v4625_v48 = vld [vmem:[%s9024_s1 + $0x4a8] sm:$0xff] }
 0x22f   : > { %v5234_v10 = vpack.c.bf16 %v4593_v46, %v4592_v40  ;;  %v2126_v15 = vrot.slane %v7483_v60, 1  ;;  %v4626_v40 = vld [vmem:[%s9024_s1 + $0x4b0] sm:$0xff]  ;;  %v4627_v46 = vld [vmem:[%s9024_s1 + $0x4b8] sm:$0xff] }
 0x230   : > { %v1778_v18 = vmax.f32 %v1762_v61, %v1742_v33  ;;  %v2118_v49 = vsel %vm206_vm1, 0.0, %v2102_v59  ;;  %v1810_v41 = vmax.f32 %v1777_v6, %v1794_v28  ;;  %v7560_v61 = vsel %vm256_vm2, %v2122_v58, 0.0  ;;  %v4596_v59 = vld [vmem:[%s9024_s1 + $0x420] sm:$0xff]  ;;  %v4597_v28 = vld [vmem:[%s9024_s1 + $0x428] sm:$0xff] }
 0x231   : > { %2164 = vrot.lane.b32.xlu0 %v2118_v49, %s5703_s17  ;;  %v4598_v49 = vld [vmem:[%s9024_s1 + $0x430] sm:$0xff]  ;;  %v5303_v58 = vpack.c.bf16 %v4627_v46, %v4626_v40  ;;  %v4653_v40 = vld [vmem:[%s9024_s1 + $0x588] sm:$0xff] }
 0x232   : > { %v1850_v11 = vrot.slane %v1778_v18, 1  ;;  %v1834_v2 = vmax.f32 %v1810_v41, %v1818_v56  ;;  %v1874_v63 = vrot.slane %v1778_v18, 2 }
 0x234   : > { %v1866_v1 = vmax.f32 %v1777_v6, %v1850_v11  ;;  %v1898_v21 = vmax.f32 %v1778_v18, %v1850_v11  ;;  %v1922_v3 = vrot.slane %v1834_v2, 1  ;;  %v1938_v8 = vrot.slane %v1834_v2, 2  ;;  %v4595_v6 = vld [vmem:[%s9024_s1 + $0x418] sm:$0xff] }
 0x235   : > { %v2034_v16 = vsel %vm206_vm1, %v1810_v41, %v1834_v2  ;;  %v5240_v18 = vpack.c.bf16 %v4597_v28, %v4596_v59  ;;  %v4599_v41 = vld [vmem:[%s9024_s1 + $0x438] sm:$0xff]  ;;  %v2123_v11 = vrot.slane %v7385_v36, 1  ;;  %v4600_v2 = vld [vmem:[%s9024_s1 + $0x440] sm:$0xff]  ;;  %v4633_v59 = vld [vmem:[%s9024_s1 + $0x4e8] sm:$0xff] }
 0x236   : > { %v1890_v57 = vmax.f32 %v1866_v1, %v1874_v63  ;;  %v1906_v43 = vmax.f32 %v1898_v21, %v1874_v63  ;;  %v2043_v27 = vsel %vm2035_vm4, %v2034_v16, %v1922_v3  ;;  %v5243_v56 = vpack.c.bf16 %v4599_v41, %v4598_v49  ;;  %v4601_v1 = vld [vmem:[%s9024_s1 + $0x448] sm:$0xff]  ;;  %v4602_v16 = vld [vmem:[%s9024_s1 + $0x450] sm:$0xff]  ;;  %v4635_v49 = vld [vmem:[%s9024_s1 + $0x4f8] sm:$0xff] }
 0x237   : > { %v2052_v12 = vsel %vm2044_vm5, %v2043_v27, %v1938_v8  ;;  %v5246_v3 = vpack.c.bf16 %v4601_v1, %v4600_v2  ;;  %v7595_v8 = vsel %vm256_vm2, %v2123_v11, 0.0  ;;  %v4605_v27 = vld [vmem:[%s9024_s1 + $0x468] sm:$0xff]  ;;  %v4638_v1 = vld [vmem:[%s9024_s1 + $0x510] sm:$0xff] }
 0x238   : > { %v1962_v33 = vrot.slane %v1890_v57, 3  ;;  %v1986_v45 = vrot.slane %v1906_v43, 4  ;;  %v2002_v44 = vrot.slane %v1906_v43, 5  ;;  %v2018_v23 = vrot.slane %v1906_v43, 6  ;;  %v4603_v57 = vld [vmem:[%s9024_s1 + $0x458] sm:$0xff]  ;;  %v4604_v43 = vld [vmem:[%s9024_s1 + $0x460] sm:$0xff] }
 0x239   : > { %v4637_v11 = vld [vmem:[%s9024_s1 + $0x508] sm:$0xff] }
 0x23a   : > { %v2061_v13 = vsel %vm2053_vm6, %v2052_v12, %v1962_v33  ;;  %v5252_v33 = vpack.c.bf16 %v4605_v27, %v4604_v43  ;;  %v4607_v12 = vld [vmem:[%s9024_s1 + $0x478] sm:$0xff] }
 0x23b   : > { %v2070_v42 = vsel %vm2062_vm7, %v2061_v13, %v1986_v45  ;;  %v4606_v45 = vld [vmem:[%s9024_s1 + $0x470] sm:$0xff]  ;;  %v2124_v13 = vrot.slane %v7423_v31, 1 }
 0x23c   : > { %v2079_v39 = vsel %vm2071_vm8, %v2070_v42, %v2002_v44  ;;  %v5255_v44 = vpack.c.bf16 %v4607_v12, %v4606_v45 }
 0x23d   : > { %v7497_v29 = vsel %vm256_vm2, %v2079_v39, %v2018_v23  ;;  %v2140_v39 = vsel %vm256_vm2, %v2124_v13, 0.0 }
 0x23e   : > { %v2103_v32 = vrot.slane %v7497_v29, 7 }
 0x240   : > { %v2119_v7 = vsel %vm206_vm1, 0.0, %v2103_v32  ;;  %v2125_v32 = vrot.slane %v7457_v53, 1 }
 0x241   : > { %v2153_v30 = vpop.permute.xlu0 %2152  ;;  %2166 = vrot.lane.b32.xlu1 %v2119_v7, %s5703_s17 }
 0x242   : > { %v2176_v52 = vsel %vm376_vm0, %v7266_v14, %v2153_v30  ;;  %v5225_v14 = vpack.c.bf16 %v4587_v22, %v4586_v37 }
 0x243   : > { %2323 = vmatmul.mubr.f32.vlgmr.msra.gmra.mrb[96].mxu0 %v2176_v52  ;;  %2433 = vmatmul.mubr.f32.gmra.mrb[98].mxu1 %v2176_v52 }
 0x244   : > { %4567 = vmatprep.mubr.msk.f32.mxu0 %vm376_vm0, %v7518_v51  ;;  %4578 = vmatprep.mubr.msk.f32.mxu1 %vm376_vm0, %v7518_v51 }
 0x245   : > { %5223 = vmatpush1.bf16.msra.mxu0 %v5222_v5  ;;  %v2142_v5 = vsel %vm256_vm2, %v2126_v15, 0.0 }
 0x246   : > { %5224 = vmatprep.subr.bf16.mxu0 %v9077_v20 }
 0x249   : > { %5226 = vmatpush1.bf16.msra.mxu0 %v5225_v14  ;;  %v4620_v14 = vld [vmem:[%s9024_s1 + $0x480] sm:$0xff] }
 0x24a   : > { %5227 = vmatprep.subr.bf16.mxu0 %v9077_v20 }
 0x24d   : > { %5229 = vmatpush1.bf16.msra.mxu0 %v5228_v25  ;;  %v4622_v25 = vld [vmem:[%s9024_s1 + $0x490] sm:$0xff] }
 0x24e   : > { %5230 = vmatprep.subr.bf16.mxu0 %v9077_v20 }
 0x250   : > { %v2155_v4 = vpop.permute.xlu1 %2154 }
 0x251   : > { %5232 = vmatpush1.bf16.msra.mxu0 %v5231_v9  ;;  %v7548_v0 = vsel %vm376_vm0, %v7312_v62, %v2155_v4  ;;  %v5237_v62 = vpack.c.bf16 %v4595_v6, %v4594_v55  ;;  %v4628_v4 = vld [vmem:[%s9024_s1 + $0x4c0] sm:$0xff]  ;;  %v4630_v55 = vld [vmem:[%s9024_s1 + $0x4d0] sm:$0xff]  ;;  %v4631_v6 = vld [vmem:[%s9024_s1 + $0x4d8] sm:$0xff] }
 0x252   : > { %5233 = vmatprep.subr.bf16.mxu0 %v9077_v20  ;;  %2328 = vmatmul.mubr.f32.gmra.mrb[98].mxu0 %v7548_v0 }
 0x253   : > { %2438 = vmatmul.mubr.f32.gmra.mrb[100].mxu1 %v7548_v0  ;;  %4568 = vmatprep.mubr.msk.f32.mxu0 %vm376_vm0, %v7560_v61 }
 0x254   : > { %4579 = vmatprep.mubr.msk.f32.mxu1 %vm376_vm0, %v7560_v61 }
 0x255   : > { %5235 = vmatpush1.bf16.msra.mxu0 %v5234_v10  ;;  %v4629_v10 = vld [vmem:[%s9024_s1 + $0x4c8] sm:$0xff] }
 0x256   : > { %5236 = vmatprep.subr.bf16.mxu0 %v9077_v20 }
 0x259   : > { %5238 = vmatpush1.bf16.msra.mxu0 %v5237_v62  ;;  %v4632_v62 = vld [vmem:[%s9024_s1 + $0x4e0] sm:$0xff] }
 0x25a   : > { %5239 = vmatprep.subr.bf16.mxu0 %v9077_v20  ;;  %v5312_v28 = vpack.c.bf16 %v4633_v59, %v4632_v62  ;;  %v4659_v62 = vld [vmem:[%s9024_s1 + $0x5b8] sm:$0xff] }
 0x25d   : > { %5241 = vmatpush1.bf16.msra.mxu0 %v5240_v18  ;;  %v4634_v18 = vld [vmem:[%s9024_s1 + $0x4f0] sm:$0xff] }
 0x25e   : > { %5242 = vmatprep.subr.bf16.mxu0 %v9077_v20  ;;  %v5315_v41 = vpack.c.bf16 %v4635_v49, %v4634_v18 }
 0x260   : > { %v2157_v63 = vpop.permute.xlu0 %2156 }
 0x261   : > { %v7590_v21 = vsel %vm376_vm0, %v7354_v24, %v2157_v63  ;;  %5244 = vmatpush1.bf16.msra.mxu0 %v5243_v56  ;;  %v5249_v24 = vpack.c.bf16 %v4603_v57, %v4602_v16  ;;  %v4636_v56 = vld [vmem:[%s9024_s1 + $0x500] sm:$0xff]  ;;  %v4639_v63 = vld [vmem:[%s9024_s1 + $0x518] sm:$0xff]  ;;  %v4642_v57 = vld [vmem:[%s9024_s1 + $0x530] sm:$0xff] }
 0x262   : > { %2333 = vmatmul.mubr.f32.gmra.mrb[100].mxu0 %v7590_v21  ;;  %2443 = vmatmul.mubr.f32.gmra.mrb[102].mxu1 %v7590_v21  ;;  %v5318_v2 = vpack.c.bf16 %v4637_v11, %v4636_v56  ;;  %v4660_v11 = vld [vmem:[%s9024_s1 + $0x5c0] sm:$0xff] }
 0x263   : > { %4569 = vmatprep.mubr.msk.f32.mxu0 %vm376_vm0, %v7595_v8  ;;  %4580 = vmatprep.mubr.msk.f32.mxu1 %vm376_vm0, %v7595_v8 }
 0x264   : > { %5245 = vmatprep.subr.bf16.mxu0 %v9077_v20 }
 0x265   : > { %5247 = vmatpush1.bf16.msra.mxu0 %v5246_v3  ;;  %v4640_v3 = vld [vmem:[%s9024_s1 + $0x520] sm:$0xff] }
 0x266   : > { %5248 = vmatprep.subr.bf16.mxu0 %v9077_v20 }
 0x269   : > { %5250 = vmatpush1.bf16.msra.mxu0 %v5249_v24  ;;  %v4643_v24 = vld [vmem:[%s9024_s1 + $0x538] sm:$0xff] }
 0x26a   : > { %5251 = vmatprep.subr.bf16.mxu0 %v9077_v20  ;;  %v5327_v43 = vpack.c.bf16 %v4643_v24, %v4642_v57  ;;  %v4666_v24 = vld [vmem:[%s9024_s1 + $0x5f0] sm:$0xff] }
 0x26d   : > { %5253 = vmatpush1.bf16.msra.mxu0 %v5252_v33 }
 0x26e   : > { %5254 = vmatprep.subr.bf16.mxu0 %v9077_v20 }
 0x270   : > { %v2159_v23 = vpop.permute.xlu1 %2158 }
 0x271   : > { %v2179_v42 = vsel %vm376_vm0, %v7385_v36, %v2159_v23  ;;  %5256 = vmatpush1.bf16.msra.mxu0 %v5255_v44  ;;  %v2141_v36 = vsel %vm256_vm2, %v2125_v32, 0.0 }
 0x272   : > { %2338 = vmatmul.mubr.f32.gmra.mrb[102].mxu0 %v2179_v42  ;;  %2448 = vmatmul.mubr.f32.gmra.mrb[104].mxu1 %v2179_v42 }
 0x273   : > { %4570 = vmatprep.mubr.msk.f32.mxu0 %vm376_vm0, %v2140_v39  ;;  %4581 = vmatprep.mubr.msk.f32.mxu1 %vm376_vm0, %v2140_v39 }
 0x274   : > { %5293 = vmatprep.subr.bf16.mxu0 %v9077_v20 }
 0x283   : > { %v2161_v17 = vpop.permute.xlu0 %2160 }
 0x284   : > { %v2180_v38 = vsel %vm376_vm0, %v7423_v31, %v2161_v17  ;;  %v2127_v31 = vrot.slane %v7497_v29, 1 }
 0x285   : > { %2343 = vmatmul.mubr.f32.gmra.mrb[104].mxu0 %v2180_v38  ;;  %2453 = vmatmul.mubr.f32.gmra.mrb[106].mxu1 %v2180_v38 }
 0x286   : > { %4571 = vmatprep.mubr.msk.f32.mxu0 %vm376_vm0, %v2141_v36  ;;  %4582 = vmatprep.mubr.msk.f32.mxu1 %vm376_vm0, %v2141_v36  ;;  %v2143_v22 = vsel %vm256_vm2, %v2127_v31, 0.0 }
 0x293   : > { %v2163_v7 = vpop.permute.xlu1 %2162 }
 0x294   : > { %v2181_v30 = vsel %vm376_vm0, %v7457_v53, %v2163_v7 }
 0x295   : > { %2348 = vmatmul.mubr.f32.gmra.mrb[106].mxu0 %v2181_v30  ;;  %2458 = vmatmul.mubr.f32.gmra.mrb[108].mxu1 %v2181_v30 }
 0x296   : > { %4572 = vmatprep.mubr.msk.f32.mxu0 %vm376_vm0, %v2142_v5  ;;  %4583 = vmatprep.mubr.msk.f32.mxu1 %vm376_vm0, %v2142_v5 }
 0x2a3   : > { %v2165_v52 = vpop.permute.xlu0 %2164 }
 0x2a4   : > { %v2182_v37 = vsel %vm376_vm0, %v7483_v60, %v2165_v52  ;;  %v5294_v60 = vpack.c.bf16 %v4621_v47, %v4620_v14  ;;  %v4647_v52 = vld [vmem:[%s9024_s1 + $0x558] sm:$0xff] }
 0x2a5   : > { %2353 = vmatmul.mubr.f32.gmra.mrb[108].mxu0 %v2182_v37  ;;  %2463 = vmatmul.mubr.f32.gmra.mrb[110].mxu1 %v2182_v37 }
 0x2a6   : > { %4573 = vmatprep.mubr.msk.f32.mxu0 %vm376_vm0, %v2143_v22 }
 0x2b3   : > { %v2167_v53 = vpop.permute.xlu1 %2166 }
 0x2b4   : > { %v2183_v54 = vsel %vm376_vm0, %v7497_v29, %v2167_v53  ;;  %v5297_v29 = vpack.c.bf16 %v4623_v34, %v4622_v25  ;;  %v4649_v53 = vld [vmem:[%s9024_s1 + $0x568] sm:$0xff]  ;;  %v4651_v25 = vld [vmem:[%s9024_s1 + $0x578] sm:$0xff] }
 0x2b5   : > { %2358 = vmatmul.mubr.f32.gmra.mrb[110].mxu0 %v2183_v54 }
 0x2b6   : > { %4608 = vmatprep.mubr.msk.f32.mxu0 %vm376_vm0, %v7518_v51  ;;  %v4624_v51 = vld [vmem:[%s9024_s1 + $0x4a0] sm:$0xff] }
 0x2b7   : > { %v5300_v9 = vpack.c.bf16 %v4625_v48, %v4624_v51 }
 0x2b9   : > { %2558 = vmatmul.mubr.f32.vlgmr.msra.gmra.mrb[112].mxu0 %v7548_v0  ;;  %v5306_v0 = vpack.c.bf16 %v4629_v10, %v4628_v4  ;;  %v4655_v4 = vld [vmem:[%s9024_s1 + $0x598] sm:$0xff] }
 0x2ba   : > { %5295 = vmatpush1.bf16.msra.mxu0 %v5294_v60  ;;  %4609 = vmatprep.mubr.msk.f32.mxu0 %vm376_vm0, %v7560_v61  ;;  %v5309_v61 = vpack.c.bf16 %v4631_v6, %v4630_v55  ;;  %v4650_v60 = vld [vmem:[%s9024_s1 + $0x570] sm:$0xff]  ;;  %v4657_v55 = vld [vmem:[%s9024_s1 + $0x5a8] sm:$0xff] }
 0x2bb   : > { %5296 = vmatprep.subr.bf16.mxu0 %v9077_v20  ;;  %v5267_v48 = vpack.c.bf16 %v4651_v25, %v4650_v60 }
 0x2bd   : > { %2563 = vmatmul.mubr.f32.gmra.mrb[114].mxu0 %v7590_v21  ;;  %v5321_v21 = vpack.c.bf16 %v4639_v63, %v4638_v1  ;;  %v4662_v63 = vld [vmem:[%s9024_s1 + $0x5d0] sm:$0xff] }
 0x2be   : > { %5298 = vmatpush1.bf16.msra.mxu0 %v5297_v29  ;;  %4610 = vmatprep.mubr.msk.f32.mxu0 %vm376_vm0, %v7595_v8  ;;  %v4641_v8 = vld [vmem:[%s9024_s1 + $0x528] sm:$0xff] }
 0x2bf   : > { %5299 = vmatprep.subr.bf16.mxu0 %v9077_v20  ;;  %v5324_v16 = vpack.c.bf16 %v4641_v8, %v4640_v3  ;;  %v4664_v8 = vld [vmem:[%s9024_s1 + $0x5e0] sm:$0xff] }
 0x2c1   : > { %2568 = vmatmul.mubr.f32.gmra.mrb[116].mxu0 %v2179_v42 }
 0x2c2   : > { %5301 = vmatpush1.bf16.msra.mxu0 %v5300_v9  ;;  %4611 = vmatprep.mubr.msk.f32.mxu0 %vm376_vm0, %v2140_v39  ;;  %v4652_v9 = vld [vmem:[%s9024_s1 + $0x580] sm:$0xff] }
 0x2c3   : > { %5302 = vmatprep.subr.bf16.mxu0 %v9077_v20  ;;  %v5270_v46 = vpack.c.bf16 %v4653_v40, %v4652_v9 }
 0x2c5   : > { %2573 = vmatmul.mubr.f32.gmra.mrb[118].mxu0 %v2180_v38 }
 0x2c6   : > { %5304 = vmatpush1.bf16.msra.mxu0 %v5303_v58  ;;  %4612 = vmatprep.mubr.msk.f32.mxu0 %vm376_vm0, %v2141_v36  ;;  %v4654_v58 = vld [vmem:[%s9024_s1 + $0x590] sm:$0xff] }
 0x2c7   : > { %5305 = vmatprep.subr.bf16.mxu0 %v9077_v20  ;;  %v5273_v10 = vpack.c.bf16 %v4655_v4, %v4654_v58 }
 0x2c9   : > { %2578 = vmatmul.mubr.f32.gmra.mrb[120].mxu0 %v2181_v30  ;;  %v4644_v30 = vld [vmem:[%s9024_s1 + $0x540] sm:$0xff] }
 0x2ca   : > { %5307 = vmatpush1.bf16.msra.mxu0 %v5306_v0  ;;  %4613 = vmatprep.mubr.msk.f32.mxu0 %vm376_vm0, %v2142_v5  ;;  %v4646_v5 = vld [vmem:[%s9024_s1 + $0x550] sm:$0xff]  ;;  %v4656_v0 = vld [vmem:[%s9024_s1 + $0x5a0] sm:$0xff] }
 0x2cb   : > { %5308 = vmatprep.subr.bf16.mxu0 %v9077_v20  ;;  %v5276_v6 = vpack.c.bf16 %v4657_v55, %v4656_v0 }
 0x2cd   : > { %2583 = vmatmul.mubr.f32.gmra.mrb[122].mxu0 %v2182_v37  ;;  %v5261_v37 = vpack.c.bf16 %v4647_v52, %v4646_v5 }
 0x2ce   : > { %5310 = vmatpush1.bf16.msra.mxu0 %v5309_v61  ;;  %4614 = vmatprep.mubr.msk.f32.mxu0 %vm376_vm0, %v2143_v22  ;;  %v4648_v22 = vld [vmem:[%s9024_s1 + $0x560] sm:$0xff]  ;;  %v4658_v61 = vld [vmem:[%s9024_s1 + $0x5b0] sm:$0xff] }
 0x2cf   : > { %5311 = vmatprep.subr.bf16.mxu0 %v9077_v20  ;;  %v5264_v14 = vpack.c.bf16 %v4649_v53, %v4648_v22  ;;  %v5279_v18 = vpack.c.bf16 %v4659_v62, %v4658_v61 }
 0x2d1   : > { %2588 = vmatmul.mubr.f32.gmra.mrb[124].mxu0 %v2183_v54 }
 0x2d2   : > { %5313 = vmatpush1.bf16.msra.mxu0 %v5312_v28  ;;  %4615 = vmatprep.mubr.msk.f32.mxu0 %vm376_vm0, %v9095_v19 }
 0x2d3   : > { %5314 = vmatprep.subr.bf16.mxu0 %v9077_v20 }
 0x2d5   : > { %4617 = vmatmul.mubr.msk.f32.gmra.mrb[126].mxu0 %vm6278_vm3, %v9093_v50 }
 0x2d6   : > { %5316 = vmatpush1.bf16.msra.mxu0 %v5315_v41  ;;  %4676 = vmatprep.mubr.msk.f32.mxu0 %vm376_vm0, %v9095_v19 }
 0x2d7   : > { %5317 = vmatprep.subr.bf16.mxu0 %v9077_v20 }
 0x2da   : > { %5319 = vmatpush1.bf16.msra.mxu0 %v5318_v2  ;;  %v4661_v2 = vld [vmem:[%s9024_s1 + $0x5c8] sm:$0xff] }
 0x2db   : > { %5320 = vmatprep.subr.bf16.mxu0 %v9077_v20  ;;  %v5282_v1 = vpack.c.bf16 %v4661_v2, %v4660_v11 }
 0x2de   : > { %5322 = vmatpush1.bf16.msra.mxu0 %v5321_v21  ;;  %v4663_v21 = vld [vmem:[%s9024_s1 + $0x5d8] sm:$0xff] }
 0x2df   : > { %5323 = vmatprep.subr.bf16.mxu0 %v9077_v20  ;;  %v5285_v3 = vpack.c.bf16 %v4663_v21, %v4662_v63 }
 0x2e2   : > { %5325 = vmatpush1.bf16.msra.mxu0 %v5324_v16  ;;  %v4665_v16 = vld [vmem:[%s9024_s1 + $0x5e8] sm:$0xff] }
 0x2e3   : > { %5326 = vmatprep.subr.bf16.mxu0 %v9077_v20  ;;  %v5288_v57 = vpack.c.bf16 %v4665_v16, %v4664_v8 }
 0x2e6   : > { %5328 = vmatpush1.bf16.msra.mxu0 %v5327_v43  ;;  %v4667_v43 = vld [vmem:[%s9024_s1 + $0x5f8] sm:$0xff] }
 0x2e7   : > { %5365 = vmatprep.subr.bf16.mxu0 %v9077_v20 }
 0x2e9   : > { %4678 = vmatmul.mubr.msk.f32.vlgmr.msra.gmra.mrb[128].mxu0 %vm6278_vm3, %v9093_v50 }
 0x316   : > { %v2324_v27 = vpop.f32.mrb[96].mxu0  ;;  %v2434_v33 = vpop.f32.mrb[98].mxu1 }
 0x317   : > { %v7756_v45 = vadd.f32 %v7476_v35, %v2324_v27  ;;  %v2326_v12 = vpop.f32.mrb[97].mxu0  ;;  %v2436_v44 = vpop.f32.mrb[99].mxu1  ;;  %v4645_v35 = vld [vmem:[%s9024_s1 + $0x548] sm:$0xff]  ;;  %v5291_v27 = vpack.c.bf16 %v4667_v43, %v4666_v24 }
 0x318   : > { %v5258_v31 = vpack.c.bf16 %v4645_v35, %v4644_v30 }
 0x31a   : > { %5259 = vmatpush1.bf16.msra.mxu1 %v5258_v31  ;;  %v4619_v31 = vld [vmem:[%s9025_s2 + $0x1] ss:$0 sm:$0xff] }
 0x31b   : > { %5260 = vmatprep.subr.bf16.mxu1 %v9077_v20 }
 0x31e   : > { %5262 = vmatpush1.bf16.msra.mxu1 %v5261_v37 }
 0x31f   : > { %5263 = vmatprep.subr.bf16.mxu1 %v9077_v20 }
 0x322   : > { %5265 = vmatpush1.bf16.msra.mxu1 %v5264_v14 }
 0x323   : > { %5266 = vmatprep.subr.bf16.mxu1 %v9077_v20 }
 0x325   : > { %v2329_v13 = vpop.f32.mrb[98].mxu0 }
 0x326   : > { %v2439_v23 = vpop.f32.mrb[100].mxu1  ;;  %v7758_v42 = vadd.f32 %v2434_v33, %v2329_v13  ;;  %v2331_v39 = vpop.f32.mrb[99].mxu0  ;;  %5268 = vmatpush1.bf16.msra.mxu1 %v5267_v48 }
 0x327   : > { %v2441_v32 = vpop.f32.mrb[101].mxu1  ;;  %5269 = vmatprep.subr.bf16.mxu1 %v9077_v20 }
 0x32a   : > { %5271 = vmatpush1.bf16.msra.mxu1 %v5270_v46 }
 0x32b   : > { %5272 = vmatprep.subr.bf16.mxu1 %v9077_v20 }
 0x32e   : > { %5274 = vmatpush1.bf16.msra.mxu1 %v5273_v10 }
 0x32f   : > { %5275 = vmatprep.subr.bf16.mxu1 %v9077_v20 }
 0x332   : > { %5277 = vmatpush1.bf16.msra.mxu1 %v5276_v6 }
 0x333   : > { %5278 = vmatprep.subr.bf16.mxu1 %v9077_v20 }
 0x335   : > { %v2334_v17 = vpop.f32.mrb[100].mxu0  ;;  %v2444_v38 = vpop.f32.mrb[102].mxu1 }
 0x336   : > { %v7760_v36 = vadd.f32 %v2439_v23, %v2334_v17  ;;  %v2336_v15 = vpop.f32.mrb[101].mxu0  ;;  %v2446_v7 = vpop.f32.mrb[103].mxu1  ;;  %5280 = vmatpush1.bf16.msra.mxu1 %v5279_v18 }
 0x337   : > { %5281 = vmatprep.subr.bf16.mxu1 %v9077_v20 }
 0x33a   : > { %5283 = vmatpush1.bf16.msra.mxu1 %v5282_v1 }
 0x33b   : > { %5284 = vmatprep.subr.bf16.mxu1 %v9077_v20 }
 0x33e   : > { %5286 = vmatpush1.bf16.msra.mxu1 %v5285_v3 }
 0x33f   : > { %5287 = vmatprep.subr.bf16.mxu1 %v9077_v20 }
 0x342   : > { %5289 = vmatpush1.bf16.msra.mxu1 %v5288_v57 }
 0x343   : > { %5290 = vmatprep.subr.bf16.mxu1 %v9077_v20 }
 0x345   : > { %v2339_v47 = vpop.f32.mrb[102].mxu0  ;;  %v2449_v54 = vpop.f32.mrb[104].mxu1 }
 0x346   : > { %v7788_v34 = vadd.f32 %v2444_v38, %v2339_v47  ;;  %v2341_v29 = vpop.f32.mrb[103].mxu0  ;;  %v2451_v51 = vpop.f32.mrb[105].mxu1  ;;  %5292 = vmatpush1.bf16.msra.mxu1 %v5291_v27 }
 0x347   : > { %5329 = vmatprep.subr.bf16.mxu1 %v9077_v20 }
 0x358   : > { %v2344_v59 = vpop.f32.mrb[104].mxu0  ;;  %v2454_v28 = vpop.f32.mrb[106].mxu1 }
 0x359   : > { %v7818_v49 = vadd.f32 %v2449_v54, %v2344_v59  ;;  %v2346_v41 = vpop.f32.mrb[105].mxu0  ;;  %v2456_v56 = vpop.f32.mrb[107].mxu1 }
 0x368   : > { %v2349_v33 = vpop.f32.mrb[106].mxu0  ;;  %v2459_v12 = vpop.f32.mrb[108].mxu1 }
 0x369   : > { %v2455_v44 = vadd.f32 %v2454_v28, %v2349_v33  ;;  %v2351_v13 = vpop.f32.mrb[107].mxu0  ;;  %v2461_v23 = vpop.f32.mrb[109].mxu1 }
 0x378   : > { %v2354_v39 = vpop.f32.mrb[108].mxu0  ;;  %v2464_v32 = vpop.f32.mrb[110].mxu1 }
 0x379   : > { %v2460_v17 = vadd.f32 %v2459_v12, %v2354_v39  ;;  %v2356_v38 = vpop.f32.mrb[109].mxu0  ;;  %v2466_v15 = vpop.f32.mrb[111].mxu1 }
 0x388   : > { %v2359_v7 = vpop.f32.mrb[110].mxu0 }
 0x389   : > { %v2465_v30 = vadd.f32 %v2464_v32, %v2359_v7  ;;  %v2361_v35 = vpop.f32.mrb[111].mxu0 }
 0x38c   : > { %v2559_v5 = vpop.f32.mrb[112].mxu0 }
 0x38d   : > { %v2598_v52 = vadd.f32 %v2559_v5, %v7756_v45  ;;  %v2561_v37 = vpop.f32.mrb[113].mxu0 }
 0x38f   : > { %v2614_v22 = vadd.f32 %v4619_v31, %v2598_v52  ;;  %v4687_v52 = vld [vmem:[%s9024_s1 + $0x608] sm:$0xff] }
 0x390   : > { %v2564_v53 = vpop.f32.mrb[114].mxu0 }
 0x391   : > { %v7854_v14 = vmax.f32 %v2614_v22, 0.0  ;;  %v2599_v47 = vadd.f32 %v2564_v53, %v7758_v42  ;;  %v2566_v54 = vpop.f32.mrb[115].mxu0 }
 0x392   : > { %v4689_v54 = vld [vmem:[%s9024_s1 + $0x618] sm:$0xff] }
 0x393   : > { %v2615_v60 = vadd.f32 %v4619_v31, %v2599_v47  ;;  %v2662_v25 = vrot.slane %v7854_v14, 1  ;;  %v2638_v29 = vrot.slane %v7854_v14, 7  ;;  %v4688_v47 = vld [vmem:[%s9024_s1 + $0x610] sm:$0xff] }
 0x394   : > { %v2569_v51 = vpop.f32.mrb[116].mxu0 }
 0x395   : > { %v7859_v48 = vmax.f32 %v2615_v60, 0.0  ;;  %v2600_v9 = vadd.f32 %v2569_v51, %v7760_v36  ;;  %v2571_v40 = vpop.f32.mrb[117].mxu0  ;;  %v2678_v45 = vsel %vm256_vm2, %v2662_v25, 0.0  ;;  %v2654_v46 = vsel %vm206_vm1, 0.0, %v2638_v29 }
 0x396   : > { %4668 = vmatprep.mubr.msk.f32.mxu1 %vm376_vm0, %v2678_v45  ;;  %4679 = vmatprep.mubr.msk.f32.mxu0 %vm376_vm0, %v2678_v45  ;;  %v4690_v40 = vld [vmem:[%s9024_s1 + $0x620] sm:$0xff]  ;;  %v4691_v45 = vld [vmem:[%s9024_s1 + $0x628] sm:$0xff] }
 0x397   : > { %v2616_v42 = vadd.f32 %v4619_v31, %v2600_v9  ;;  %2694 = vrot.lane.b32.xlu0 %v2654_v46, %s5703_s17  ;;  %v2639_v58 = vrot.slane %v7859_v48, 7  ;;  %v2663_v37 = vrot.slane %v7859_v48, 1  ;;  %v5333_v9 = vpack.c.bf16 %v4689_v54, %v4688_v47  ;;  %v4709_v47 = vld [vmem:[%s9024_s1 + $0x6b8] sm:$0xff] }
 0x398   : > { %v2574_v4 = vpop.f32.mrb[118].mxu0 }
 0x399   : > { %v7868_v10 = vmax.f32 %v2616_v42, 0.0  ;;  %v2601_v0 = vadd.f32 %v2574_v4, %v7788_v34  ;;  %v2576_v36 = vpop.f32.mrb[119].mxu0  ;;  %v2655_v55 = vsel %vm206_vm1, 0.0, %v2639_v58  ;;  %v7920_v25 = vsel %vm256_vm2, %v2663_v37, 0.0  ;;  %v4707_v37 = vld [vmem:[%s9024_s1 + $0x6a8] sm:$0xff] }
 0x39a   : > { %2696 = vrot.lane.b32.xlu1 %v2655_v55, %s5703_s17  ;;  %v5336_v58 = vpack.c.bf16 %v4691_v45, %v4690_v40  ;;  %v4693_v36 = vld [vmem:[%s9024_s1 + $0x638] sm:$0xff]  ;;  %v4726_v45 = vld [vmem:[%s9024_s1 + $0x6e0] sm:$0xff] }
 0x39b   : > { %v2617_v6 = vadd.f32 %v4619_v31, %v2601_v0  ;;  %v2640_v61 = vrot.slane %v7868_v10, 7  ;;  %v2664_v29 = vrot.slane %v7868_v10, 1  ;;  %v4692_v0 = vld [vmem:[%s9024_s1 + $0x630] sm:$0xff] }
 0x39c   : > { %v2579_v62 = vpop.f32.mrb[120].mxu0 }
 0x39d   : > { %v7874_v59 = vmax.f32 %v2617_v6, 0.0  ;;  %v2602_v28 = vadd.f32 %v2579_v62, %v7818_v49  ;;  %v2581_v18 = vpop.f32.mrb[121].mxu0  ;;  %v2656_v41 = vsel %vm206_vm1, 0.0, %v2640_v61  ;;  %v7941_v46 = vsel %vm256_vm2, %v2664_v29, 0.0 }
 0x39e   : > { %2698 = vrot.lane.b32.xlu0 %v2656_v41, %s5703_s17  ;;  %v5339_v61 = vpack.c.bf16 %v4693_v36, %v4692_v0  ;;  %v4695_v18 = vld [vmem:[%s9024_s1 + $0x648] sm:$0xff] }
 0x39f   : > { %v2618_v56 = vadd.f32 %v4619_v31, %v2602_v28  ;;  %v2641_v34 = vrot.slane %v7874_v59, 7  ;;  %v2665_v42 = vrot.slane %v7874_v59, 1  ;;  %v4694_v28 = vld [vmem:[%s9024_s1 + $0x640] sm:$0xff]  ;;  %v4731_v0 = vld [vmem:[%s9024_s1 + $0x708] sm:$0xff] }
 0x3a0   : > { %v2584_v11 = vpop.f32.mrb[122].mxu0 }
 0x3a1   : > { %v7880_v2 = vmax.f32 %v2618_v56, 0.0  ;;  %v2603_v1 = vadd.f32 %v2584_v11, %v2455_v44  ;;  %v2586_v63 = vpop.f32.mrb[123].mxu0  ;;  %v2657_v21 = vsel %vm206_vm1, 0.0, %v2641_v34  ;;  %v7962_v55 = vsel %vm256_vm2, %v2665_v42, 0.0  ;;  %v4727_v42 = vld [vmem:[%s9024_s1 + $0x6e8] sm:$0xff] }
 0x3a2   : > { %2700 = vrot.lane.b32.xlu1 %v2657_v21, %s5703_s17  ;;  %v5342_v34 = vpack.c.bf16 %v4695_v18, %v4694_v28  ;;  %v4697_v63 = vld [vmem:[%s9024_s1 + $0x658] sm:$0xff]  ;;  %v4736_v18 = vld [vmem:[%s9024_s1 + $0x730] sm:$0xff] }
 0x3a3   : > { %v2619_v3 = vadd.f32 %v4619_v31, %v2603_v1  ;;  %v2642_v49 = vrot.slane %v7880_v2, 7  ;;  %v2666_v6 = vrot.slane %v7880_v2, 1  ;;  %v4696_v1 = vld [vmem:[%s9024_s1 + $0x650] sm:$0xff] }
 0x3a4   : > { %v2589_v8 = vpop.f32.mrb[124].mxu0 }
 0x3a5   : > { %v7885_v16 = vmax.f32 %v2619_v3, 0.0  ;;  %v2604_v57 = vadd.f32 %v2589_v8, %v2460_v17  ;;  %v2591_v24 = vpop.f32.mrb[125].mxu0  ;;  %v2658_v43 = vsel %vm206_vm1, 0.0, %v2642_v49  ;;  %v7983_v41 = vsel %vm256_vm2, %v2666_v6, 0.0  ;;  %v4733_v6 = vld [vmem:[%s9024_s1 + $0x718] sm:$0xff] }
 0x3a6   : > { %2702 = vrot.lane.b32.xlu0 %v2658_v43, %s5703_s17  ;;  %v5345_v49 = vpack.c.bf16 %v4697_v63, %v4696_v1  ;;  %v4699_v24 = vld [vmem:[%s9024_s1 + $0x668] sm:$0xff]  ;;  %v4740_v1 = vld [vmem:[%s9024_s1 + $0x750] sm:$0xff]  ;;  %v4741_v63 = vld [vmem:[%s9024_s1 + $0x758] sm:$0xff] }
 0x3a7   : > { %v2620_v27 = vadd.f32 %v4619_v31, %v2604_v57  ;;  %v2643_v33 = vrot.slane %v7885_v16, 7  ;;  %v2667_v56 = vrot.slane %v7885_v16, 1  ;;  %v4698_v57 = vld [vmem:[%s9024_s1 + $0x660] sm:$0xff] }
 0x3a8   : > { %v2594_v12 = vpop.f32.mrb[126].mxu0 }
 0x3a9   : > { %v7890_v44 = vmax.f32 %v2620_v27, 0.0  ;;  %v2605_v13 = vadd.f32 %v2594_v12, %v2465_v30  ;;  %v2596_v23 = vpop.f32.mrb[127].mxu0  ;;  %v2659_v39 = vsel %vm206_vm1, 0.0, %v2643_v33  ;;  %v8004_v21 = vsel %vm256_vm2, %v2667_v56, 0.0 }
 0x3aa   : > { %2704 = vrot.lane.b32.xlu1 %v2659_v39, %s5703_s17  ;;  %v5348_v33 = vpack.c.bf16 %v4699_v24, %v4698_v57  ;;  %v4701_v23 = vld [vmem:[%s9024_s1 + $0x678] sm:$0xff] }
 0x3ab   : > { %v2621_v32 = vadd.f32 %v4619_v31, %v2605_v13  ;;  %v2644_v17 = vrot.slane %v7890_v44, 7  ;;  %v4686_v31 = vld [vmem:[%s9024_s1 + $0x600] sm:$0xff]  ;;  %v2668_v3 = vrot.slane %v7890_v44, 1  ;;  %v4700_v13 = vld [vmem:[%s9024_s1 + $0x670] sm:$0xff]  ;;  %v4745_v57 = vld [vmem:[%s9024_s1 + $0x778] sm:$0xff] }
 0x3ac   : > { %v5330_v22 = vpack.c.bf16 %v4687_v52, %v4686_v31  ;;  %v4706_v52 = vld [vmem:[%s9024_s1 + $0x6a0] sm:$0xff] }
 0x3ad   : > { %v7895_v38 = vmax.f32 %v2621_v32, 0.0  ;;  %v2660_v15 = vsel %vm206_vm1, 0.0, %v2644_v17  ;;  %v8025_v43 = vsel %vm256_vm2, %v2668_v3, 0.0  ;;  %v5351_v32 = vpack.c.bf16 %v4701_v23, %v4700_v13  ;;  %v4742_v3 = vld [vmem:[%s9024_s1 + $0x760] sm:$0xff] }
 0x3ae   : > { %2706 = vrot.lane.b32.xlu0 %v2660_v15, %s5703_s17  ;;  %v4702_v15 = vld [vmem:[%s9024_s1 + $0x680] sm:$0xff] }
 0x3af   : > { %v2645_v7 = vrot.slane %v7895_v38, 7  ;;  %v2669_v27 = vrot.slane %v7895_v38, 1  ;;  %v4750_v23 = vld [vmem:[%s9024_s1 + $0x7a0] sm:$0xff] }
 0x3b1   : > { %v2661_v35 = vsel %vm206_vm1, 0.0, %v2645_v7  ;;  %v8046_v39 = vsel %vm256_vm2, %v2669_v27, 0.0  ;;  %v4703_v7 = vld [vmem:[%s9024_s1 + $0x688] sm:$0xff] }
 0x3b2   : > { %2708 = vrot.lane.b32.xlu1 %v2661_v35, %s5703_s17  ;;  %v5354_v35 = vpack.c.bf16 %v4703_v7, %v4702_v15  ;;  %v4747_v27 = vld [vmem:[%s9024_s1 + $0x788] sm:$0xff]  ;;  %v4754_v7 = vld [vmem:[%s9024_s1 + $0x7c0] sm:$0xff] }
 0x3bc   : > { %v7902_v30 = vpop.f32.mrb[128].mxu0 }
 0x3bd   : > { %v2973_v5 = vpop.f32.mrb[129].mxu0 }
 0x3be   : > { %v4705_v5 = vld [vmem:[%s9024_s1 + $0x698] sm:$0xff] }
 0x409   : > { %v2695_v53 = vpop.permute.xlu0 %2694 }
 0x40a   : > { %v2718_v60 = vsel %vm376_vm0, %v7854_v14, %v2695_v53  ;;  %v4708_v53 = vld [vmem:[%s9024_s1 + $0x6b0] sm:$0xff] }
 0x40b   : > { %2865 = vmatmul.mubr.f32.vlgmr.msra.gmra.mrb[112].mxu1 %v2718_v60  ;;  %2975 = vmatmul.mubr.f32.gmra.mrb[130].mxu0 %v2718_v60  ;;  %v5363_v54 = vpack.c.bf16 %v4709_v47, %v4708_v53  ;;  %v4722_v60 = vld [vmem:[%s9024_s1 + $0x6c0] sm:$0xff]  ;;  %v4760_v47 = vld [vmem:[%s9024_s1 + $0x7f0] sm:$0xff] }
 0x40c   : > { %5331 = vmatpush1.bf16.msra.mxu1 %v5330_v22  ;;  %4669 = vmatprep.mubr.msk.f32.mxu1 %vm376_vm0, %v7920_v25  ;;  %v2697_v51 = vpop.permute.xlu1 %2696  ;;  %v5360_v22 = vpack.c.bf16 %v4707_v37, %v4706_v52  ;;  %v4758_v37 = vld [vmem:[%s9024_s1 + $0x7e0] sm:$0xff] }
 0x40d   : > { %4680 = vmatprep.mubr.msk.f32.mxu0 %vm376_vm0, %v7920_v25  ;;  %5332 = vmatprep.subr.bf16.mxu1 %v9077_v20  ;;  %v7930_v14 = vsel %vm376_vm0, %v7859_v48, %v2697_v51  ;;  %v4724_v51 = vld [vmem:[%s9024_s1 + $0x6d0] sm:$0xff] }
 0x40f   : > { %2870 = vmatmul.mubr.f32.gmra.mrb[114].mxu1 %v7930_v14  ;;  %2980 = vmatmul.mubr.f32.gmra.mrb[132].mxu0 %v7930_v14 }
 0x410   : > { %5334 = vmatpush1.bf16.msra.mxu1 %v5333_v9  ;;  %4670 = vmatprep.mubr.msk.f32.mxu1 %vm376_vm0, %v7941_v46  ;;  %v2699_v48 = vpop.permute.xlu0 %2698  ;;  %v4725_v9 = vld [vmem:[%s9024_s1 + $0x6d8] sm:$0xff] }
 0x411   : > { %4681 = vmatprep.mubr.msk.f32.mxu0 %vm376_vm0, %v7941_v46  ;;  %5335 = vmatprep.subr.bf16.mxu1 %v9077_v20  ;;  %v7951_v4 = vsel %vm376_vm0, %v7868_v10, %v2699_v48  ;;  %v5405_v40 = vpack.c.bf16 %v4725_v9, %v4724_v51  ;;  %v4729_v48 = vld [vmem:[%s9024_s1 + $0x6f8] sm:$0xff] }
 0x413   : > { %2875 = vmatmul.mubr.f32.gmra.mrb[116].mxu1 %v7951_v4  ;;  %2985 = vmatmul.mubr.f32.gmra.mrb[134].mxu0 %v7951_v4 }
 0x414   : > { %5337 = vmatpush1.bf16.msra.mxu1 %v5336_v58  ;;  %4671 = vmatprep.mubr.msk.f32.mxu1 %vm376_vm0, %v7962_v55  ;;  %v2701_v10 = vpop.permute.xlu1 %2700 }
 0x415   : > { %4682 = vmatprep.mubr.msk.f32.mxu0 %vm376_vm0, %v7962_v55  ;;  %5338 = vmatprep.subr.bf16.mxu1 %v9077_v20  ;;  %v7972_v62 = vsel %vm376_vm0, %v7874_v59, %v2701_v10 }
 0x417   : > { %2880 = vmatmul.mubr.f32.gmra.mrb[118].mxu1 %v7972_v62  ;;  %2990 = vmatmul.mubr.f32.gmra.mrb[136].mxu0 %v7972_v62 }
 0x418   : > { %5340 = vmatpush1.bf16.msra.mxu1 %v5339_v61  ;;  %4672 = vmatprep.mubr.msk.f32.mxu1 %vm376_vm0, %v7983_v41  ;;  %v2703_v59 = vpop.permute.xlu0 %2702  ;;  %v4734_v61 = vld [vmem:[%s9024_s1 + $0x720] sm:$0xff] }
 0x419   : > { %4683 = vmatprep.mubr.msk.f32.mxu0 %vm376_vm0, %v7983_v41  ;;  %5341 = vmatprep.subr.bf16.mxu1 %v9077_v20  ;;  %v7993_v11 = vsel %vm376_vm0, %v7880_v2, %v2703_v59  ;;  %v4738_v59 = vld [vmem:[%s9024_s1 + $0x740] sm:$0xff] }
 0x41b   : > { %2885 = vmatmul.mubr.f32.gmra.mrb[120].mxu1 %v7993_v11  ;;  %2995 = vmatmul.mubr.f32.gmra.mrb[138].mxu0 %v7993_v11 }
 0x41c   : > { %5343 = vmatpush1.bf16.msra.mxu1 %v5342_v34  ;;  %4673 = vmatprep.mubr.msk.f32.mxu1 %vm376_vm0, %v8004_v21  ;;  %v2705_v2 = vpop.permute.xlu1 %2704  ;;  %v4739_v34 = vld [vmem:[%s9024_s1 + $0x748] sm:$0xff] }
 0x41d   : > { %4684 = vmatprep.mubr.msk.f32.mxu0 %vm376_vm0, %v8004_v21  ;;  %5344 = vmatprep.subr.bf16.mxu1 %v9077_v20  ;;  %v8014_v8 = vsel %vm376_vm0, %v7885_v16, %v2705_v2  ;;  %v4743_v2 = vld [vmem:[%s9024_s1 + $0x768] sm:$0xff] }
 0x41f   : > { %2890 = vmatmul.mubr.f32.gmra.mrb[122].mxu1 %v8014_v8  ;;  %3000 = vmatmul.mubr.f32.gmra.mrb[140].mxu0 %v8014_v8 }
 0x420   : > { %5346 = vmatpush1.bf16.msra.mxu1 %v5345_v49  ;;  %4674 = vmatprep.mubr.msk.f32.mxu1 %vm376_vm0, %v8025_v43  ;;  %v2707_v16 = vpop.permute.xlu0 %2706  ;;  %v5432_v49 = vpack.c.bf16 %v4743_v2, %v4742_v3 }
 0x421   : > { %4685 = vmatprep.mubr.msk.f32.mxu0 %vm376_vm0, %v8025_v43  ;;  %5347 = vmatprep.subr.bf16.mxu1 %v9077_v20  ;;  %v8035_v12 = vsel %vm376_vm0, %v7890_v44, %v2707_v16  ;;  %v4748_v16 = vld [vmem:[%s9024_s1 + $0x790] sm:$0xff] }
 0x423   : > { %2895 = vmatmul.mubr.f32.gmra.mrb[124].mxu1 %v8035_v12  ;;  %3005 = vmatmul.mubr.f32.gmra.mrb[142].mxu0 %v8035_v12 }
 0x424   : > { %5349 = vmatpush1.bf16.msra.mxu1 %v5348_v33  ;;  %4675 = vmatprep.mubr.msk.f32.mxu1 %vm376_vm0, %v8046_v39  ;;  %v2709_v44 = vpop.permute.xlu1 %2708 }
 0x425   : > { %5350 = vmatprep.subr.bf16.mxu1 %v9077_v20  ;;  %v8053_v17 = vsel %vm376_vm0, %v7895_v38, %v2709_v44  ;;  %v4704_v38 = vld [vmem:[%s9024_s1 + $0x690] sm:$0xff] }
 0x426   : > { %v5357_v31 = vpack.c.bf16 %v4705_v5, %v4704_v38  ;;  %v4756_v5 = vld [vmem:[%s9024_s1 + $0x7d0] sm:$0xff] }
 0x427   : > { %2900 = vmatmul.mubr.f32.gmra.mrb[126].mxu1 %v8053_v17 }
 0x428   : > { %5352 = vmatpush1.bf16.msra.mxu1 %v5351_v32  ;;  %4710 = vmatprep.mubr.msk.f32.mxu1 %vm376_vm0, %v7920_v25  ;;  %v4723_v25 = vld [vmem:[%s9024_s1 + $0x6c8] sm:$0xff]  ;;  %v4752_v32 = vld [vmem:[%s9024_s1 + $0x7b0] sm:$0xff] }
 0x429   : > { %5353 = vmatprep.subr.bf16.mxu1 %v9077_v20  ;;  %v5402_v29 = vpack.c.bf16 %v4723_v25, %v4722_v60  ;;  %v4762_v25 = vld [vmem:[%s9024_s1 + $0x800] sm:$0xff] }
 0x42c   : > { %5355 = vmatpush1.bf16.msra.mxu1 %v5354_v35  ;;  %v4755_v35 = vld [vmem:[%s9024_s1 + $0x7c8] sm:$0xff] }
 0x42d   : > { %5356 = vmatprep.subr.bf16.mxu1 %v9077_v20  ;;  %v5378_v38 = vpack.c.bf16 %v4755_v35, %v4754_v7 }
 0x430   : > { %5358 = vmatpush1.bf16.msra.mxu1 %v5357_v31  ;;  %v4757_v31 = vld [vmem:[%s9024_s1 + $0x7d8] sm:$0xff] }
 0x431   : > { %5359 = vmatprep.subr.bf16.mxu1 %v9077_v20  ;;  %v5381_v52 = vpack.c.bf16 %v4757_v31, %v4756_v5  ;;  %v4721_v5 = vld [vmem:[%s9025_s2 + $0x2] ss:$0 sm:$0xff] }
 0x434   : > { %5361 = vmatpush1.bf16.msra.mxu1 %v5360_v22  ;;  %v4759_v22 = vld [vmem:[%s9024_s1 + $0x7e8] sm:$0xff] }
 0x435   : > { %5362 = vmatprep.subr.bf16.mxu1 %v9077_v20  ;;  %v5384_v53 = vpack.c.bf16 %v4759_v22, %v4758_v37 }
 0x438   : > { %5364 = vmatpush1.bf16.msra.mxu1 %v5363_v54  ;;  %v4761_v54 = vld [vmem:[%s9024_s1 + $0x7f8] sm:$0xff] }
 0x439   : > { %5401 = vmatprep.subr.bf16.mxu1 %v9077_v20  ;;  %v5387_v60 = vpack.c.bf16 %v4761_v54, %v4760_v47 }
 0x43b   : > { %3100 = vmatmul.mubr.f32.vlgmr.msra.gmra.mrb[128].mxu1 %v7930_v14  ;;  %v5408_v14 = vpack.c.bf16 %v4727_v42, %v4726_v45 }
 0x43c   : > { %4711 = vmatprep.mubr.msk.f32.mxu1 %vm376_vm0, %v7941_v46  ;;  %5403 = vmatpush1.bf16.msra.mxu1 %v5402_v29  ;;  %v4728_v46 = vld [vmem:[%s9024_s1 + $0x6f0] sm:$0xff]  ;;  %v4763_v29 = vld [vmem:[%s9024_s1 + $0x808] sm:$0xff] }
 0x43d   : > { %5404 = vmatprep.subr.bf16.mxu1 %v9077_v20  ;;  %v5411_v58 = vpack.c.bf16 %v4729_v48, %v4728_v46  ;;  %v4764_v46 = vld [vmem:[%s9024_s1 + $0x810] sm:$0xff]  ;;  %v4765_v48 = vld [vmem:[%s9024_s1 + $0x818] sm:$0xff] }
 0x43f   : > { %3105 = vmatmul.mubr.f32.gmra.mrb[130].mxu1 %v7951_v4  ;;  %v4730_v4 = vld [vmem:[%s9024_s1 + $0x700] sm:$0xff] }
 0x440   : > { %4712 = vmatprep.mubr.msk.f32.mxu1 %vm376_vm0, %v7962_v55  ;;  %5406 = vmatpush1.bf16.msra.mxu1 %v5405_v40  ;;  %v5414_v36 = vpack.c.bf16 %v4731_v0, %v4730_v4  ;;  %v4732_v55 = vld [vmem:[%s9024_s1 + $0x710] sm:$0xff]  ;;  %v5390_v40 = vpack.c.bf16 %v4763_v29, %v4762_v25  ;;  %v5393_v0 = vpack.c.bf16 %v4765_v48, %v4764_v46 }
 0x441   : > { %5407 = vmatprep.subr.bf16.mxu1 %v9077_v20  ;;  %v5417_v10 = vpack.c.bf16 %v4733_v6, %v4732_v55 }
 0x443   : > { %3110 = vmatmul.mubr.f32.gmra.mrb[132].mxu1 %v7972_v62  ;;  %v4735_v62 = vld [vmem:[%s9024_s1 + $0x728] sm:$0xff] }
 0x444   : > { %4713 = vmatprep.mubr.msk.f32.mxu1 %vm376_vm0, %v7983_v41  ;;  %5409 = vmatpush1.bf16.msra.mxu1 %v5408_v14  ;;  %v5420_v28 = vpack.c.bf16 %v4735_v62, %v4734_v61  ;;  %v4737_v41 = vld [vmem:[%s9024_s1 + $0x738] sm:$0xff] }
 0x445   : > { %5410 = vmatprep.subr.bf16.mxu1 %v9077_v20  ;;  %v5423_v56 = vpack.c.bf16 %v4737_v41, %v4736_v18 }
 0x447   : > { %3115 = vmatmul.mubr.f32.gmra.mrb[134].mxu1 %v7993_v11  ;;  %v5426_v11 = vpack.c.bf16 %v4739_v34, %v4738_v59  ;;  %v4768_v59 = vld [vmem:[%s9024_s1 + $0x830] sm:$0xff]  ;;  %v4769_v34 = vld [vmem:[%s9024_s1 + $0x838] sm:$0xff] }
 0x448   : > { %4714 = vmatprep.mubr.msk.f32.mxu1 %vm376_vm0, %v8004_v21  ;;  %5412 = vmatpush1.bf16.msra.mxu1 %v5411_v58  ;;  %v5429_v21 = vpack.c.bf16 %v4741_v63, %v4740_v1  ;;  %v5399_v63 = vpack.c.bf16 %v4769_v34, %v4768_v59 }
 0x449   : > { %5413 = vmatprep.subr.bf16.mxu1 %v9077_v20 }
 0x44b   : > { %3120 = vmatmul.mubr.f32.gmra.mrb[136].mxu1 %v8014_v8  ;;  %v4744_v8 = vld [vmem:[%s9024_s1 + $0x770] sm:$0xff] }
 0x44c   : > { %4715 = vmatprep.mubr.msk.f32.mxu1 %vm376_vm0, %v8025_v43  ;;  %5415 = vmatpush1.bf16.msra.mxu1 %v5414_v36  ;;  %v5435_v24 = vpack.c.bf16 %v4745_v57, %v4744_v8  ;;  %v4746_v43 = vld [vmem:[%s9024_s1 + $0x780] sm:$0xff] }
 0x44d   : > { %5416 = vmatprep.subr.bf16.mxu1 %v9077_v20  ;;  %v5366_v33 = vpack.c.bf16 %v4747_v27, %v4746_v43 }
 0x44f   : > { %3125 = vmatmul.mubr.f32.gmra.mrb[138].mxu1 %v8035_v12  ;;  %v4749_v12 = vld [vmem:[%s9024_s1 + $0x798] sm:$0xff]  ;;  %5367 = vmatpush1.bf16.msra.mxu0 %v5366_v33 }
 0x450   : > { %4716 = vmatprep.mubr.msk.f32.mxu1 %vm376_vm0, %v8046_v39  ;;  %5418 = vmatpush1.bf16.msra.mxu1 %v5417_v10  ;;  %v5369_v13 = vpack.c.bf16 %v4749_v12, %v4748_v16  ;;  %v4751_v39 = vld [vmem:[%s9024_s1 + $0x7a8] sm:$0xff] }
 0x451   : > { %5419 = vmatprep.subr.bf16.mxu1 %v9077_v20  ;;  %5368 = vmatprep.subr.bf16.mxu0 %v9077_v20  ;;  %v5372_v44 = vpack.c.bf16 %v4751_v39, %v4750_v23  ;;  %v4767_v10 = vld [vmem:[%s9024_s1 + $0x828] sm:$0xff] }
 0x453   : > { %3130 = vmatmul.mubr.f32.gmra.mrb[140].mxu1 %v8053_v17  ;;  %5370 = vmatpush1.bf16.msra.mxu0 %v5369_v13  ;;  %v4753_v17 = vld [vmem:[%s9024_s1 + $0x7b8] sm:$0xff] }
 0x454   : > { %5421 = vmatpush1.bf16.msra.mxu1 %v5420_v28  ;;  %4717 = vmatprep.mubr.msk.f32.mxu1 %vm376_vm0, %v9095_v19  ;;  %v5375_v15 = vpack.c.bf16 %v4753_v17, %v4752_v32 }
 0x455   : > { %5422 = vmatprep.subr.bf16.mxu1 %v9077_v20  ;;  %5371 = vmatprep.subr.bf16.mxu0 %v9077_v20 }
 0x457   : > { %4719 = vmatmul.mubr.msk.f32.gmra.mrb[142].mxu1 %vm6278_vm3, %v9093_v50  ;;  %5373 = vmatpush1.bf16.msra.mxu0 %v5372_v44 }
 0x458   : > { %5424 = vmatpush1.bf16.msra.mxu1 %v5423_v56  ;;  %4778 = vmatprep.mubr.msk.f32.mxu1 %vm376_vm0, %v9095_v19 }
 0x459   : > { %5425 = vmatprep.subr.bf16.mxu1 %v9077_v20  ;;  %5374 = vmatprep.subr.bf16.mxu0 %v9077_v20 }
 0x45b   : > { %5376 = vmatpush1.bf16.msra.mxu0 %v5375_v15 }
 0x45c   : > { %5427 = vmatpush1.bf16.msra.mxu1 %v5426_v11  ;;  %5377 = vmatprep.subr.bf16.mxu0 %v9077_v20 }
 0x45d   : > { %5428 = vmatprep.subr.bf16.mxu1 %v9077_v20 }
 0x45f   : > { %5379 = vmatpush1.bf16.msra.mxu0 %v5378_v38 }
 0x460   : > { %5430 = vmatpush1.bf16.msra.mxu1 %v5429_v21  ;;  %5380 = vmatprep.subr.bf16.mxu0 %v9077_v20 }
 0x461   : > { %5431 = vmatprep.subr.bf16.mxu1 %v9077_v20 }
 0x463   : > { %5382 = vmatpush1.bf16.msra.mxu0 %v5381_v52 }
 0x464   : > { %5433 = vmatpush1.bf16.msra.mxu1 %v5432_v49  ;;  %5383 = vmatprep.subr.bf16.mxu0 %v9077_v20 }
 0x465   : > { %5434 = vmatprep.subr.bf16.mxu1 %v9077_v20 }
 0x467   : > { %5385 = vmatpush1.bf16.msra.mxu0 %v5384_v53 }
 0x468   : > { %5436 = vmatpush1.bf16.msra.mxu1 %v5435_v24  ;;  %5386 = vmatprep.subr.bf16.mxu0 %v9077_v20 }
 0x469   : > { %5473 = vmatprep.subr.bf16.mxu1 %v9077_v20 }
 0x46b   : > { %4780 = vmatmul.mubr.msk.f32.vlgmr.msra.gmra.mrb[144].mxu1 %vm6278_vm3, %v9093_v50  ;;  %5388 = vmatpush1.bf16.msra.mxu0 %v5387_v60 }
 0x46c   : > { %5389 = vmatprep.subr.bf16.mxu0 %v9077_v20 }
 0x46f   : > { %5391 = vmatpush1.bf16.msra.mxu0 %v5390_v40 }
 0x470   : > { %5392 = vmatprep.subr.bf16.mxu0 %v9077_v20 }
 0x473   : > { %5394 = vmatpush1.bf16.msra.mxu0 %v5393_v0 }
 0x474   : > { %5395 = vmatprep.subr.bf16.mxu0 %v9077_v20 }
 0x4de   : > { %v2866_v51 = vpop.f32.mrb[112].mxu1  ;;  %v2976_v9 = vpop.f32.mrb[130].mxu0 }
 0x4df   : > { %v2972_v45 = vadd.f32 %v7902_v30, %v2866_v51  ;;  %v2868_v42 = vpop.f32.mrb[113].mxu1  ;;  %v2978_v14 = vpop.f32.mrb[131].mxu0  ;;  %v4766_v30 = vld [vmem:[%s9024_s1 + $0x820] sm:$0xff] }
 0x4e0   : > { %v5396_v28 = vpack.c.bf16 %v4767_v10, %v4766_v30 }
 0x4e2   : > { %v2871_v58 = vpop.f32.mrb[114].mxu1  ;;  %v2981_v4 = vpop.f32.mrb[132].mxu0  ;;  %5397 = vmatpush1.bf16.msra.mxu0 %v5396_v28 }
 0x4e3   : > { %v2977_v36 = vadd.f32 %v2976_v9, %v2871_v58  ;;  %v2873_v55 = vpop.f32.mrb[115].mxu1  ;;  %v2983_v6 = vpop.f32.mrb[133].mxu0  ;;  %5398 = vmatprep.subr.bf16.mxu0 %v9077_v20 }
 0x4e6   : > { %v2876_v61 = vpop.f32.mrb[116].mxu1  ;;  %v2986_v62 = vpop.f32.mrb[134].mxu0  ;;  %5400 = vmatpush1.bf16.msra.mxu0 %v5399_v63 }
 0x4e7   : > { %v2982_v18 = vadd.f32 %v2981_v4, %v2876_v61  ;;  %v2878_v41 = vpop.f32.mrb[117].mxu1  ;;  %v2988_v56 = vpop.f32.mrb[135].mxu0  ;;  %5437 = vmatprep.subr.bf16.mxu0 %v9077_v20 }
 0x4ea   : > { %v2881_v11 = vpop.f32.mrb[118].mxu1  ;;  %v2991_v1 = vpop.f32.mrb[136].mxu0 }
 0x4eb   : > { %v2987_v21 = vadd.f32 %v2986_v62, %v2881_v11  ;;  %v2883_v3 = vpop.f32.mrb[119].mxu1  ;;  %v2993_v2 = vpop.f32.mrb[137].mxu0 }
 0x4ee   : > { %v2886_v49 = vpop.f32.mrb[120].mxu1  ;;  %v2996_v8 = vpop.f32.mrb[138].mxu0 }
 0x4ef   : > { %v2992_v57 = vadd.f32 %v2991_v1, %v2886_v49  ;;  %v2888_v24 = vpop.f32.mrb[121].mxu1  ;;  %v2998_v43 = vpop.f32.mrb[139].mxu0 }
 0x4f2   : > { %v2891_v27 = vpop.f32.mrb[122].mxu1  ;;  %v3001_v16 = vpop.f32.mrb[140].mxu0 }
 0x4f3   : > { %v2997_v33 = vadd.f32 %v2996_v8, %v2891_v27  ;;  %v2893_v12 = vpop.f32.mrb[123].mxu1  ;;  %v3003_v13 = vpop.f32.mrb[141].mxu0 }
 0x4f6   : > { %v2896_v23 = vpop.f32.mrb[124].mxu1  ;;  %v3006_v39 = vpop.f32.mrb[142].mxu0 }
 0x4f7   : > { %v3002_v44 = vadd.f32 %v3001_v16, %v2896_v23  ;;  %v2898_v32 = vpop.f32.mrb[125].mxu1  ;;  %v3008_v17 = vpop.f32.mrb[143].mxu0 }
 0x4fa   : > { %v2901_v15 = vpop.f32.mrb[126].mxu1 }
 0x4fb   : > { %v3007_v7 = vadd.f32 %v3006_v39, %v2901_v15  ;;  %v2903_v35 = vpop.f32.mrb[127].mxu1 }
 0x50e   : > { %v3101_v38 = vpop.f32.mrb[128].mxu1 }
 0x50f   : > { %v3140_v31 = vadd.f32 %v3101_v38, %v2972_v45  ;;  %v3103_v52 = vpop.f32.mrb[129].mxu1 }
 0x511   : > { %v3156_v37 = vadd.f32 %v4721_v5, %v3140_v31  ;;  %v4789_v31 = vld [vmem:[%s9024_s1 + $0x848] sm:$0xff] }
 0x512   : > { %v3106_v22 = vpop.f32.mrb[130].mxu1 }
 0x513   : > { %v8288_v53 = vmax.f32 %v3156_v37, 0.0  ;;  %v3141_v47 = vadd.f32 %v3106_v22, %v2977_v36  ;;  %v3108_v54 = vpop.f32.mrb[131].mxu1 }
 0x514   : > { %v4791_v54 = vld [vmem:[%s9024_s1 + $0x858] sm:$0xff] }
 0x515   : > { %v3157_v60 = vadd.f32 %v4721_v5, %v3141_v47  ;;  %v3204_v25 = vrot.slane %v8288_v53, 1  ;;  %v3180_v29 = vrot.slane %v8288_v53, 7  ;;  %v4790_v47 = vld [vmem:[%s9024_s1 + $0x850] sm:$0xff] }
 0x516   : > { %v3111_v51 = vpop.f32.mrb[132].mxu1 }
 0x517   : > { %v8292_v9 = vmax.f32 %v3157_v60, 0.0  ;;  %v3142_v40 = vadd.f32 %v3111_v51, %v2982_v18  ;;  %v3113_v42 = vpop.f32.mrb[133].mxu1  ;;  %v3220_v14 = vsel %vm256_vm2, %v3204_v25, 0.0  ;;  %v3196_v45 = vsel %vm206_vm1, 0.0, %v3180_v29 }
 0x518   : > { %4770 = vmatprep.mubr.msk.f32.mxu0 %vm376_vm0, %v3220_v14  ;;  %4781 = vmatprep.mubr.msk.f32.mxu1 %vm376_vm0, %v3220_v14  ;;  %v4792_v42 = vld [vmem:[%s9024_s1 + $0x860] sm:$0xff]  ;;  %v4793_v14 = vld [vmem:[%s9024_s1 + $0x868] sm:$0xff] }
 0x519   : > { %v3158_v46 = vadd.f32 %v4721_v5, %v3142_v40  ;;  %3236 = vrot.lane.b32.xlu0 %v3196_v45, %s5703_s17  ;;  %v3181_v48 = vrot.slane %v8292_v9, 7  ;;  %v3205_v52 = vrot.slane %v8292_v9, 1  ;;  %v5441_v40 = vpack.c.bf16 %v4791_v54, %v4790_v47  ;;  %v4811_v47 = vld [vmem:[%s9024_s1 + $0x8f8] sm:$0xff] }
 0x51a   : > { %v3116_v58 = vpop.f32.mrb[134].mxu1 }
 0x51b   : > { %v8300_v4 = vmax.f32 %v3158_v46, 0.0  ;;  %v3143_v0 = vadd.f32 %v3116_v58, %v2987_v21  ;;  %v3118_v36 = vpop.f32.mrb[135].mxu1  ;;  %v3197_v55 = vsel %vm206_vm1, 0.0, %v3181_v48  ;;  %v8350_v25 = vsel %vm256_vm2, %v3205_v52, 0.0  ;;  %v4809_v52 = vld [vmem:[%s9024_s1 + $0x8e8] sm:$0xff] }
 0x51c   : > { %3238 = vrot.lane.b32.xlu1 %v3197_v55, %s5703_s17  ;;  %v5444_v48 = vpack.c.bf16 %v4793_v14, %v4792_v42  ;;  %v4795_v36 = vld [vmem:[%s9024_s1 + $0x878] sm:$0xff]  ;;  %v4828_v14 = vld [vmem:[%s9024_s1 + $0x920] sm:$0xff] }
 0x51d   : > { %v3159_v6 = vadd.f32 %v4721_v5, %v3143_v0  ;;  %v3182_v30 = vrot.slane %v8300_v4, 7  ;;  %v3206_v29 = vrot.slane %v8300_v4, 1  ;;  %v4794_v0 = vld [vmem:[%s9024_s1 + $0x870] sm:$0xff] }
 0x51e   : > { %v3121_v10 = vpop.f32.mrb[136].mxu1 }
 0x51f   : > { %v8305_v61 = vmax.f32 %v3159_v6, 0.0  ;;  %v3144_v62 = vadd.f32 %v3121_v10, %v2992_v57  ;;  %v3123_v28 = vpop.f32.mrb[137].mxu1  ;;  %v3198_v18 = vsel %vm206_vm1, 0.0, %v3182_v30  ;;  %v8371_v45 = vsel %vm256_vm2, %v3206_v29, 0.0 }
 0x520   : > { %3240 = vrot.lane.b32.xlu0 %v3198_v18, %s5703_s17  ;;  %v5447_v30 = vpack.c.bf16 %v4795_v36, %v4794_v0  ;;  %v4797_v28 = vld [vmem:[%s9024_s1 + $0x888] sm:$0xff] }
 0x521   : > { %v3160_v41 = vadd.f32 %v4721_v5, %v3144_v62  ;;  %v3183_v56 = vrot.slane %v8305_v61, 7  ;;  %v3207_v46 = vrot.slane %v8305_v61, 1  ;;  %v4796_v62 = vld [vmem:[%s9024_s1 + $0x880] sm:$0xff]  ;;  %v4833_v0 = vld [vmem:[%s9024_s1 + $0x948] sm:$0xff] }
 0x522   : > { %v3126_v59 = vpop.f32.mrb[138].mxu1 }
 0x523   : > { %v8310_v34 = vmax.f32 %v3160_v41, 0.0  ;;  %v3145_v11 = vadd.f32 %v3126_v59, %v2997_v33  ;;  %v3128_v1 = vpop.f32.mrb[139].mxu1  ;;  %v3199_v63 = vsel %vm206_vm1, 0.0, %v3183_v56  ;;  %v8392_v55 = vsel %vm256_vm2, %v3207_v46, 0.0  ;;  %v4829_v46 = vld [vmem:[%s9024_s1 + $0x928] sm:$0xff] }
 0x524   : > { %3242 = vrot.lane.b32.xlu1 %v3199_v63, %s5703_s17  ;;  %v5450_v56 = vpack.c.bf16 %v4797_v28, %v4796_v62  ;;  %v4799_v1 = vld [vmem:[%s9024_s1 + $0x898] sm:$0xff]  ;;  %v4838_v28 = vld [vmem:[%s9024_s1 + $0x970] sm:$0xff] }
 0x525   : > { %v3161_v21 = vadd.f32 %v4721_v5, %v3145_v11  ;;  %v3184_v3 = vrot.slane %v8310_v34, 7  ;;  %v3208_v6 = vrot.slane %v8310_v34, 1  ;;  %v4798_v11 = vld [vmem:[%s9024_s1 + $0x890] sm:$0xff] }
 0x526   : > { %v3131_v2 = vpop.f32.mrb[140].mxu1 }
 0x527   : > { %v8315_v49 = vmax.f32 %v3161_v21, 0.0  ;;  %v3146_v8 = vadd.f32 %v3131_v2, %v3002_v44  ;;  %v3133_v57 = vpop.f32.mrb[141].mxu1  ;;  %v3200_v24 = vsel %vm206_vm1, 0.0, %v3184_v3  ;;  %v8413_v18 = vsel %vm256_vm2, %v3208_v6, 0.0  ;;  %v4835_v6 = vld [vmem:[%s9024_s1 + $0x958] sm:$0xff] }
 0x528   : > { %3244 = vrot.lane.b32.xlu0 %v3200_v24, %s5703_s17  ;;  %v5453_v3 = vpack.c.bf16 %v4799_v1, %v4798_v11  ;;  %v4801_v57 = vld [vmem:[%s9024_s1 + $0x8a8] sm:$0xff]  ;;  %v4842_v11 = vld [vmem:[%s9024_s1 + $0x990] sm:$0xff]  ;;  %v4843_v1 = vld [vmem:[%s9024_s1 + $0x998] sm:$0xff] }
 0x529   : > { %v3162_v43 = vadd.f32 %v4721_v5, %v3146_v8  ;;  %v3185_v27 = vrot.slane %v8315_v49, 7  ;;  %v3209_v41 = vrot.slane %v8315_v49, 1  ;;  %v4800_v8 = vld [vmem:[%s9024_s1 + $0x8a0] sm:$0xff] }
 0x52a   : > { %v3136_v16 = vpop.f32.mrb[142].mxu1 }
 0x52b   : > { %v8320_v33 = vmax.f32 %v3162_v43, 0.0  ;;  %v3147_v12 = vadd.f32 %v3136_v16, %v3007_v7  ;;  %v3138_v13 = vpop.f32.mrb[143].mxu1  ;;  %v3201_v23 = vsel %vm206_vm1, 0.0, %v3185_v27  ;;  %v8434_v63 = vsel %vm256_vm2, %v3209_v41, 0.0 }
 0x52c   : > { %3246 = vrot.lane.b32.xlu1 %v3201_v23, %s5703_s17  ;;  %v5456_v27 = vpack.c.bf16 %v4801_v57, %v4800_v8  ;;  %v4803_v13 = vld [vmem:[%s9024_s1 + $0x8b8] sm:$0xff] }
 0x52d   : > { %v3163_v39 = vadd.f32 %v4721_v5, %v3147_v12  ;;  %v3186_v44 = vrot.slane %v8320_v33, 7  ;;  %v4788_v5 = vld [vmem:[%s9024_s1 + $0x840] sm:$0xff]  ;;  %v3210_v21 = vrot.slane %v8320_v33, 1  ;;  %v4802_v12 = vld [vmem:[%s9024_s1 + $0x8b0] sm:$0xff]  ;;  %v4847_v8 = vld [vmem:[%s9024_s1 + $0x9b8] sm:$0xff] }
 0x52e   : > { %v5438_v37 = vpack.c.bf16 %v4789_v31, %v4788_v5  ;;  %v4808_v31 = vld [vmem:[%s9024_s1 + $0x8e0] sm:$0xff] }
 0x52f   : > { %v8325_v32 = vmax.f32 %v3163_v39, 0.0  ;;  %v3202_v17 = vsel %vm206_vm1, 0.0, %v3186_v44  ;;  %v8455_v24 = vsel %vm256_vm2, %v3210_v21, 0.0  ;;  %v5459_v39 = vpack.c.bf16 %v4803_v13, %v4802_v12  ;;  %v4844_v21 = vld [vmem:[%s9024_s1 + $0x9a0] sm:$0xff] }
 0x530   : > { %3248 = vrot.lane.b32.xlu0 %v3202_v17, %s5703_s17  ;;  %v4804_v17 = vld [vmem:[%s9024_s1 + $0x8c0] sm:$0xff] }
 0x531   : > { %v3187_v15 = vrot.slane %v8325_v32, 7  ;;  %v3211_v43 = vrot.slane %v8325_v32, 1  ;;  %v4852_v13 = vld [vmem:[%s9024_s1 + $0x9e0] sm:$0xff] }
 0x533   : > { %v3203_v35 = vsel %vm206_vm1, 0.0, %v3187_v15  ;;  %v8476_v23 = vsel %vm256_vm2, %v3211_v43, 0.0  ;;  %v4805_v15 = vld [vmem:[%s9024_s1 + $0x8c8] sm:$0xff] }
 0x534   : > { %3250 = vrot.lane.b32.xlu1 %v3203_v35, %s5703_s17  ;;  %v5462_v35 = vpack.c.bf16 %v4805_v15, %v4804_v17  ;;  %v4849_v43 = vld [vmem:[%s9024_s1 + $0x9c8] sm:$0xff]  ;;  %v4856_v15 = vld [vmem:[%s9024_s1 + $0xa00] sm:$0xff] }
 0x53e   : > { %v8332_v7 = vpop.f32.mrb[144].mxu1 }
 0x53f   : > { %v3515_v38 = vpop.f32.mrb[145].mxu1 }
 0x540   : > { %v4807_v38 = vld [vmem:[%s9024_s1 + $0x8d8] sm:$0xff] }
 0x58b   : > { %v3237_v22 = vpop.permute.xlu0 %3236 }
 0x58c   : > { %v3260_v60 = vsel %vm376_vm0, %v8288_v53, %v3237_v22  ;;  %v4810_v22 = vld [vmem:[%s9024_s1 + $0x8f0] sm:$0xff] }
 0x58d   : > { %3407 = vmatmul.mubr.f32.vlgmr.msra.gmra.mrb[144].mxu0 %v3260_v60  ;;  %3517 = vmatmul.mubr.f32.gmra.mrb[146].mxu1 %v3260_v60  ;;  %v5471_v54 = vpack.c.bf16 %v4811_v47, %v4810_v22  ;;  %v4824_v60 = vld [vmem:[%s9024_s1 + $0x900] sm:$0xff]  ;;  %v4862_v47 = vld [vmem:[%s9024_s1 + $0xa30] sm:$0xff] }
 0x58e   : > { %5439 = vmatpush1.bf16.msra.mxu0 %v5438_v37  ;;  %4771 = vmatprep.mubr.msk.f32.mxu0 %vm376_vm0, %v8350_v25  ;;  %v3239_v51 = vpop.permute.xlu1 %3238  ;;  %v5468_v37 = vpack.c.bf16 %v4809_v52, %v4808_v31  ;;  %v4860_v52 = vld [vmem:[%s9024_s1 + $0xa20] sm:$0xff] }
 0x58f   : > { %4782 = vmatprep.mubr.msk.f32.mxu1 %vm376_vm0, %v8350_v25  ;;  %5440 = vmatprep.subr.bf16.mxu0 %v9077_v20  ;;  %v8360_v53 = vsel %vm376_vm0, %v8292_v9, %v3239_v51  ;;  %v4826_v51 = vld [vmem:[%s9024_s1 + $0x910] sm:$0xff] }
 0x591   : > { %3412 = vmatmul.mubr.f32.gmra.mrb[146].mxu0 %v8360_v53  ;;  %3522 = vmatmul.mubr.f32.gmra.mrb[148].mxu1 %v8360_v53 }
 0x592   : > { %5442 = vmatpush1.bf16.msra.mxu0 %v5441_v40  ;;  %4772 = vmatprep.mubr.msk.f32.mxu0 %vm376_vm0, %v8371_v45  ;;  %v3241_v9 = vpop.permute.xlu0 %3240  ;;  %v4827_v40 = vld [vmem:[%s9024_s1 + $0x918] sm:$0xff] }
 0x593   : > { %4783 = vmatprep.mubr.msk.f32.mxu1 %vm376_vm0, %v8371_v45  ;;  %5443 = vmatprep.subr.bf16.mxu0 %v9077_v20  ;;  %v8381_v58 = vsel %vm376_vm0, %v8300_v4, %v3241_v9  ;;  %v5513_v42 = vpack.c.bf16 %v4827_v40, %v4826_v51  ;;  %v4831_v9 = vld [vmem:[%s9024_s1 + $0x938] sm:$0xff] }
 0x595   : > { %3417 = vmatmul.mubr.f32.gmra.mrb[148].mxu0 %v8381_v58  ;;  %3527 = vmatmul.mubr.f32.gmra.mrb[150].mxu1 %v8381_v58 }
 0x596   : > { %5445 = vmatpush1.bf16.msra.mxu0 %v5444_v48  ;;  %4773 = vmatprep.mubr.msk.f32.mxu0 %vm376_vm0, %v8392_v55  ;;  %v3243_v4 = vpop.permute.xlu1 %3242 }
 0x597   : > { %4784 = vmatprep.mubr.msk.f32.mxu1 %vm376_vm0, %v8392_v55  ;;  %5446 = vmatprep.subr.bf16.mxu0 %v9077_v20  ;;  %v8402_v10 = vsel %vm376_vm0, %v8305_v61, %v3243_v4 }
 0x599   : > { %3422 = vmatmul.mubr.f32.gmra.mrb[150].mxu0 %v8402_v10  ;;  %3532 = vmatmul.mubr.f32.gmra.mrb[152].mxu1 %v8402_v10 }
 0x59a   : > { %5448 = vmatpush1.bf16.msra.mxu0 %v5447_v30  ;;  %4774 = vmatprep.mubr.msk.f32.mxu0 %vm376_vm0, %v8413_v18  ;;  %v3245_v61 = vpop.permute.xlu0 %3244  ;;  %v4836_v30 = vld [vmem:[%s9024_s1 + $0x960] sm:$0xff] }
 0x59b   : > { %4785 = vmatprep.mubr.msk.f32.mxu1 %vm376_vm0, %v8413_v18  ;;  %5449 = vmatprep.subr.bf16.mxu0 %v9077_v20  ;;  %v8423_v59 = vsel %vm376_vm0, %v8310_v34, %v3245_v61  ;;  %v4840_v61 = vld [vmem:[%s9024_s1 + $0x980] sm:$0xff] }
 0x59d   : > { %3427 = vmatmul.mubr.f32.gmra.mrb[152].mxu0 %v8423_v59  ;;  %3537 = vmatmul.mubr.f32.gmra.mrb[154].mxu1 %v8423_v59 }
 0x59e   : > { %5451 = vmatpush1.bf16.msra.mxu0 %v5450_v56  ;;  %4775 = vmatprep.mubr.msk.f32.mxu0 %vm376_vm0, %v8434_v63  ;;  %v3247_v34 = vpop.permute.xlu1 %3246  ;;  %v4841_v56 = vld [vmem:[%s9024_s1 + $0x988] sm:$0xff] }
 0x59f   : > { %4786 = vmatprep.mubr.msk.f32.mxu1 %vm376_vm0, %v8434_v63  ;;  %5452 = vmatprep.subr.bf16.mxu0 %v9077_v20  ;;  %v8444_v2 = vsel %vm376_vm0, %v8315_v49, %v3247_v34  ;;  %v4845_v34 = vld [vmem:[%s9024_s1 + $0x9a8] sm:$0xff] }
 0x5a1   : > { %3432 = vmatmul.mubr.f32.gmra.mrb[154].mxu0 %v8444_v2  ;;  %3542 = vmatmul.mubr.f32.gmra.mrb[156].mxu1 %v8444_v2 }
 0x5a2   : > { %5454 = vmatpush1.bf16.msra.mxu0 %v5453_v3  ;;  %4776 = vmatprep.mubr.msk.f32.mxu0 %vm376_vm0, %v8455_v24  ;;  %v3249_v49 = vpop.permute.xlu0 %3248  ;;  %v5540_v3 = vpack.c.bf16 %v4845_v34, %v4844_v21 }
 0x5a3   : > { %4787 = vmatprep.mubr.msk.f32.mxu1 %vm376_vm0, %v8455_v24  ;;  %5455 = vmatprep.subr.bf16.mxu0 %v9077_v20  ;;  %v8465_v16 = vsel %vm376_vm0, %v8320_v33, %v3249_v49  ;;  %v4850_v49 = vld [vmem:[%s9024_s1 + $0x9d0] sm:$0xff] }
 0x5a5   : > { %3437 = vmatmul.mubr.f32.gmra.mrb[156].mxu0 %v8465_v16  ;;  %3547 = vmatmul.mubr.f32.gmra.mrb[158].mxu1 %v8465_v16 }
 0x5a6   : > { %5457 = vmatpush1.bf16.msra.mxu0 %v5456_v27  ;;  %4777 = vmatprep.mubr.msk.f32.mxu0 %vm376_vm0, %v8476_v23  ;;  %v3251_v33 = vpop.permute.xlu1 %3250 }
 0x5a7   : > { %5458 = vmatprep.subr.bf16.mxu0 %v9077_v20  ;;  %v8483_v44 = vsel %vm376_vm0, %v8325_v32, %v3251_v33  ;;  %v4806_v32 = vld [vmem:[%s9024_s1 + $0x8d0] sm:$0xff] }
 0x5a8   : > { %v5465_v5 = vpack.c.bf16 %v4807_v38, %v4806_v32  ;;  %v4858_v38 = vld [vmem:[%s9024_s1 + $0xa10] sm:$0xff] }
 0x5a9   : > { %3442 = vmatmul.mubr.f32.gmra.mrb[158].mxu0 %v8483_v44 }
 0x5aa   : > { %5460 = vmatpush1.bf16.msra.mxu0 %v5459_v39  ;;  %4812 = vmatprep.mubr.msk.f32.mxu0 %vm376_vm0, %v8350_v25  ;;  %v4825_v25 = vld [vmem:[%s9024_s1 + $0x908] sm:$0xff]  ;;  %v4854_v39 = vld [vmem:[%s9024_s1 + $0x9f0] sm:$0xff] }
 0x5ab   : > { %5461 = vmatprep.subr.bf16.mxu0 %v9077_v20  ;;  %v5510_v29 = vpack.c.bf16 %v4825_v25, %v4824_v60  ;;  %v4864_v25 = vld [vmem:[%s9024_s1 + $0xa40] sm:$0xff] }
 0x5ae   : > { %5463 = vmatpush1.bf16.msra.mxu0 %v5462_v35  ;;  %v4857_v35 = vld [vmem:[%s9024_s1 + $0xa08] sm:$0xff] }
 0x5af   : > { %5464 = vmatprep.subr.bf16.mxu0 %v9077_v20  ;;  %v5486_v32 = vpack.c.bf16 %v4857_v35, %v4856_v15 }
 0x5b2   : > { %5466 = vmatpush1.bf16.msra.mxu0 %v5465_v5  ;;  %v4859_v5 = vld [vmem:[%s9024_s1 + $0xa18] sm:$0xff] }
 0x5b3   : > { %5467 = vmatprep.subr.bf16.mxu0 %v9077_v20  ;;  %v5489_v31 = vpack.c.bf16 %v4859_v5, %v4858_v38  ;;  %v4823_v38 = vld [vmem:[%s9025_s2 + $0x3] ss:$0 sm:$0xff] }
 0x5b6   : > { %5469 = vmatpush1.bf16.msra.mxu0 %v5468_v37  ;;  %v4861_v37 = vld [vmem:[%s9024_s1 + $0xa28] sm:$0xff] }
 0x5b7   : > { %5470 = vmatprep.subr.bf16.mxu0 %v9077_v20  ;;  %v5492_v22 = vpack.c.bf16 %v4861_v37, %v4860_v52 }
 0x5ba   : > { %5472 = vmatpush1.bf16.msra.mxu0 %v5471_v54  ;;  %v4863_v54 = vld [vmem:[%s9024_s1 + $0xa38] sm:$0xff] }
 0x5bb   : > { %5509 = vmatprep.subr.bf16.mxu0 %v9077_v20  ;;  %v5495_v60 = vpack.c.bf16 %v4863_v54, %v4862_v47 }
 0x5bd   : > { %3642 = vmatmul.mubr.f32.vlgmr.msra.gmra.mrb[160].mxu0 %v8360_v53  ;;  %v5516_v53 = vpack.c.bf16 %v4829_v46, %v4828_v14 }
 0x5be   : > { %4813 = vmatprep.mubr.msk.f32.mxu0 %vm376_vm0, %v8371_v45  ;;  %5511 = vmatpush1.bf16.msra.mxu0 %v5510_v29  ;;  %v4830_v45 = vld [vmem:[%s9024_s1 + $0x930] sm:$0xff]  ;;  %v4865_v29 = vld [vmem:[%s9024_s1 + $0xa48] sm:$0xff] }
 0x5bf   : > { %5512 = vmatprep.subr.bf16.mxu0 %v9077_v20  ;;  %v5519_v48 = vpack.c.bf16 %v4831_v9, %v4830_v45  ;;  %v4866_v45 = vld [vmem:[%s9024_s1 + $0xa50] sm:$0xff]  ;;  %v4867_v9 = vld [vmem:[%s9024_s1 + $0xa58] sm:$0xff] }
 0x5c1   : > { %3647 = vmatmul.mubr.f32.gmra.mrb[162].mxu0 %v8381_v58  ;;  %v4832_v58 = vld [vmem:[%s9024_s1 + $0x940] sm:$0xff] }
 0x5c2   : > { %4814 = vmatprep.mubr.msk.f32.mxu0 %vm376_vm0, %v8392_v55  ;;  %5514 = vmatpush1.bf16.msra.mxu0 %v5513_v42  ;;  %v5522_v36 = vpack.c.bf16 %v4833_v0, %v4832_v58  ;;  %v4834_v55 = vld [vmem:[%s9024_s1 + $0x950] sm:$0xff]  ;;  %v5498_v42 = vpack.c.bf16 %v4865_v29, %v4864_v25  ;;  %v5501_v0 = vpack.c.bf16 %v4867_v9, %v4866_v45 }
 0x5c3   : > { %5515 = vmatprep.subr.bf16.mxu0 %v9077_v20  ;;  %v5525_v4 = vpack.c.bf16 %v4835_v6, %v4834_v55 }
 0x5c5   : > { %3652 = vmatmul.mubr.f32.gmra.mrb[164].mxu0 %v8402_v10  ;;  %v4837_v10 = vld [vmem:[%s9024_s1 + $0x968] sm:$0xff] }
 0x5c6   : > { %4815 = vmatprep.mubr.msk.f32.mxu0 %vm376_vm0, %v8413_v18  ;;  %5517 = vmatpush1.bf16.msra.mxu0 %v5516_v53  ;;  %v5528_v62 = vpack.c.bf16 %v4837_v10, %v4836_v30  ;;  %v4839_v18 = vld [vmem:[%s9024_s1 + $0x978] sm:$0xff] }
 0x5c7   : > { %5518 = vmatprep.subr.bf16.mxu0 %v9077_v20  ;;  %v5531_v41 = vpack.c.bf16 %v4839_v18, %v4838_v28 }
 0x5c9   : > { %3657 = vmatmul.mubr.f32.gmra.mrb[166].mxu0 %v8423_v59  ;;  %v5534_v59 = vpack.c.bf16 %v4841_v56, %v4840_v61  ;;  %v4870_v61 = vld [vmem:[%s9024_s1 + $0xa70] sm:$0xff]  ;;  %v4871_v56 = vld [vmem:[%s9024_s1 + $0xa78] sm:$0xff] }
 0x5ca   : > { %4816 = vmatprep.mubr.msk.f32.mxu0 %vm376_vm0, %v8434_v63  ;;  %5520 = vmatpush1.bf16.msra.mxu0 %v5519_v48  ;;  %v5537_v63 = vpack.c.bf16 %v4843_v1, %v4842_v11  ;;  %v5507_v1 = vpack.c.bf16 %v4871_v56, %v4870_v61 }
 0x5cb   : > { %5521 = vmatprep.subr.bf16.mxu0 %v9077_v20 }
 0x5cd   : > { %3662 = vmatmul.mubr.f32.gmra.mrb[168].mxu0 %v8444_v2  ;;  %v4846_v2 = vld [vmem:[%s9024_s1 + $0x9b0] sm:$0xff] }
 0x5ce   : > { %4817 = vmatprep.mubr.msk.f32.mxu0 %vm376_vm0, %v8455_v24  ;;  %5523 = vmatpush1.bf16.msra.mxu0 %v5522_v36  ;;  %v5543_v57 = vpack.c.bf16 %v4847_v8, %v4846_v2  ;;  %v4848_v24 = vld [vmem:[%s9024_s1 + $0x9c0] sm:$0xff] }
 0x5cf   : > { %5524 = vmatprep.subr.bf16.mxu0 %v9077_v20  ;;  %v5474_v27 = vpack.c.bf16 %v4849_v43, %v4848_v24 }
 0x5d1   : > { %3667 = vmatmul.mubr.f32.gmra.mrb[170].mxu0 %v8465_v16  ;;  %v4851_v16 = vld [vmem:[%s9024_s1 + $0x9d8] sm:$0xff]  ;;  %5475 = vmatpush1.bf16.msra.mxu1 %v5474_v27 }
 0x5d2   : > { %4818 = vmatprep.mubr.msk.f32.mxu0 %vm376_vm0, %v8476_v23  ;;  %5526 = vmatpush1.bf16.msra.mxu0 %v5525_v4  ;;  %v5477_v12 = vpack.c.bf16 %v4851_v16, %v4850_v49  ;;  %v4853_v23 = vld [vmem:[%s9024_s1 + $0x9e8] sm:$0xff] }
 0x5d3   : > { %5527 = vmatprep.subr.bf16.mxu0 %v9077_v20  ;;  %5476 = vmatprep.subr.bf16.mxu1 %v9077_v20  ;;  %v5480_v33 = vpack.c.bf16 %v4853_v23, %v4852_v13  ;;  %v4869_v4 = vld [vmem:[%s9024_s1 + $0xa68] sm:$0xff] }
 0x5d5   : > { %3672 = vmatmul.mubr.f32.gmra.mrb[172].mxu0 %v8483_v44  ;;  %5478 = vmatpush1.bf16.msra.mxu1 %v5477_v12  ;;  %v4855_v44 = vld [vmem:[%s9024_s1 + $0x9f8] sm:$0xff] }
 0x5d6   : > { %5529 = vmatpush1.bf16.msra.mxu0 %v5528_v62  ;;  %4819 = vmatprep.mubr.msk.f32.mxu0 %vm376_vm0, %v9095_v19  ;;  %v5483_v17 = vpack.c.bf16 %v4855_v44, %v4854_v39 }
 0x5d7   : > { %5530 = vmatprep.subr.bf16.mxu0 %v9077_v20  ;;  %5479 = vmatprep.subr.bf16.mxu1 %v9077_v20 }
 0x5d9   : > { %4821 = vmatmul.mubr.msk.f32.gmra.mrb[174].mxu0 %vm6278_vm3, %v9093_v50  ;;  %5481 = vmatpush1.bf16.msra.mxu1 %v5480_v33 }
 0x5da   : > { %5532 = vmatpush1.bf16.msra.mxu0 %v5531_v41  ;;  %4880 = vmatprep.mubr.msk.f32.mxu0 %vm376_vm0, %v9095_v19 }
 0x5db   : > { %5533 = vmatprep.subr.bf16.mxu0 %v9077_v20  ;;  %5482 = vmatprep.subr.bf16.mxu1 %v9077_v20 }
 0x5dd   : > { %5484 = vmatpush1.bf16.msra.mxu1 %v5483_v17 }
 0x5de   : > { %5535 = vmatpush1.bf16.msra.mxu0 %v5534_v59  ;;  %5485 = vmatprep.subr.bf16.mxu1 %v9077_v20 }
 0x5df   : > { %5536 = vmatprep.subr.bf16.mxu0 %v9077_v20 }
 0x5e1   : > { %5487 = vmatpush1.bf16.msra.mxu1 %v5486_v32 }
 0x5e2   : > { %5538 = vmatpush1.bf16.msra.mxu0 %v5537_v63  ;;  %5488 = vmatprep.subr.bf16.mxu1 %v9077_v20 }
 0x5e3   : > { %5539 = vmatprep.subr.bf16.mxu0 %v9077_v20 }
 0x5e5   : > { %5490 = vmatpush1.bf16.msra.mxu1 %v5489_v31 }
 0x5e6   : > { %5541 = vmatpush1.bf16.msra.mxu0 %v5540_v3  ;;  %5491 = vmatprep.subr.bf16.mxu1 %v9077_v20 }
 0x5e7   : > { %5542 = vmatprep.subr.bf16.mxu0 %v9077_v20 }
 0x5e9   : > { %5493 = vmatpush1.bf16.msra.mxu1 %v5492_v22 }
 0x5ea   : > { %5544 = vmatpush1.bf16.msra.mxu0 %v5543_v57  ;;  %5494 = vmatprep.subr.bf16.mxu1 %v9077_v20 }
 0x5ed   : > { %4882 = vmatmul.mubr.msk.f32.vlgmr.msra.gmra.mrb[176].mxu0 %vm6278_vm3, %v9093_v50  ;;  %5496 = vmatpush1.bf16.msra.mxu1 %v5495_v60 }
 0x5ee   : > { %5497 = vmatprep.subr.bf16.mxu1 %v9077_v20 }
 0x5f1   : > { %5499 = vmatpush1.bf16.msra.mxu1 %v5498_v42 }
 0x5f2   : > { %5500 = vmatprep.subr.bf16.mxu1 %v9077_v20 }
 0x5f5   : > { %5502 = vmatpush1.bf16.msra.mxu1 %v5501_v0 }
 0x5f6   : > { %5503 = vmatprep.subr.bf16.mxu1 %v9077_v20 }
 0x660   : > { %v3408_v51 = vpop.f32.mrb[144].mxu0  ;;  %v3518_v40 = vpop.f32.mrb[146].mxu1 }
 0x661   : > { %v3514_v14 = vadd.f32 %v8332_v7, %v3408_v51  ;;  %v3410_v46 = vpop.f32.mrb[145].mxu0  ;;  %v3520_v53 = vpop.f32.mrb[147].mxu1  ;;  %v4868_v7 = vld [vmem:[%s9024_s1 + $0xa60] sm:$0xff] }
 0x662   : > { %v5504_v62 = vpack.c.bf16 %v4869_v4, %v4868_v7 }
 0x664   : > { %v3413_v48 = vpop.f32.mrb[146].mxu0  ;;  %v3523_v58 = vpop.f32.mrb[148].mxu1  ;;  %5505 = vmatpush1.bf16.msra.mxu1 %v5504_v62 }
 0x665   : > { %v3519_v36 = vadd.f32 %v3518_v40, %v3413_v48  ;;  %v3415_v55 = vpop.f32.mrb[147].mxu0  ;;  %v3525_v6 = vpop.f32.mrb[149].mxu1  ;;  %5506 = vmatprep.subr.bf16.mxu1 %v9077_v20 }
 0x668   : > { %v3418_v30 = vpop.f32.mrb[148].mxu0  ;;  %v3528_v10 = vpop.f32.mrb[150].mxu1  ;;  %5508 = vmatpush1.bf16.msra.mxu1 %v5507_v1 }
 0x669   : > { %v3524_v28 = vadd.f32 %v3523_v58, %v3418_v30  ;;  %v3420_v18 = vpop.f32.mrb[149].mxu0  ;;  %v3530_v41 = vpop.f32.mrb[151].mxu1  ;;  %5545 = vmatprep.subr.bf16.mxu1 %v9077_v20 }
 0x66c   : > { %v3423_v59 = vpop.f32.mrb[150].mxu0  ;;  %v3533_v11 = vpop.f32.mrb[152].mxu1 }
 0x66d   : > { %v3529_v63 = vadd.f32 %v3528_v10, %v3423_v59  ;;  %v3425_v21 = vpop.f32.mrb[151].mxu0  ;;  %v3535_v34 = vpop.f32.mrb[153].mxu1 }
 0x670   : > { %v3428_v3 = vpop.f32.mrb[152].mxu0  ;;  %v3538_v2 = vpop.f32.mrb[154].mxu1 }
 0x671   : > { %v3534_v8 = vadd.f32 %v3533_v11, %v3428_v3  ;;  %v3430_v57 = vpop.f32.mrb[153].mxu0  ;;  %v3540_v24 = vpop.f32.mrb[155].mxu1 }
 0x674   : > { %v3433_v43 = vpop.f32.mrb[154].mxu0  ;;  %v3543_v49 = vpop.f32.mrb[156].mxu1 }
 0x675   : > { %v3539_v27 = vadd.f32 %v3538_v2, %v3433_v43  ;;  %v3435_v16 = vpop.f32.mrb[155].mxu0  ;;  %v3545_v12 = vpop.f32.mrb[157].mxu1 }
 0x678   : > { %v3438_v13 = vpop.f32.mrb[156].mxu0  ;;  %v3548_v23 = vpop.f32.mrb[158].mxu1 }
 0x679   : > { %v3544_v33 = vadd.f32 %v3543_v49, %v3438_v13  ;;  %v3440_v39 = vpop.f32.mrb[157].mxu0  ;;  %v3550_v44 = vpop.f32.mrb[159].mxu1 }
 0x67c   : > { %v3443_v17 = vpop.f32.mrb[158].mxu0 }
 0x67d   : > { %v3549_v15 = vadd.f32 %v3548_v23, %v3443_v17  ;;  %v3445_v35 = vpop.f32.mrb[159].mxu0 }
 0x690   : > { %v3643_v32 = vpop.f32.mrb[160].mxu0 }
 0x691   : > { %v3682_v5 = vadd.f32 %v3643_v32, %v3514_v14  ;;  %v3645_v31 = vpop.f32.mrb[161].mxu0 }
 0x693   : > { %v3698_v52 = vadd.f32 %v4823_v38, %v3682_v5  ;;  %v4891_v5 = vld [vmem:[%s9024_s1 + $0xa88] sm:$0xff] }
 0x694   : > { %v3648_v37 = vpop.f32.mrb[162].mxu0 }
 0x695   : > { %v8717_v22 = vmax.f32 %v3698_v52, 0.0  ;;  %v3683_v47 = vadd.f32 %v3648_v37, %v3519_v36  ;;  %v3650_v54 = vpop.f32.mrb[163].mxu0 }
 0x696   : > { %v4893_v54 = vld [vmem:[%s9024_s1 + $0xa98] sm:$0xff] }
 0x697   : > { %v3699_v60 = vadd.f32 %v4823_v38, %v3683_v47  ;;  %v3746_v25 = vrot.slane %v8717_v22, 1  ;;  %v3722_v29 = vrot.slane %v8717_v22, 7  ;;  %v4892_v47 = vld [vmem:[%s9024_s1 + $0xa90] sm:$0xff] }
 0x698   : > { %v3653_v51 = vpop.f32.mrb[164].mxu0 }
 0x699   : > { %v8721_v40 = vmax.f32 %v3699_v60, 0.0  ;;  %v3684_v42 = vadd.f32 %v3653_v51, %v3524_v28  ;;  %v3655_v46 = vpop.f32.mrb[165].mxu0  ;;  %v3762_v53 = vsel %vm256_vm2, %v3746_v25, 0.0  ;;  %v3738_v14 = vsel %vm206_vm1, 0.0, %v3722_v29 }
 0x69a   : > { %4872 = vmatprep.mubr.msk.f32.mxu1 %vm376_vm0, %v3762_v53  ;;  %4883 = vmatprep.mubr.msk.f32.mxu0 %vm376_vm0, %v3762_v53  ;;  %v4894_v46 = vld [vmem:[%s9024_s1 + $0xaa0] sm:$0xff]  ;;  %v4895_v53 = vld [vmem:[%s9024_s1 + $0xaa8] sm:$0xff] }
 0x69b   : > { %v3700_v45 = vadd.f32 %v4823_v38, %v3684_v42  ;;  %3778 = vrot.lane.b32.xlu0 %v3738_v14, %s5703_s17  ;;  %v3723_v9 = vrot.slane %v8721_v40, 7  ;;  %v3747_v31 = vrot.slane %v8721_v40, 1  ;;  %v5549_v42 = vpack.c.bf16 %v4893_v54, %v4892_v47  ;;  %v4913_v47 = vld [vmem:[%s9024_s1 + $0xb38] sm:$0xff] }
 0x69c   : > { %v3658_v48 = vpop.f32.mrb[166].mxu0 }
 0x69d   : > { %v8729_v58 = vmax.f32 %v3700_v45, 0.0  ;;  %v3685_v0 = vadd.f32 %v3658_v48, %v3529_v63  ;;  %v3660_v36 = vpop.f32.mrb[167].mxu0  ;;  %v3739_v55 = vsel %vm206_vm1, 0.0, %v3723_v9  ;;  %v8779_v25 = vsel %vm256_vm2, %v3747_v31, 0.0  ;;  %v4911_v31 = vld [vmem:[%s9024_s1 + $0xb28] sm:$0xff] }
 0x69e   : > { %3780 = vrot.lane.b32.xlu1 %v3739_v55, %s5703_s17  ;;  %v5552_v9 = vpack.c.bf16 %v4895_v53, %v4894_v46  ;;  %v4897_v36 = vld [vmem:[%s9024_s1 + $0xab8] sm:$0xff] }
 0x69f   : > { %v3701_v6 = vadd.f32 %v4823_v38, %v3685_v0  ;;  %v3724_v7 = vrot.slane %v8729_v58, 7  ;;  %v3748_v29 = vrot.slane %v8729_v58, 1  ;;  %v4896_v0 = vld [vmem:[%s9024_s1 + $0xab0] sm:$0xff] }
 0x6a0   : > { %v3663_v4 = vpop.f32.mrb[168].mxu0 }
 0x6a1   : > { %v8734_v30 = vmax.f32 %v3701_v6, 0.0  ;;  %v3686_v10 = vadd.f32 %v3663_v4, %v3534_v8  ;;  %v3665_v62 = vpop.f32.mrb[169].mxu0  ;;  %v3740_v28 = vsel %vm206_vm1, 0.0, %v3724_v7  ;;  %v8800_v14 = vsel %vm256_vm2, %v3748_v29, 0.0 }
 0x6a2   : > { %3782 = vrot.lane.b32.xlu0 %v3740_v28, %s5703_s17  ;;  %v5555_v7 = vpack.c.bf16 %v4897_v36, %v4896_v0  ;;  %v4899_v62 = vld [vmem:[%s9024_s1 + $0xac8] sm:$0xff] }
 0x6a3   : > { %v3702_v18 = vadd.f32 %v4823_v38, %v3686_v10  ;;  %v3725_v41 = vrot.slane %v8734_v30, 7  ;;  %v3749_v45 = vrot.slane %v8734_v30, 1  ;;  %v4898_v10 = vld [vmem:[%s9024_s1 + $0xac0] sm:$0xff] }
 0x6a4   : > { %v3668_v61 = vpop.f32.mrb[170].mxu0 }
 0x6a5   : > { %v8739_v56 = vmax.f32 %v3702_v18, 0.0  ;;  %v3687_v59 = vadd.f32 %v3668_v61, %v3539_v27  ;;  %v3670_v11 = vpop.f32.mrb[171].mxu0  ;;  %v3741_v1 = vsel %vm206_vm1, 0.0, %v3725_v41  ;;  %v8821_v55 = vsel %vm256_vm2, %v3749_v45, 0.0 }
 0x6a6   : > { %3784 = vrot.lane.b32.xlu1 %v3741_v1, %s5703_s17  ;;  %v5558_v41 = vpack.c.bf16 %v4899_v62, %v4898_v10  ;;  %v4901_v11 = vld [vmem:[%s9024_s1 + $0xad8] sm:$0xff] }
 0x6a7   : > { %v3703_v63 = vadd.f32 %v4823_v38, %v3687_v59  ;;  %v3726_v21 = vrot.slane %v8739_v56, 7  ;;  %v3750_v6 = vrot.slane %v8739_v56, 1  ;;  %v4900_v59 = vld [vmem:[%s9024_s1 + $0xad0] sm:$0xff] }
 0x6a8   : > { %v3673_v34 = vpop.f32.mrb[172].mxu0 }
 0x6a9   : > { %v8744_v3 = vmax.f32 %v3703_v63, 0.0  ;;  %v3688_v2 = vadd.f32 %v3673_v34, %v3544_v33  ;;  %v3675_v8 = vpop.f32.mrb[173].mxu0  ;;  %v3742_v57 = vsel %vm206_vm1, 0.0, %v3726_v21  ;;  %v8842_v28 = vsel %vm256_vm2, %v3750_v6, 0.0 }
 0x6aa   : > { %3786 = vrot.lane.b32.xlu0 %v3742_v57, %s5703_s17  ;;  %v5561_v21 = vpack.c.bf16 %v4901_v11, %v4900_v59  ;;  %v4903_v8 = vld [vmem:[%s9024_s1 + $0xae8] sm:$0xff] }
 0x6ab   : > { %v3704_v24 = vadd.f32 %v4823_v38, %v3688_v2  ;;  %v3727_v43 = vrot.slane %v8744_v3, 7  ;;  %v3751_v18 = vrot.slane %v8744_v3, 1  ;;  %v4902_v2 = vld [vmem:[%s9024_s1 + $0xae0] sm:$0xff] }
 0x6ac   : > { %v3678_v49 = vpop.f32.mrb[174].mxu0 }
 0x6ad   : > { %v8749_v27 = vmax.f32 %v3704_v24, 0.0  ;;  %v3689_v16 = vadd.f32 %v3678_v49, %v3549_v15  ;;  %v3680_v12 = vpop.f32.mrb[175].mxu0  ;;  %v3743_v13 = vsel %vm206_vm1, 0.0, %v3727_v43  ;;  %v8863_v1 = vsel %vm256_vm2, %v3751_v18, 0.0 }
 0x6ae   : > { %3788 = vrot.lane.b32.xlu1 %v3743_v13, %s5703_s17  ;;  %v5564_v49 = vpack.c.bf16 %v4903_v8, %v4902_v2  ;;  %v4905_v12 = vld [vmem:[%s9024_s1 + $0xaf8] sm:$0xff]  ;;  %v4925_v2 = vld [vmem:[%s9025_s2 + $0x4] ss:$0 sm:$0xff] }
 0x6af   : > { %v3705_v23 = vadd.f32 %v4823_v38, %v3689_v16  ;;  %v3728_v33 = vrot.slane %v8749_v27, 7  ;;  %v4890_v38 = vld [vmem:[%s9024_s1 + $0xa80] sm:$0xff]  ;;  %v3752_v63 = vrot.slane %v8749_v27, 1  ;;  %v4904_v16 = vld [vmem:[%s9024_s1 + $0xaf0] sm:$0xff] }
 0x6b0   : > { %v5546_v52 = vpack.c.bf16 %v4891_v5, %v4890_v38  ;;  %v4910_v5 = vld [vmem:[%s9024_s1 + $0xb20] sm:$0xff] }
 0x6b1   : > { %v8754_v39 = vmax.f32 %v3705_v23, 0.0  ;;  %v3744_v44 = vsel %vm206_vm1, 0.0, %v3728_v33  ;;  %v3768_v57 = vsel %vm256_vm2, %v3752_v63, 0.0  ;;  %v5567_v33 = vpack.c.bf16 %v4905_v12, %v4904_v16 }
 0x6b2   : > { %3790 = vrot.lane.b32.xlu0 %v3744_v44, %s5703_s17  ;;  %v4906_v44 = vld [vmem:[%s9024_s1 + $0xb00] sm:$0xff] }
 0x6b3   : > { %v3729_v17 = vrot.slane %v8754_v39, 7  ;;  %v3753_v24 = vrot.slane %v8754_v39, 1 }
 0x6b5   : > { %v3745_v35 = vsel %vm206_vm1, 0.0, %v3729_v17  ;;  %v3769_v13 = vsel %vm256_vm2, %v3753_v24, 0.0  ;;  %v4907_v17 = vld [vmem:[%s9024_s1 + $0xb08] sm:$0xff] }
 0x6b6   : > { %3792 = vrot.lane.b32.xlu1 %v3745_v35, %s5703_s17  ;;  %v5570_v35 = vpack.c.bf16 %v4907_v17, %v4906_v44  ;;  %s5641_s17 = sshll.u32 %s5704_s20, 4  ;;  %s5642_s17 = int_to_ptr.vmem [resolvable:$false] %s5641_s17 }
 0x6b7   : > { %s5643_s24 = scalar_lea.vmem %s5642_s17, 2048  ;;  %p5644_p0 = scmp.lt.s32.totalorder %s8976_s8, %s5642_s17 }
 0x6b8   : > { %p5645_p1 = scmp.lt.s32.totalorder %s5643_s24, %s5637_s16 }
 0x6ba   : > { %p5646_p2 = por %p5645_p1, %p5644_p0 }
 0x6bc   : > { %p5647_p3 = pnand %p5646_p2, %p5640_p13 }
 0x6c0   : > { %v8761_v15 = vpop.f32.mrb[176].mxu0 }
 0x6c1   : > { %v4057_v32 = vpop.f32.mrb[177].mxu0 }
 0x6c2   : > { %v4909_v32 = vld [vmem:[%s9024_s1 + $0xb18] sm:$0xff] }
 0x70d   : > { %v3779_v37 = vpop.permute.xlu0 %3778 }
 0x70e   : > { %v3802_v60 = vsel %vm376_vm0, %v8717_v22, %v3779_v37  ;;  %v4912_v37 = vld [vmem:[%s9024_s1 + $0xb30] sm:$0xff] }
 0x70f   : > { %3949 = vmatmul.mubr.f32.vlgmr.msra.gmra.mrb[160].mxu1 %v3802_v60  ;;  %4059 = vmatmul.mubr.f32.gmra.mrb[178].mxu0 %v3802_v60  ;;  %v5579_v54 = vpack.c.bf16 %v4913_v47, %v4912_v37 }
 0x710   : > { %5547 = vmatpush1.bf16.msra.mxu1 %v5546_v52  ;;  %4873 = vmatprep.mubr.msk.f32.mxu1 %vm376_vm0, %v8779_v25  ;;  %v3781_v51 = vpop.permute.xlu1 %3780  ;;  %v5576_v52 = vpack.c.bf16 %v4911_v31, %v4910_v5 }
 0x711   : > { %4884 = vmatprep.mubr.msk.f32.mxu0 %vm376_vm0, %v8779_v25  ;;  %5548 = vmatprep.subr.bf16.mxu1 %v9077_v20  ;;  %v8789_v22 = vsel %vm376_vm0, %v8721_v40, %v3781_v51 }
 0x713   : > { %3954 = vmatmul.mubr.f32.gmra.mrb[162].mxu1 %v8789_v22  ;;  %4064 = vmatmul.mubr.f32.gmra.mrb[180].mxu0 %v8789_v22 }
 0x714   : > { %5550 = vmatpush1.bf16.msra.mxu1 %v5549_v42  ;;  %4874 = vmatprep.mubr.msk.f32.mxu1 %vm376_vm0, %v8800_v14  ;;  %v3783_v40 = vpop.permute.xlu0 %3782 }
 0x715   : > { %4885 = vmatprep.mubr.msk.f32.mxu0 %vm376_vm0, %v8800_v14  ;;  %5551 = vmatprep.subr.bf16.mxu1 %v9077_v20  ;;  %v8810_v48 = vsel %vm376_vm0, %v8729_v58, %v3783_v40 }
 0x717   : > { %3959 = vmatmul.mubr.f32.gmra.mrb[164].mxu1 %v8810_v48  ;;  %4069 = vmatmul.mubr.f32.gmra.mrb[182].mxu0 %v8810_v48 }
 0x718   : > { %5553 = vmatpush1.bf16.msra.mxu1 %v5552_v9  ;;  %4875 = vmatprep.mubr.msk.f32.mxu1 %vm376_vm0, %v8821_v55  ;;  %v3785_v58 = vpop.permute.xlu1 %3784 }
 0x719   : > { %4886 = vmatprep.mubr.msk.f32.mxu0 %vm376_vm0, %v8821_v55  ;;  %5554 = vmatprep.subr.bf16.mxu1 %v9077_v20  ;;  %v8831_v4 = vsel %vm376_vm0, %v8734_v30, %v3785_v58 }
 0x71b   : > { %3964 = vmatmul.mubr.f32.gmra.mrb[166].mxu1 %v8831_v4  ;;  %4074 = vmatmul.mubr.f32.gmra.mrb[184].mxu0 %v8831_v4 }
 0x71c   : > { %5556 = vmatpush1.bf16.msra.mxu1 %v5555_v7  ;;  %4876 = vmatprep.mubr.msk.f32.mxu1 %vm376_vm0, %v8842_v28  ;;  %v3787_v30 = vpop.permute.xlu0 %3786 }
 0x71d   : > { %4887 = vmatprep.mubr.msk.f32.mxu0 %vm376_vm0, %v8842_v28  ;;  %5557 = vmatprep.subr.bf16.mxu1 %v9077_v20  ;;  %v8852_v61 = vsel %vm376_vm0, %v8739_v56, %v3787_v30 }
 0x71f   : > { %3969 = vmatmul.mubr.f32.gmra.mrb[168].mxu1 %v8852_v61  ;;  %4079 = vmatmul.mubr.f32.gmra.mrb[186].mxu0 %v8852_v61 }
 0x720   : > { %5559 = vmatpush1.bf16.msra.mxu1 %v5558_v41  ;;  %4877 = vmatprep.mubr.msk.f32.mxu1 %vm376_vm0, %v8863_v1  ;;  %v3789_v56 = vpop.permute.xlu1 %3788 }
 0x721   : > { %4888 = vmatprep.mubr.msk.f32.mxu0 %vm376_vm0, %v8863_v1  ;;  %5560 = vmatprep.subr.bf16.mxu1 %v9077_v20  ;;  %v3807_v34 = vsel %vm376_vm0, %v8744_v3, %v3789_v56 }
 0x723   : > { %3974 = vmatmul.mubr.f32.gmra.mrb[170].mxu1 %v3807_v34  ;;  %4084 = vmatmul.mubr.f32.gmra.mrb[188].mxu0 %v3807_v34 }
 0x724   : > { %5562 = vmatpush1.bf16.msra.mxu1 %v5561_v21  ;;  %4878 = vmatprep.mubr.msk.f32.mxu1 %vm376_vm0, %v3768_v57  ;;  %v3791_v43 = vpop.permute.xlu0 %3790 }
 0x725   : > { %4889 = vmatprep.mubr.msk.f32.mxu0 %vm376_vm0, %v3768_v57  ;;  %5563 = vmatprep.subr.bf16.mxu1 %v9077_v20  ;;  %v3808_v3 = vsel %vm376_vm0, %v8749_v27, %v3791_v43 }
 0x727   : > { %3979 = vmatmul.mubr.f32.gmra.mrb[172].mxu1 %v3808_v3  ;;  %4089 = vmatmul.mubr.f32.gmra.mrb[190].mxu0 %v3808_v3 }
 0x728   : > { %5565 = vmatpush1.bf16.msra.mxu1 %v5564_v49  ;;  %4879 = vmatprep.mubr.msk.f32.mxu1 %vm376_vm0, %v3769_v13  ;;  %v3793_v23 = vpop.permute.xlu1 %3792 }
 0x729   : > { %5566 = vmatprep.subr.bf16.mxu1 %v9077_v20  ;;  %v3809_v27 = vsel %vm376_vm0, %v8754_v39, %v3793_v23  ;;  %v4908_v39 = vld [vmem:[%s9024_s1 + $0xb10] sm:$0xff] }
 0x72a   : > { %v5573_v38 = vpack.c.bf16 %v4909_v32, %v4908_v39 }
 0x72b   : > { %3984 = vmatmul.mubr.f32.gmra.mrb[174].mxu1 %v3809_v27 }
 0x72c   : > { %5568 = vmatpush1.bf16.msra.mxu1 %v5567_v33  ;;  %4914 = vmatprep.mubr.msk.f32.mxu1 %vm376_vm0, %v8779_v25 }
 0x72d   : > { %5569 = vmatprep.subr.bf16.mxu1 %v9077_v20 }
 0x730   : > { %5571 = vmatpush1.bf16.msra.mxu1 %v5570_v35 }
 0x731   : > { %5572 = vmatprep.subr.bf16.mxu1 %v9077_v20 }
 0x734   : > { %5574 = vmatpush1.bf16.msra.mxu1 %v5573_v38 }
 0x735   : > { %5575 = vmatprep.subr.bf16.mxu1 %v9077_v20 }
 0x738   : > { %5577 = vmatpush1.bf16.msra.mxu1 %v5576_v52 }
 0x739   : > { %5578 = vmatprep.subr.bf16.mxu1 %v9077_v20 }
 0x73c   : > { %5580 = vmatpush1.bf16.msra.mxu1 %v5579_v54 }
 0x73f   : > { %4184 = vmatmul.mubr.f32.vlgmr.msra.gmra.mrb[176].mxu1 %v8789_v22 }
 0x740   : > { %4915 = vmatprep.mubr.msk.f32.mxu1 %vm376_vm0, %v8800_v14 }
 0x743   : > { %4189 = vmatmul.mubr.f32.gmra.mrb[178].mxu1 %v8810_v48 }
 0x744   : > { %4916 = vmatprep.mubr.msk.f32.mxu1 %vm376_vm0, %v8821_v55 }
 0x747   : > { %4194 = vmatmul.mubr.f32.gmra.mrb[180].mxu1 %v8831_v4 }
 0x748   : > { %4917 = vmatprep.mubr.msk.f32.mxu1 %vm376_vm0, %v8842_v28 }
 0x74b   : > { %4199 = vmatmul.mubr.f32.gmra.mrb[182].mxu1 %v8852_v61 }
 0x74c   : > { %4918 = vmatprep.mubr.msk.f32.mxu1 %vm376_vm0, %v8863_v1 }
 0x74f   : > { %4204 = vmatmul.mubr.f32.gmra.mrb[184].mxu1 %v3807_v34 }
 0x750   : > { %4919 = vmatprep.mubr.msk.f32.mxu1 %vm376_vm0, %v3768_v57 }
 0x753   : > { %4209 = vmatmul.mubr.f32.gmra.mrb[186].mxu1 %v3808_v3 }
 0x754   : > { %4920 = vmatprep.mubr.msk.f32.mxu1 %vm376_vm0, %v3769_v13 }
 0x757   : > { %4214 = vmatmul.mubr.f32.gmra.mrb[188].mxu1 %v3809_v27 }
 0x758   : > { %4921 = vmatprep.mubr.msk.f32.mxu1 %vm376_vm0, %v9095_v19 }
 0x75b   : > { %4923 = vmatmul.mubr.msk.f32.gmra.mrb[190].mxu1 %vm6278_vm3, %v9093_v50 }
 0x7e2   : > { %v3950_v20 = vpop.f32.mrb[160].mxu1  ;;  %v4060_v60 = vpop.f32.mrb[178].mxu0 }
 0x7e3   : > { %v4056_v25 = vadd.f32 %v8761_v15, %v3950_v20  ;;  %v3952_v29 = vpop.f32.mrb[161].mxu1  ;;  %v4062_v51 = vpop.f32.mrb[179].mxu0 }
 0x7e6   : > { %v3955_v42 = vpop.f32.mrb[162].mxu1  ;;  %v4065_v22 = vpop.f32.mrb[180].mxu0 }
 0x7e7   : > { %v4061_v46 = vadd.f32 %v4060_v60, %v3955_v42  ;;  %v3957_v53 = vpop.f32.mrb[163].mxu1  ;;  %v4067_v14 = vpop.f32.mrb[181].mxu0 }
 0x7ea   : > { %v3960_v45 = vpop.f32.mrb[164].mxu1  ;;  %v4070_v40 = vpop.f32.mrb[182].mxu0 }
 0x7eb   : > { %v4066_v9 = vadd.f32 %v4065_v22, %v3960_v45  ;;  %v3962_v48 = vpop.f32.mrb[165].mxu1  ;;  %v4072_v19 = vpop.f32.mrb[183].mxu0 }
 0x7ee   : > { %v3965_v0 = vpop.f32.mrb[166].mxu1  ;;  %v4075_v36 = vpop.f32.mrb[184].mxu0 }
 0x7ef   : > { %v4071_v26 = vadd.f32 %v4070_v40, %v3965_v0  ;;  %v3967_v50 = vpop.f32.mrb[167].mxu1  ;;  %v4077_v55 = vpop.f32.mrb[185].mxu0 }
 0x7f2   : > { %v3970_v6 = vpop.f32.mrb[168].mxu1  ;;  %v4080_v58 = vpop.f32.mrb[186].mxu0 }
 0x7f3   : > { %v4076_v15 = vadd.f32 %v4075_v36, %v3970_v6  ;;  %v3972_v7 = vpop.f32.mrb[169].mxu1  ;;  %v4082_v4 = vpop.f32.mrb[187].mxu0 }
 0x7f6   : > { %v3975_v10 = vpop.f32.mrb[170].mxu1  ;;  %v4085_v62 = vpop.f32.mrb[188].mxu0 }
 0x7f7   : > { %v4081_v28 = vadd.f32 %v4080_v58, %v3975_v10  ;;  %v3977_v18 = vpop.f32.mrb[171].mxu1  ;;  %v4087_v30 = vpop.f32.mrb[189].mxu0 }
 0x7fa   : > { %v3980_v41 = vpop.f32.mrb[172].mxu1  ;;  %v4090_v61 = vpop.f32.mrb[190].mxu0 }
 0x7fb   : > { %v4086_v59 = vadd.f32 %v4085_v62, %v3980_v41  ;;  %v3982_v11 = vpop.f32.mrb[173].mxu1  ;;  %v4092_v1 = vpop.f32.mrb[191].mxu0 }
 0x7fe   : > { %v3985_v63 = vpop.f32.mrb[174].mxu1 }
 0x7ff   : > { %v4091_v56 = vadd.f32 %v4090_v61, %v3985_v63  ;;  %v3987_v21 = vpop.f32.mrb[175].mxu1 }
 0x812   : > { %v4185_v34 = vpop.f32.mrb[176].mxu1 }
 0x813   : > { %v4224_v8 = vadd.f32 %v4185_v34, %v4056_v25  ;;  %v4187_v57 = vpop.f32.mrb[177].mxu1 }
 0x815   : > { %v4240_v24 = vadd.f32 %v4925_v2, %v4224_v8 }
 0x816   : > { %v4190_v43 = vpop.f32.mrb[178].mxu1 }
 0x817   : > { %v4248_v49 = vmax.f32 %v4240_v24, 0.0  ;;  %v4225_v3 = vadd.f32 %v4190_v43, %v4061_v46  ;;  %v4192_v16 = vpop.f32.mrb[179].mxu1 }
 0x819   : > { %4256 = vst.msk [vmem:[%s8953_s7] sm:$0xff] %vm376_vm0, %v4248_v49  ;;  %v4241_v12 = vadd.f32 %v4925_v2, %v4225_v3 }
 0x81a   : > { %v4195_v13 = vpop.f32.mrb[180].mxu1 }
 0x81b   : > { %v4249_v23 = vmax.f32 %v4241_v12, 0.0  ;;  %v4226_v33 = vadd.f32 %v4195_v13, %v4066_v9  ;;  %v4197_v27 = vpop.f32.mrb[181].mxu1 }
 0x81d   : > { %4257 = vst.msk [vmem:[%s8953_s7 + $0x8] sm:$0xff] %vm376_vm0, %v4249_v23  ;;  %v4242_v44 = vadd.f32 %v4925_v2, %v4226_v33 }
 0x81e   : > { %v4200_v17 = vpop.f32.mrb[182].mxu1 }
 0x81f   : > { %v4250_v35 = vmax.f32 %v4242_v44, 0.0  ;;  %v4227_v39 = vadd.f32 %v4200_v17, %v4071_v26  ;;  %v4202_v32 = vpop.f32.mrb[183].mxu1 }
 0x821   : > { %4258 = vst.msk [vmem:[%s8953_s7 + $0x10] sm:$0xff] %vm376_vm0, %v4250_v35  ;;  %v4243_v38 = vadd.f32 %v4925_v2, %v4227_v39 }
 0x822   : > { %v4205_v5 = vpop.f32.mrb[184].mxu1 }
 0x823   : > { %v4251_v31 = vmax.f32 %v4243_v38, 0.0  ;;  %v4228_v52 = vadd.f32 %v4205_v5, %v4076_v15  ;;  %v4207_v37 = vpop.f32.mrb[185].mxu1 }
 0x825   : > { %4259 = vst.msk [vmem:[%s8953_s7 + $0x18] sm:$0xff] %vm376_vm0, %v4251_v31  ;;  %v4244_v47 = vadd.f32 %v4925_v2, %v4228_v52 }
 0x826   : > { %v4210_v54 = vpop.f32.mrb[186].mxu1 }
 0x827   : > { %v4252_v20 = vmax.f32 %v4244_v47, 0.0  ;;  %v4229_v60 = vadd.f32 %v4210_v54, %v4081_v28  ;;  %v4212_v25 = vpop.f32.mrb[187].mxu1 }
 0x829   : > { %4260 = vst.msk [vmem:[%s8953_s7 + $0x20] sm:$0xff] %vm376_vm0, %v4252_v20  ;;  %v4245_v29 = vadd.f32 %v4925_v2, %v4229_v60 }
 0x82a   : > { %v4215_v51 = vpop.f32.mrb[188].mxu1 }
 0x82b   : > { %v4253_v42 = vmax.f32 %v4245_v29, 0.0  ;;  %v4230_v22 = vadd.f32 %v4215_v51, %v4086_v59  ;;  %v4217_v46 = vpop.f32.mrb[189].mxu1 }
 0x82d   : > { %4261 = vst.msk [vmem:[%s8953_s7 + $0x28] sm:$0xff] %vm376_vm0, %v4253_v42  ;;  %v4246_v53 = vadd.f32 %v4925_v2, %v4230_v22 }
 0x82e   : > { %v4220_v14 = vpop.f32.mrb[190].mxu1 }
 0x82f   : > { %v4254_v45 = vmax.f32 %v4246_v53, 0.0  ;;  %v4231_v40 = vadd.f32 %v4220_v14, %v4091_v56  ;;  %v4222_v9 = vpop.f32.mrb[191].mxu1 }
 0x831   : > { %4262 = vst.msk [vmem:[%s8953_s7 + $0x30] sm:$0xff] %vm376_vm0, %v4254_v45  ;;  %v4247_v48 = vadd.f32 %v4925_v2, %v4231_v40 }
 0x833   : > { %v4255_v19 = vmax.f32 %v4247_v48, 0.0 }
 0x835   : > { %4263 = vst.msk [vmem:[%s8953_s7 + $0x38] sm:$0xff] %vm376_vm0, %v4255_v19 }
 0x836   : > { %5650 = shalt.err (!%p5647_p3)
}
 0x837   : > { %s5651_s25 = scalar_lea.hbm %s8974_s11, 1024  ;;  %s5655_s29 = scalar_lea.hbm %s9026_s3, 2048 }
 0x838   : > { %p5652_p4 = scmp.ne.s32.totalorder %s8974_s11, %s5651_s25  ;;  %p5656_p9 = scmp.lt.u32.totalorder %s8974_s11, %s9026_s3 }
 0x839   : > { %p5657_p10 = scmp.lt.u32.totalorder %s5655_s29, %s5651_s25  ;;  %p5659_p12 = scmp.lt.u32.totalorder %s5651_s25, %s8974_s11 }
 0x83a   : > { %p5653_p7 = pnand %p5652_p4, %p5765_p5 }
 0x83b   : > { %p5658_p11 = por %p5657_p10, %p5656_p9 }
 0x83c   : > { %p5654_p8 = pneg %p5653_p7 }
 0x83d   : > { %p5660_p13 = por %p5659_p12, %p5658_p11 }
 0x83f   : > { %p5661_p0 = pnand %p5660_p13, %p5654_p8 }
 0x841   : > { %5664 = shalt.err (!%p5661_p0)
}
 0x842   : > { %s5705_s5 = smov 128   ;;  %s5706_s6 = smov 8  }
 0x843   : > { %5581 = dma.vmem_to_hbm [thread:$0]  (%p5765_p5), %s8976_s8, 1024, %s8974_s11, %s8982_s19, %s5705_s5, %s5705_s5, %s5706_s6  }
 0x844 PF: > { %p5587_p1 = scmp.ge.s32.totalorder %s5699_s15, 2  ;;  %s4293_s7 = sand.u32 1, %s5687_s12  }
 0x845   : > { %s4294_s28 = scalar_lea.sflag [#allocation3], %s4293_s7 }
 0x846   : > { %p5584_p2 = pnand %p5587_p1, %p5769_p6 }
 0x848   : > { %5682 = dma.done.wait (!%p5584_p2), %s4294_s28, 1024  }
 0x849   : > { %5684 = vsyncadd (!%p5584_p2), %s4294_s28, 4294966272  ;;  %p13_p3 = scmp.ge.s32.totalorder %s5752_s18, 4   ;;  %s9098_s12 = smov %s5691_s13 }
 0x84a   : > { %s9099_s13 = smov %s5695_s14  ;;  %s9100_s14 = smov %s5763_s21 }
 0x84b   : > { %s9101_s15 = smov %s5752_s18  ;;  %15 = sbr.rel (!%p13_p3) target bundleno = 3 (0x3), region = 86 }
 0x852   :  { %4299 = vsyncpa [#allocation3], 1 }
 0x853   :  { %4301 = vsyncpa [#allocation3 + $0x1], 1 }

</bundles_post_ra>
